<compile_context>
chip_gen: v7x
topology: tpu7x:2x2x1
jax: 0.10.0
libtpu: 0.0.40
codegen_flags: <defaults>
</compile_context>

<pallas_src>
import functools

import jax
import jax.numpy as jnp
from jax import lax
from jax.experimental import pallas as pl
from jax.experimental.pallas import tpu as pltpu


def bottleneck_kernel(H, W,
                      x_ref, w1_ref, b1_ref, w2_ref, b2_ref, w3_ref, b3_ref,
                      o_ref):
    """Bt images per grid step.

    Block shapes:
      x_ref  : (Bt, H*W, Cin)     bf16  pixels-major, channels on lanes
      w1_ref : (Cin, Cmid)        bf16  1x1 conv, BN1 scale folded in
      w2_ref : (3, 3*Cmid, Cmid)  bf16  3x3 conv: per-dy (dx, ci)-major blocks
      w3_ref : (Cmid, Cout)       bf16  1x1 conv, BN3 scale folded in
      b*_ref : (1, C)             f32   folded BN biases
      o_ref  : (Bt, H*W, Cout)    bf16
    """
    Bt, HW, Cin = x_ref.shape
    Cmid = w1_ref.shape[1]
    Cout = w3_ref.shape[1]
    cdt = w1_ref.dtype                       # MXU compute dtype (bf16)
    P = Bt * H * W

    # ---- conv1 (1x1) + BN1 + ReLU (BN scale folded into w1) -----------------
    h1 = jnp.dot(x_ref[...].reshape(P, Cin), w1_ref[...],
                 preferred_element_type=jnp.float32)
    h1 = jnp.maximum(h1 + b1_ref[...], 0.0)                    # (P, Cmid) f32

    # ---- conv2 (3x3, stride 1, pad 1) ---------------------------------------
    # dx taps materialized as a 3*Cmid lane concat; dy taps are three
    # f32-accumulated dots combined with row-shifted adds (no 9*Cmid slab).
    h1c = h1.astype(cdt).reshape(Bt, H, W, Cmid)
    zc = jnp.zeros((Bt, H, 1, Cmid), cdt)
    left = jnp.concatenate([zc, h1c[:, :, :W - 1, :]], axis=2)   # value at w-1
    right = jnp.concatenate([h1c[:, :, 1:, :], zc], axis=2)      # value at w+1
    hx = jnp.concatenate([left, h1c, right], axis=-1)            # (Bt,H,W,3*Cmid)
    hx = hx.reshape(P, 3 * Cmid)

    c0 = jnp.dot(hx, w2_ref[0], preferred_element_type=jnp.float32)  # ky = 0 (h-1)
    c1 = jnp.dot(hx, w2_ref[1], preferred_element_type=jnp.float32)  # ky = 1 (h)
    c2 = jnp.dot(hx, w2_ref[2], preferred_element_type=jnp.float32)  # ky = 2 (h+1)
    c0 = c0.reshape(Bt, H, W, Cmid)
    c1 = c1.reshape(Bt, H, W, Cmid)
    c2 = c2.reshape(Bt, H, W, Cmid)
    zr = jnp.zeros((Bt, 1, W, Cmid), jnp.float32)
    h2 = (c1
          + jnp.concatenate([zr, c0[:, :H - 1]], axis=1)   # c0 row r -> out row r+1
          + jnp.concatenate([c2[:, 1:], zr], axis=1))      # c2 row r -> out row r-1
    h2 = jnp.maximum(h2.reshape(P, Cmid) + b2_ref[...], 0.0)   # (P, Cmid) f32

    # ---- conv3 (1x1) + BN3, identity residual, ReLU -------------------------
    h3 = jnp.dot(h2.astype(cdt), w3_ref[...], preferred_element_type=jnp.float32)
    res = x_ref[...].reshape(P, Cout).astype(jnp.float32)      # lazy re-read of x
    out = jnp.maximum(h3 + b3_ref[...] + res, 0.0)
    o_ref[...] = out.reshape(Bt, HW, Cout).astype(o_ref.dtype)


def fold_bn(gamma, beta, mean, var, eps=1e-5):
    scale = gamma / jnp.sqrt(var + eps)
    bias = beta - mean * scale
    return scale, bias


def prepare_params(w1_t, w2_t, w3_t, bn1, bn2, bn3, compute_dtype=jnp.bfloat16):
    """Fold BN scales into conv weights, cast MXU operands, keep biases f32.

    w*_t are PyTorch-convention (Cout, Cin, kH, kW) conv weights (bias=False).
    """
    Cmid, Cin = w1_t.shape[0], w1_t.shape[1]
    Cout = w3_t.shape[0]
    s1, b1 = fold_bn(*bn1)
    s2, b2 = fold_bn(*bn2)
    s3, b3 = fold_bn(*bn3)

    w1 = jnp.transpose(w1_t[:, :, 0, 0], (1, 0)) * s1[None, :]              # (Cin, Cmid)
    w2 = (jnp.transpose(w2_t, (2, 3, 1, 0)).reshape(9 * Cmid, Cmid)
          * s2[None, :]).reshape(3, 3 * Cmid, Cmid)                         # per-ky blocks
    w3 = jnp.transpose(w3_t[:, :, 0, 0], (1, 0)) * s3[None, :]              # (Cmid, Cout)

    return {
        "w1": w1.astype(compute_dtype), "b1": b1.reshape(1, Cmid).astype(jnp.float32),
        "w2": w2.astype(compute_dtype), "b2": b2.reshape(1, Cmid).astype(jnp.float32),
        "w3": w3.astype(compute_dtype), "b3": b3.reshape(1, Cout).astype(jnp.float32),
    }


def _pick_batch_tile(N, HW, Cin, Cout, budget_bytes=4 * 1024 * 1024):
    """Images per grid step: keep the (in + out) bf16 block near budget_bytes."""
    per_image = HW * (Cin + Cout) * 2
    bt = max(1, min(N, budget_bytes // max(per_image, 1)))
    while N % bt:
        bt -= 1
    return bt


def bottleneck_forward_slab(x_slab, params, H, W, *, batch_tile=None):
    """Pallas-facing API: x_slab is (N, H*W, Cin) bf16 channels-last.

    Returns (N, H*W, Cout) bf16. Callers that keep the whole network in this
    layout pay no per-block transpose cost.
    """
    N, HW, Cin = x_slab.shape
    assert HW == H * W
    Cmid = params["w1"].shape[1]
    Cout = params["w3"].shape[1]
    assert Cin == Cout, "identity residual requires in_channels == out_channels*4"

    Bt = batch_tile or _pick_batch_tile(N, HW, Cin, Cout)
    assert N % Bt == 0

    kernel = functools.partial(bottleneck_kernel, H, W)
    return pl.pallas_call(
        kernel,
        out_shape=jax.ShapeDtypeStruct((N, HW, Cout), jnp.bfloat16),
        grid_spec=pltpu.PrefetchScalarGridSpec(
            num_scalar_prefetch=0,
            grid=(N // Bt,),
            in_specs=[
                pl.BlockSpec((Bt, HW, Cin), lambda n: (n, 0, 0)),
                pl.BlockSpec((Cin, Cmid), lambda n: (0, 0)),
                pl.BlockSpec((1, Cmid), lambda n: (0, 0)),
                pl.BlockSpec((3, 3 * Cmid, Cmid), lambda n: (0, 0, 0)),
                pl.BlockSpec((1, Cmid), lambda n: (0, 0)),
                pl.BlockSpec((Cmid, Cout), lambda n: (0, 0)),
                pl.BlockSpec((1, Cout), lambda n: (0, 0)),
            ],
            out_specs=pl.BlockSpec((Bt, HW, Cout), lambda n: (n, 0, 0)),
        ),
        compiler_params=pltpu.CompilerParams(
            dimension_semantics=("parallel",),
            vmem_limit_bytes=32 * 1024 * 1024,  # safe on v7x (64 MiB/TC) and v5e/v6e (128 MiB)
        ),
    )(x_slab.astype(jnp.bfloat16), params["w1"], params["b1"], params["w2"],
      params["b2"], params["w3"], params["b3"])


def bottleneck_forward_nchw(x_nchw, params):
    """PyTorch-convention wrapper: (N, Cin, H, W) f32 in, same layout out.

    The transposes here are boundary cost only; use bottleneck_forward_slab
    to keep a whole network in (N, H*W, C) bf16 and skip them.
    """
    N, Cin, H, W = x_nchw.shape
    Cout = params["w3"].shape[1]
    x = jnp.transpose(x_nchw, (0, 2, 3, 1)).reshape(N, H * W, Cin)
    out = bottleneck_forward_slab(x.astype(jnp.bfloat16), params, H, W)
    return jnp.transpose(out.astype(jnp.float32).reshape(N, H, W, Cout), (0, 3, 1, 2))


def reference_forward(x_nchw, raw, compute_dtype=jnp.bfloat16):
    """Independent JAX reference (lax.conv, unfused BN); conv operands in bf16
    with f32 accumulation to mirror the kernel's MXU precision."""
    x = jnp.transpose(x_nchw, (0, 2, 3, 1))
    dn = ("NHWC", "HWIO", "NHWC")

    def bn(y, g, b, m, v, eps=1e-5):
        return (y - m) / jnp.sqrt(v + eps) * g + b

    def conv(y, w, pad):
        return lax.conv_general_dilated(
            y.astype(compute_dtype), w.astype(compute_dtype), (1, 1), pad,
            dimension_numbers=dn, preferred_element_type=jnp.float32)

    h = jax.nn.relu(bn(conv(x, raw["w1_hwio"], "VALID"), *raw["bn1"]))
    h = jax.nn.relu(bn(conv(h, raw["w2_hwio"], ((1, 1), (1, 1))), *raw["bn2"]))
    h = bn(conv(h, raw["w3_hwio"], "VALID"), *raw["bn3"])
    out = jax.nn.relu(h + x)
    return jnp.transpose(out, (0, 3, 1, 2))


if __name__ == "__main__":
    # Bottleneck(in_channels=16, out_channels=4): conv1 16->4, conv2 4->4 (3x3),
    # conv3 4->16 (= 4 * EXPANSION). Identity residual (projection=None, stride=1).
    N, Cin, H, W = 2, 16, 16, 16
    Cmid = 4
    Cout = Cmid * 4

    key = jax.random.PRNGKey(0)
    ks = jax.random.split(key, 7)

    x = jax.random.normal(ks[0], (N, Cin, H, W), jnp.float32)

    # PyTorch-convention conv weights (Cout, Cin, kH, kW), bias=False
    w1_t = jax.random.normal(ks[1], (Cmid, Cin, 1, 1), jnp.float32) * 0.1
    w2_t = jax.random.normal(ks[2], (Cmid, Cmid, 3, 3), jnp.float32) * 0.1
    w3_t = jax.random.normal(ks[3], (Cout, Cmid, 1, 1), jnp.float32) * 0.1

    # BatchNorm params (gamma, beta, running_mean, running_var), eval mode
    def bn_params(k, c):
        k1, k2, k3, k4 = jax.random.split(k, 4)
        gamma = 1.0 + 0.1 * jax.random.normal(k1, (c,), jnp.float32)
        beta = 0.1 * jax.random.normal(k2, (c,), jnp.float32)
        mean = 0.1 * jax.random.normal(k3, (c,), jnp.float32)
        var = jnp.abs(jax.random.normal(k4, (c,), jnp.float32)) + 0.5
        return gamma, beta, mean, var

    bn1 = bn_params(ks[4], Cmid)
    bn2 = bn_params(ks[5], Cmid)
    bn3 = bn_params(ks[6], Cout)

    params = prepare_params(w1_t, w2_t, w3_t, bn1, bn2, bn3)

    out = jax.block_until_ready(bottleneck_forward_nchw(x, params))

    raw = {
        "w1_hwio": jnp.transpose(w1_t, (2, 3, 1, 0)),
        "w2_hwio": jnp.transpose(w2_t, (2, 3, 1, 0)),
        "w3_hwio": jnp.transpose(w3_t, (2, 3, 1, 0)),
        "bn1": bn1, "bn2": bn2, "bn3": bn3,
    }
    ref = jax.block_until_ready(reference_forward(x, raw))

    assert out.shape == (N, Cin, H, W)
    err = jnp.max(jnp.abs(out - ref))
    # bf16 MXU operands, bf16 activation I/O (incl. the bf16-rounded residual
    # x) vs. the unfolded f32-weight reference -> a few e-3..e-2 of rounding.
    assert jnp.allclose(out, ref, atol=3e-2, rtol=3e-2), f"max abs err = {err}"
    print("KERNEL_OK")
</pallas_src>

<mosaic_0001>
module attributes {stable_mosaic.version = 11 : i64} {
  func.func @bottleneck_kernel(%arg0: i32, %arg1: memref<2x256x16xbf16, #tpu.memory_space<vmem>>, %arg2: memref<16x4xbf16, #tpu.memory_space<vmem>>, %arg3: memref<1x4xf32, #tpu.memory_space<vmem>>, %arg4: memref<3x12x4xbf16, #tpu.memory_space<vmem>>, %arg5: memref<1x4xf32, #tpu.memory_space<vmem>>, %arg6: memref<4x16xbf16, #tpu.memory_space<vmem>>, %arg7: memref<1x16xf32, #tpu.memory_space<vmem>>, %arg8: memref<2x256x16xbf16, #tpu.memory_space<vmem>>) attributes {dimension_semantics = [#tpu.dimension_semantics<parallel>], iteration_bounds = array<i64: 1>, scalar_prefetch = 0 : i64, scratch_operands = 0 : i64, tpu.core_type = #tpu.core_type<tc>, window_params = [{transform_indices = @transform_0, window_bounds = array<i64: 2, 256, 16>}, {pipeline_mode = #tpu.pipeline_mode<synchronous>, transform_indices = @transform_1, window_bounds = array<i64: 16, 4>}, {pipeline_mode = #tpu.pipeline_mode<synchronous>, transform_indices = @transform_2, window_bounds = array<i64: 1, 4>}, {pipeline_mode = #tpu.pipeline_mode<synchronous>, transform_indices = @transform_3, window_bounds = array<i64: 3, 12, 4>}, {pipeline_mode = #tpu.pipeline_mode<synchronous>, transform_indices = @transform_4, window_bounds = array<i64: 1, 4>}, {pipeline_mode = #tpu.pipeline_mode<synchronous>, transform_indices = @transform_5, window_bounds = array<i64: 4, 16>}, {pipeline_mode = #tpu.pipeline_mode<synchronous>, transform_indices = @transform_6, window_bounds = array<i64: 1, 16>}, {transform_indices = @transform_7, window_bounds = array<i64: 2, 256, 16>}]} {
    %c0 = arith.constant 0 : index
    %c0_0 = arith.constant 0 : index
    %c0_1 = arith.constant 0 : index
    %0 = vector.load %arg1[%c0, %c0_0, %c0_1] : memref<2x256x16xbf16, #tpu.memory_space<vmem>>, vector<2x256x16xbf16>
    %1 = vector.shape_cast %0 : vector<2x256x16xbf16> to vector<512x16xbf16>
    %c0_2 = arith.constant 0 : index
    %c0_3 = arith.constant 0 : index
    %2 = vector.load %arg2[%c0_2, %c0_3] : memref<16x4xbf16, #tpu.memory_space<vmem>>, vector<16x4xbf16>
    %cst = arith.constant dense<0.000000e+00> : vector<512x4xf32>
    %3 = tpu.matmul %1, %2, %cst {dimension_numbers = #tpu.dot_dimension_numbers<[1], [0], [0], [1], [0, 0, 1, 1], [], []>} : vector<512x16xbf16>, vector<16x4xbf16>, vector<512x4xf32> -> vector<512x4xf32>
    %c0_4 = arith.constant 0 : index
    %c0_5 = arith.constant 0 : index
    %4 = vector.load %arg3[%c0_4, %c0_5] : memref<1x4xf32, #tpu.memory_space<vmem>>, vector<1x4xf32>
    %5 = vector.broadcast %4 : vector<1x4xf32> to vector<512x4xf32>
    %6 = arith.addf %3, %5 : vector<512x4xf32>
    %cst_6 = arith.constant 0.000000e+00 : f32
    %7 = vector.broadcast %cst_6 : f32 to vector<512x4xf32>
    %8 = arith.maximumf %6, %7 : vector<512x4xf32>
    %9 = arith.truncf %8 : vector<512x4xf32> to vector<512x4xbf16>
    %10 = vector.shape_cast %9 : vector<512x4xbf16> to vector<2x16x16x4xbf16>
    %cst_7 = arith.constant 0.000000e+00 : bf16
    %11 = vector.broadcast %cst_7 : bf16 to vector<2x16x1x4xbf16>
    %12 = vector.extract_strided_slice %10 {offsets = [0, 0, 0, 0], sizes = [2, 16, 15, 4], strides = [1, 1, 1, 1]} : vector<2x16x16x4xbf16> to vector<2x16x15x4xbf16>
    %13 = tpu.concatenate %11, %12 in 2 : vector<2x16x1x4xbf16>, vector<2x16x15x4xbf16> -> vector<2x16x16x4xbf16>
    %14 = vector.extract_strided_slice %10 {offsets = [0, 0, 1, 0], sizes = [2, 16, 15, 4], strides = [1, 1, 1, 1]} : vector<2x16x16x4xbf16> to vector<2x16x15x4xbf16>
    %15 = tpu.concatenate %14, %11 in 2 : vector<2x16x15x4xbf16>, vector<2x16x1x4xbf16> -> vector<2x16x16x4xbf16>
    %16 = tpu.concatenate %13, %10, %15 in 3 : vector<2x16x16x4xbf16>, vector<2x16x16x4xbf16>, vector<2x16x16x4xbf16> -> vector<2x16x16x12xbf16>
    %17 = vector.shape_cast %16 : vector<2x16x16x12xbf16> to vector<512x12xbf16>
    %c0_8 = arith.constant 0 : index
    %c0_9 = arith.constant 0 : index
    %c0_10 = arith.constant 0 : index
    %18 = vector.load %arg4[%c0_8, %c0_9, %c0_10] : memref<3x12x4xbf16, #tpu.memory_space<vmem>>, vector<1x12x4xbf16>
    %19 = vector.shape_cast %18 : vector<1x12x4xbf16> to vector<12x4xbf16>
    %cst_11 = arith.constant dense<0.000000e+00> : vector<512x4xf32>
    %20 = tpu.matmul %17, %19, %cst_11 {dimension_numbers = #tpu.dot_dimension_numbers<[1], [0], [0], [1], [0, 0, 1, 1], [], []>} : vector<512x12xbf16>, vector<12x4xbf16>, vector<512x4xf32> -> vector<512x4xf32>
    %c1 = arith.constant 1 : index
    %c0_12 = arith.constant 0 : index
    %c0_13 = arith.constant 0 : index
    %21 = vector.load %arg4[%c1, %c0_12, %c0_13] : memref<3x12x4xbf16, #tpu.memory_space<vmem>>, vector<1x12x4xbf16>
    %22 = vector.shape_cast %21 : vector<1x12x4xbf16> to vector<12x4xbf16>
    %cst_14 = arith.constant dense<0.000000e+00> : vector<512x4xf32>
    %23 = tpu.matmul %17, %22, %cst_14 {dimension_numbers = #tpu.dot_dimension_numbers<[1], [0], [0], [1], [0, 0, 1, 1], [], []>} : vector<512x12xbf16>, vector<12x4xbf16>, vector<512x4xf32> -> vector<512x4xf32>
    %c2 = arith.constant 2 : index
    %c0_15 = arith.constant 0 : index
    %c0_16 = arith.constant 0 : index
    %24 = vector.load %arg4[%c2, %c0_15, %c0_16] : memref<3x12x4xbf16, #tpu.memory_space<vmem>>, vector<1x12x4xbf16>
    %25 = vector.shape_cast %24 : vector<1x12x4xbf16> to vector<12x4xbf16>
    %cst_17 = arith.constant dense<0.000000e+00> : vector<512x4xf32>
    %26 = tpu.matmul %17, %25, %cst_17 {dimension_numbers = #tpu.dot_dimension_numbers<[1], [0], [0], [1], [0, 0, 1, 1], [], []>} : vector<512x12xbf16>, vector<12x4xbf16>, vector<512x4xf32> -> vector<512x4xf32>
    %27 = vector.shape_cast %20 : vector<512x4xf32> to vector<2x16x16x4xf32>
    %28 = vector.shape_cast %23 : vector<512x4xf32> to vector<2x16x16x4xf32>
    %29 = vector.shape_cast %26 : vector<512x4xf32> to vector<2x16x16x4xf32>
    %cst_18 = arith.constant 0.000000e+00 : f32
    %30 = vector.broadcast %cst_18 : f32 to vector<2x1x16x4xf32>
    %31 = vector.extract_strided_slice %27 {offsets = [0, 0, 0, 0], sizes = [2, 15, 16, 4], strides = [1, 1, 1, 1]} : vector<2x16x16x4xf32> to vector<2x15x16x4xf32>
    %32 = tpu.concatenate %30, %31 in 1 : vector<2x1x16x4xf32>, vector<2x15x16x4xf32> -> vector<2x16x16x4xf32>
    %33 = arith.addf %28, %32 : vector<2x16x16x4xf32>
    %34 = vector.extract_strided_slice %29 {offsets = [0, 1, 0, 0], sizes = [2, 15, 16, 4], strides = [1, 1, 1, 1]} : vector<2x16x16x4xf32> to vector<2x15x16x4xf32>
    %35 = tpu.concatenate %34, %30 in 1 : vector<2x15x16x4xf32>, vector<2x1x16x4xf32> -> vector<2x16x16x4xf32>
    %36 = arith.addf %33, %35 : vector<2x16x16x4xf32>
    %37 = vector.shape_cast %36 : vector<2x16x16x4xf32> to vector<512x4xf32>
    %c0_19 = arith.constant 0 : index
    %c0_20 = arith.constant 0 : index
    %38 = vector.load %arg5[%c0_19, %c0_20] : memref<1x4xf32, #tpu.memory_space<vmem>>, vector<1x4xf32>
    %39 = vector.broadcast %38 : vector<1x4xf32> to vector<512x4xf32>
    %40 = arith.addf %37, %39 : vector<512x4xf32>
    %cst_21 = arith.constant 0.000000e+00 : f32
    %41 = vector.broadcast %cst_21 : f32 to vector<512x4xf32>
    %42 = arith.maximumf %40, %41 : vector<512x4xf32>
    %43 = arith.truncf %42 : vector<512x4xf32> to vector<512x4xbf16>
    %c0_22 = arith.constant 0 : index
    %c0_23 = arith.constant 0 : index
    %44 = vector.load %arg6[%c0_22, %c0_23] : memref<4x16xbf16, #tpu.memory_space<vmem>>, vector<4x16xbf16>
    %cst_24 = arith.constant dense<0.000000e+00> : vector<512x16xf32>
    %45 = tpu.matmul %43, %44, %cst_24 {dimension_numbers = #tpu.dot_dimension_numbers<[1], [0], [0], [1], [0, 0, 1, 1], [], []>} : vector<512x4xbf16>, vector<4x16xbf16>, vector<512x16xf32> -> vector<512x16xf32>
    %c0_25 = arith.constant 0 : index
    %c0_26 = arith.constant 0 : index
    %c0_27 = arith.constant 0 : index
    %46 = vector.load %arg1[%c0_25, %c0_26, %c0_27] : memref<2x256x16xbf16, #tpu.memory_space<vmem>>, vector<2x256x16xbf16>
    %47 = vector.shape_cast %46 : vector<2x256x16xbf16> to vector<512x16xbf16>
    %48 = arith.extf %47 : vector<512x16xbf16> to vector<512x16xf32>
    %c0_28 = arith.constant 0 : index
    %c0_29 = arith.constant 0 : index
    %49 = vector.load %arg7[%c0_28, %c0_29] : memref<1x16xf32, #tpu.memory_space<vmem>>, vector<1x16xf32>
    %50 = vector.broadcast %49 : vector<1x16xf32> to vector<512x16xf32>
    %51 = arith.addf %45, %50 : vector<512x16xf32>
    %52 = arith.addf %51, %48 : vector<512x16xf32>
    %cst_30 = arith.constant 0.000000e+00 : f32
    %53 = vector.broadcast %cst_30 : f32 to vector<512x16xf32>
    %54 = arith.maximumf %52, %53 : vector<512x16xf32>
    %55 = vector.shape_cast %54 : vector<512x16xf32> to vector<2x256x16xf32>
    %56 = arith.truncf %55 : vector<2x256x16xf32> to vector<2x256x16xbf16>
    %c0_31 = arith.constant 0 : index
    %c0_32 = arith.constant 0 : index
    %c0_33 = arith.constant 0 : index
    %57 = vector.load %arg8[%c0_31, %c0_32, %c0_33] : memref<2x256x16xbf16, #tpu.memory_space<vmem>>, vector<2x256x16xbf16>
    tpu.vector_store %arg8[%c0_31, %c0_32, %c0_33], %56 {strides = array<i32>} : memref<2x256x16xbf16, #tpu.memory_space<vmem>>, vector<2x256x16xbf16>,
    return
  }
  func.func @transform_0(%arg0: i32) -> (i32, i32, i32) {
    %c0_i32 = arith.constant 0 : i32
    %c0_i32_0 = arith.constant 0 : i32
    %c0_i32_1 = arith.constant 0 : i32
    return %arg0, %c0_i32, %c0_i32_0 : i32, i32, i32
  }
  func.func @transform_1(%arg0: i32) -> (i32, i32) {
    %c0_i32 = arith.constant 0 : i32
    %c0_i32_0 = arith.constant 0 : i32
    %c0_i32_1 = arith.constant 0 : i32
    return %c0_i32, %c0_i32_0 : i32, i32
  }
  func.func @transform_2(%arg0: i32) -> (i32, i32) {
    %c0_i32 = arith.constant 0 : i32
    %c0_i32_0 = arith.constant 0 : i32
    %c0_i32_1 = arith.constant 0 : i32
    return %c0_i32, %c0_i32_0 : i32, i32
  }
  func.func @transform_3(%arg0: i32) -> (i32, i32, i32) {
    %c0_i32 = arith.constant 0 : i32
    %c0_i32_0 = arith.constant 0 : i32
    %c0_i32_1 = arith.constant 0 : i32
    %c0_i32_2 = arith.constant 0 : i32
    return %c0_i32, %c0_i32_0, %c0_i32_1 : i32, i32, i32
  }
  func.func @transform_4(%arg0: i32) -> (i32, i32) {
    %c0_i32 = arith.constant 0 : i32
    %c0_i32_0 = arith.constant 0 : i32
    %c0_i32_1 = arith.constant 0 : i32
    return %c0_i32, %c0_i32_0 : i32, i32
  }
  func.func @transform_5(%arg0: i32) -> (i32, i32) {
    %c0_i32 = arith.constant 0 : i32
    %c0_i32_0 = arith.constant 0 : i32
    %c0_i32_1 = arith.constant 0 : i32
    return %c0_i32, %c0_i32_0 : i32, i32
  }
  func.func @transform_6(%arg0: i32) -> (i32, i32) {
    %c0_i32 = arith.constant 0 : i32
    %c0_i32_0 = arith.constant 0 : i32
    %c0_i32_1 = arith.constant 0 : i32
    return %c0_i32, %c0_i32_0 : i32, i32
  }
  func.func @transform_7(%arg0: i32) -> (i32, i32, i32) {
    %c0_i32 = arith.constant 0 : i32
    %c0_i32_0 = arith.constant 0 : i32
    %c0_i32_1 = arith.constant 0 : i32
    return %arg0, %c0_i32, %c0_i32_0 : i32, i32, i32
  }
}

</mosaic_0001>

<bundles_post_ra>
// kernel: tpu_custom_call.1
= control target key start
LH: loop header
LB: loop body
LE: loop exit
PB: predicated region body
PF: predicated region fallthrough
CT: control target
= control target key end

     0   :  { %vm266_vm0 = vcmask 130048   ;;  %vm1596_vm1 = vcmask 1045504   ;;  %vm1135_vm2 = vcmask 1047552   ;;  %s4625_s25 = smov 4   ;;  %vm1136_vm3 = vsmask.f32 7424  ;;  %s6732_s1 = inlined_call_operand.vmem [shape: bf16[16,4], index: 1, kind: input, shape index: {}]   ;;  %s6733_s0 = inlined_call_operand.vmem [shape: bf16[2,256,16], index: 0, kind: input, shape index: {}]   ;;  %s6734_s3 = inlined_call_operand.vmem [shape: bf16[3,12,4], index: 3, kind: input, shape index: {}]   ;;  %s6735_s2 = inlined_call_operand.vmem [shape: f32[1,4], index: 2, kind: input, shape index: {}]   ;;  %s6736_s5 = inlined_call_operand.vmem [shape: bf16[4,16], index: 5, kind: input, shape index: {}]   ;;  %s6737_s4 = inlined_call_operand.vmem [shape: f32[1,4], index: 4, kind: input, shape index: {}]   ;;  %s6738_s6 = inlined_call_operand.vmem [shape: f32[1,16], index: 6, kind: input, shape index: {}]   ;;  %s6739_s7 = inlined_call_operand.vmem [shape: bf16[2,256,16], index: 7, kind: output, shape index: {}]  }
   0x1   :  { %v4524_v0 = vld [vmem:[%s6732_s1] sm:$0xff]   ;;  %v29_v2 = vld [vmem:[%s6733_s0 + $0x8] sm:$0xff]   ;;  %v31_v3 = vld [vmem:[%s6733_s0 + $0x10] sm:$0xff]   ;;  %s4626_s26 = smov 8   ;;  %vm1004_vm5 = vcmask 1040384   ;;  %vm1362_vm8 = vcmask 31744  }
   0x2   :  { %v27_v1 = vld [vmem:[%s6733_s0] sm:$0xff]   ;;  %4186 = vmatprep.subr.bf16.mxu0 %v4524_v0  ;;  %4516 = vmatprep.subr.bf16.mxu1 %v4524_v0  ;;  %v61_v5 = vld [vmem:[%s6733_s0 + $0x88] sm:$0xff]   ;;  %v33_v6 = vld [vmem:[%s6733_s0 + $0x18] sm:$0xff]   ;;  %vm1005_vm6 = vsmask.f32 256  ;;  %vm1459_vm9 = vcmask 64512  }
   0x3   :  { %4187 = vmatpush3.bf16.msra.mxu0 %v4524_v0  ;;  %4517 = vmatpush3.bf16.msra.mxu1 %v4524_v0  ;;  %v59_v4 = vld [vmem:[%s6733_s0 + $0x80] sm:$0xff]   ;;  %v63_v7 = vld [vmem:[%s6733_s0 + $0x90] sm:$0xff]   ;;  %v65_v9 = vld [vmem:[%s6733_s0 + $0x98] sm:$0xff]   ;;  %vm1531_vm10 = vcmask 97280   ;;  %vm2944_vm11 = vcmask 1041408   ;;  %vm3621_vm12 = vcmask 125952  }
   0x4   :  { %4188 = vmatprep.mubr.msk.bf16.mxu0 %vm266_vm0, %v27_v1  ;;  %v35_v8 = vld [vmem:[%s6733_s0 + $0x20] sm:$0xff]   ;;  %4220 = vmatprep.mubr.msk.bf16.mxu1 %vm266_vm0, %v59_v4  ;;  %v37_v11 = vld [vmem:[%s6733_s0 + $0x28] sm:$0xff]   ;;  %v39_v12 = vld [vmem:[%s6733_s0 + $0x30] sm:$0xff]  }
   0x5   :  { %v67_v10 = vld [vmem:[%s6733_s0 + $0xa0] sm:$0xff]   ;;  %v69_v13 = vld [vmem:[%s6733_s0 + $0xa8] sm:$0xff]   ;;  %v71_v14 = vld [vmem:[%s6733_s0 + $0xb0] sm:$0xff]  }
   0x6   :  { %4189 = vmatmul.mubr.msk.bf16.vlgmr.msra.gmra.mrb[0].mxu0 %vm266_vm0, %v29_v2  ;;  %4221 = vmatmul.mubr.msk.bf16.vlgmr.msra.gmra.mrb[0].mxu1 %vm266_vm0, %v61_v5  ;;  %v41_v15 = vld [vmem:[%s6733_s0 + $0x38] sm:$0xff]   ;;  %v43_v16 = vld [vmem:[%s6733_s0 + $0x40] sm:$0xff]   ;;  %v45_v19 = vld [vmem:[%s6733_s0 + $0x48] sm:$0xff]  }
   0x7   :  { %4192 = vmatprep.mubr.msk.bf16.mxu0 %vm266_vm0, %v31_v3  ;;  %4224 = vmatprep.mubr.msk.bf16.mxu1 %vm266_vm0, %v63_v7  ;;  %v73_v17 = vld [vmem:[%s6733_s0 + $0xb8] sm:$0xff]   ;;  %v75_v18 = vld [vmem:[%s6733_s0 + $0xc0] sm:$0xff]   ;;  %v47_v20 = vld [vmem:[%s6733_s0 + $0x50] sm:$0xff]  }
   0x8   :  { %v77_v21 = vld [vmem:[%s6733_s0 + $0xc8] sm:$0xff]   ;;  %v79_v22 = vld [vmem:[%s6733_s0 + $0xd0] sm:$0xff]   ;;  %v49_v23 = vld [vmem:[%s6733_s0 + $0x58] sm:$0xff]  }
   0x9   :  { %v51_v24 = vld [vmem:[%s6733_s0 + $0x60] sm:$0xff]   ;;  %v81_v25 = vld [vmem:[%s6733_s0 + $0xd8] sm:$0xff]   ;;  %v53_v27 = vld [vmem:[%s6733_s0 + $0x68] sm:$0xff]  }
   0xa   :  { %v83_v26 = vld [vmem:[%s6733_s0 + $0xe0] sm:$0xff]   ;;  %v55_v28 = vld [vmem:[%s6733_s0 + $0x70] sm:$0xff]   ;;  %v85_v29 = vld [vmem:[%s6733_s0 + $0xe8] sm:$0xff]  }
   0xb   :  { %v87_v30 = vld [vmem:[%s6733_s0 + $0xf0] sm:$0xff]   ;;  %v57_v31 = vld [vmem:[%s6733_s0 + $0x78] sm:$0xff]   ;;  %v4557_v33 = vld [vmem:[%s6734_s3] sm:$0x3f]  }
   0xc   :  { %v89_v32 = vld [vmem:[%s6733_s0 + $0xf8] sm:$0xff]   ;;  %4518 = vmatprep.subr.msk.bf16.mxu1 %vm1596_vm1, %v4557_v33  ;;  %v1598_v34 = vsel %vm1596_vm1, %v4557_v33, 0  ;;  %v4806_v35 = vld [vmem:[%s6735_s2] ss:$0 sm:$0xff]  ;;  %v4558_v49 = vld [vmem:[%s6734_s3 + $0x8] sm:$0x3f]  }
   0xd   :  { %4253 = vmatpush3.bf16.msra.mxu1 %v1598_v34  ;;  %4519 = vmatprep.subr.msk.bf16.mxu0 %vm1596_vm1, %v4558_v49  ;;  %v1894_v57 = vsel %vm1596_vm1, %v4558_v49, 0  ;;  %v4559_v62 = vld [vmem:[%s6734_s3 + $0x10] sm:$0x3f]   ;;  %vm4844_vm4 = vmand %vm1135_vm2, %vm1136_vm3 }
   0xe   :  { %4193 = vmatmul.mubr.msk.bf16.gmra.mrb[4].mxu0 %vm266_vm0, %v33_v6  ;;  %4225 = vmatmul.mubr.msk.bf16.gmra.mrb[4].mxu1 %vm266_vm0, %v65_v9  ;;  %vm5388_vm7 = vmand %vm1004_vm5, %vm1005_vm6 }
   0xf   :  { %4196 = vmatprep.mubr.msk.bf16.mxu0 %vm266_vm0, %v35_v8  ;;  %4228 = vmatprep.mubr.msk.bf16.mxu1 %vm266_vm0, %v67_v10 }
  0x10   :  { %4319 = vmatpush3.bf16.msra.mxu0 %v1894_v57  ;;  %4520 = vmatprep.subr.msk.bf16.mxu1 %vm1596_vm1, %v4559_v62 }
  0x16   :  { %4197 = vmatmul.mubr.msk.bf16.gmra.mrb[8].mxu0 %vm266_vm0, %v37_v11  ;;  %4229 = vmatmul.mubr.msk.bf16.gmra.mrb[8].mxu1 %vm266_vm0, %v69_v13 }
  0x17   :  { %4200 = vmatprep.mubr.msk.bf16.mxu0 %vm266_vm0, %v39_v12  ;;  %4232 = vmatprep.mubr.msk.bf16.mxu1 %vm266_vm0, %v71_v14 }
  0x1e   :  { %4201 = vmatmul.mubr.msk.bf16.gmra.mrb[12].mxu0 %vm266_vm0, %v41_v15  ;;  %4233 = vmatmul.mubr.msk.bf16.gmra.mrb[12].mxu1 %vm266_vm0, %v73_v17 }
  0x1f   :  { %4204 = vmatprep.mubr.msk.bf16.mxu0 %vm266_vm0, %v43_v16  ;;  %4236 = vmatprep.mubr.msk.bf16.mxu1 %vm266_vm0, %v75_v18 }
  0x26   :  { %4205 = vmatmul.mubr.msk.bf16.gmra.mrb[16].mxu0 %vm266_vm0, %v45_v19  ;;  %4237 = vmatmul.mubr.msk.bf16.gmra.mrb[16].mxu1 %vm266_vm0, %v77_v21 }
  0x27   :  { %4208 = vmatprep.mubr.msk.bf16.mxu0 %vm266_vm0, %v47_v20  ;;  %4240 = vmatprep.mubr.msk.bf16.mxu1 %vm266_vm0, %v79_v22 }
  0x2e   :  { %4209 = vmatmul.mubr.msk.bf16.gmra.mrb[20].mxu0 %vm266_vm0, %v49_v23  ;;  %4241 = vmatmul.mubr.msk.bf16.gmra.mrb[20].mxu1 %vm266_vm0, %v81_v25 }
  0x2f   :  { %4212 = vmatprep.mubr.msk.bf16.mxu0 %vm266_vm0, %v51_v24  ;;  %4244 = vmatprep.mubr.msk.bf16.mxu1 %vm266_vm0, %v83_v26 }
  0x36   :  { %4213 = vmatmul.mubr.msk.bf16.gmra.mrb[24].mxu0 %vm266_vm0, %v53_v27  ;;  %4245 = vmatmul.mubr.msk.bf16.gmra.mrb[24].mxu1 %vm266_vm0, %v85_v29 }
  0x37   :  { %4216 = vmatprep.mubr.msk.bf16.mxu0 %vm266_vm0, %v55_v28  ;;  %4248 = vmatprep.mubr.msk.bf16.mxu1 %vm266_vm0, %v87_v30 }
  0x3e   :  { %4217 = vmatmul.mubr.msk.bf16.gmra.mrb[28].mxu0 %vm266_vm0, %v57_v31  ;;  %4249 = vmatmul.mubr.msk.bf16.gmra.mrb[28].mxu1 %vm266_vm0, %v89_v32 }
  0xd9   :  { %v4190_v36 = vpop.f32.mrb[0].mxu0  ;;  %v4222_v44 = vpop.f32.mrb[0].mxu1 }
  0xda   :  { %v406_v37 = vadd.f32 %v4190_v36, %v4806_v35  ;;  %v397_v38 = vpop.f32.mrb[1].mxu0  ;;  %v534_v47 = vadd.f32 %v4222_v44, %v4806_v35  ;;  %v525_v48 = vpop.f32.mrb[1].mxu1 }
  0xdb   :  { %v398_v39 = vadd.f32 %v4806_v35, %v397_v38  ;;  %v4191_v40 = vpop.f32.mrb[2].mxu0  ;;  %v526_v52 = vadd.f32 %v4806_v35, %v525_v48  ;;  %v4223_v53 = vpop.f32.mrb[2].mxu1 }
  0xdc   :  { %v409_v41 = vadd.f32 %v4191_v40, %v4806_v35  ;;  %v400_v42 = vpop.f32.mrb[3].mxu0  ;;  %v654_v45 = vmax.f32 %v406_v37, 0.0  ;;  %v537_v55 = vadd.f32 %v4223_v53, %v4806_v35  ;;  %v528_v56 = vpop.f32.mrb[3].mxu1  ;;  %v686_v60 = vmax.f32 %v534_v47, 0.0 }
  0xdd   :  { %v401_v43 = vadd.f32 %v4806_v35, %v400_v42  ;;  %v652_v50 = vmax.f32 %v398_v39, 0.0  ;;  %v529_v61 = vadd.f32 %v4806_v35, %v528_v56  ;;  %v684_v2 = vmax.f32 %v526_v52, 0.0 }
  0xde   :  { %v655_v46 = vmax.f32 %v409_v41, 0.0  ;;  %v687_v3 = vmax.f32 %v537_v55, 0.0 }
  0xdf   :  { %v653_v51 = vmax.f32 %v401_v43, 0.0  ;;  %v685_v7 = vmax.f32 %v529_v61, 0.0 }
  0xe0   :  { %v4817_v54 = vpack.c.bf16 %v655_v46, %v654_v45  ;;  %v4850_v21 = vpack.c.bf16 %v687_v3, %v686_v60 }
  0xe1   :  { %v4822_v58 = vpack.c.bf16 %v653_v51, %v652_v50  ;;  %v4194_v59 = vpop.f32.mrb[4].mxu0  ;;  %v4226_v17 = vpop.f32.mrb[4].mxu1  ;;  %v4852_v22 = vpack.c.bf16 %v685_v7, %v684_v2 }
  0xe2   :  { %v6747_v63 = vshll.u32 %v4817_v54, 16  ;;  %v422_v0 = vadd.f32 %v4194_v59, %v4806_v35  ;;  %v413_v1 = vpop.f32.mrb[5].mxu0  ;;  %v6750_v11 = vshrl.u32 %v4817_v54, 16  ;;  %v541_v23 = vpop.f32.mrb[5].mxu1  ;;  %v550_v26 = vadd.f32 %v4226_v17, %v4806_v35 }
  0xe3   :  { %v414_v4 = vadd.f32 %v4806_v35, %v413_v1  ;;  %v4195_v5 = vpop.f32.mrb[6].mxu0  ;;  %1202 = vrot.lane.b32.xlu0 %v4822_v58, %s4625_s25  ;;  %v6749_v6 = vshll.u32 %v4822_v58, 16  ;;  %v6751_v15 = vshrl.u32 %v4822_v58, 16  ;;  %6783 = vst [vmem:[#allocation2_spill] sm:$0xff] %v4852_v22  ;;  %v542_v27 = vadd.f32 %v4806_v35, %v541_v23  ;;  %v4227_v28 = vpop.f32.mrb[6].mxu1 }
  0xe4   :  { %v658_v8 = vmax.f32 %v422_v0, 0.0  ;;  %v425_v9 = vadd.f32 %v4195_v5, %v4806_v35  ;;  %v416_v10 = vpop.f32.mrb[7].mxu0  ;;  %v1041_v12 = vrot.slane %v6747_v63, 1  ;;  %v544_v30 = vpop.f32.mrb[7].mxu1  ;;  %v690_v39 = vmax.f32 %v550_v26, 0.0 }
  0xe5   :  { %v656_v13 = vmax.f32 %v414_v4, 0.0  ;;  %v417_v14 = vadd.f32 %v4806_v35, %v416_v10  ;;  %v1039_v16 = vrot.slane %v6749_v6, 1  ;;  %v553_v40 = vadd.f32 %v4227_v28, %v4806_v35 }
  0xe6   :  { %v659_v18 = vmax.f32 %v425_v9, 0.0  ;;  %v1042_v20 = vor.u32 %v1041_v12, %v6750_v11  ;;  %v688_v44 = vmax.f32 %v542_v27, 0.0  ;;  %v545_v45 = vadd.f32 %v4806_v35, %v544_v30 }
  0xe7   :  { %v657_v24 = vmax.f32 %v417_v14, 0.0  ;;  %1204 = vrot.lane.b32.xlu0 %v4817_v54, %s4625_s25  ;;  %v1040_v25 = vor.u32 %v1039_v16, %v6751_v15  ;;  %v691_v59 = vmax.f32 %v553_v40, 0.0 }
  0xe8   :  { %v4860_v29 = vpack.c.bf16 %v659_v18, %v658_v8  ;;  %v1139_v34 = vsel %vm4844_vm4, %v1042_v20, 0  ;;  %v689_v60 = vmax.f32 %v545_v45, 0.0 }
  0xe9   :  { %v4862_v31 = vpack.c.bf16 %v657_v24, %v656_v13  ;;  %v4198_v32 = vpop.f32.mrb[8].mxu0  ;;  %v1138_v33 = vsel %vm4844_vm4, %v1040_v25, 0  ;;  %v4230_v56 = vpop.f32.mrb[8].mxu1  ;;  %v4892_v4 = vpack.c.bf16 %v691_v59, %v690_v39 }
  0xea   :  { %v6743_v36 = vshll.u32 %v4860_v29, 16  ;;  %v438_v37 = vadd.f32 %v4198_v32, %v4806_v35  ;;  %v429_v38 = vpop.f32.mrb[9].mxu0  ;;  %1298 = vrot.lane.b32.xlu1 %v1138_v33, %s4626_s26  ;;  %v6746_v49 = vshrl.u32 %v4860_v29, 16  ;;  %v557_v61 = vpop.f32.mrb[9].mxu1  ;;  %v4894_v5 = vpack.c.bf16 %v689_v60, %v688_v44 }
  0xeb   :  { %v6745_v41 = vshll.u32 %v4862_v31, 16  ;;  %v430_v42 = vadd.f32 %v4806_v35, %v429_v38  ;;  %v4199_v43 = vpop.f32.mrb[10].mxu0  ;;  %1206 = vrot.lane.b32.xlu0 %v4862_v31, %s4625_s25  ;;  %v6748_v53 = vshrl.u32 %v4862_v31, 16  ;;  %v4231_v2 = vpop.f32.mrb[10].mxu1  ;;  %v566_v7 = vadd.f32 %v4230_v56, %v4806_v35 }
  0xec   :  { %v662_v46 = vmax.f32 %v438_v37, 0.0  ;;  %v441_v47 = vadd.f32 %v4199_v43, %v4806_v35  ;;  %v432_v48 = vpop.f32.mrb[11].mxu0  ;;  %v1045_v50 = vrot.slane %v6743_v36, 1  ;;  %v560_v8 = vpop.f32.mrb[11].mxu1  ;;  %v558_v24 = vadd.f32 %v4806_v35, %v557_v61 }
  0xed   :  { %v660_v51 = vmax.f32 %v430_v42, 0.0  ;;  %v433_v52 = vadd.f32 %v4806_v35, %v432_v48  ;;  %v1043_v55 = vrot.slane %v6745_v41, 1  ;;  %v694_v30 = vmax.f32 %v566_v7, 0.0 }
  0xee   :  { %v663_v57 = vmax.f32 %v441_v47, 0.0  ;;  %1300 = vrot.lane.b32.xlu1 %v1139_v34, %s4626_s26  ;;  %v1046_v1 = vor.u32 %v1045_v50, %v6746_v49  ;;  %v569_v42 = vadd.f32 %v4231_v2, %v4806_v35  ;;  %v561_v43 = vadd.f32 %v4806_v35, %v560_v8 }
  0xef   :  { %v661_v62 = vmax.f32 %v433_v52, 0.0  ;;  %v1044_v0 = vor.u32 %v1043_v55, %v6748_v53  ;;  %v692_v47 = vmax.f32 %v558_v24, 0.0 }
  0xf0   :  { %v4890_v3 = vpack.c.bf16 %v663_v57, %v662_v46  ;;  %v1141_v23 = vsel %vm4844_vm4, %v1046_v1, 0  ;;  %v695_v52 = vmax.f32 %v569_v42, 0.0  ;;  %v693_v55 = vmax.f32 %v561_v43, 0.0 }
  0xf1   :  { %v4897_v9 = vpack.c.bf16 %v661_v62, %v660_v51  ;;  %v4202_v10 = vpop.f32.mrb[12].mxu0  ;;  %v1140_v12 = vsel %vm4844_vm4, %v1044_v0, 0  ;;  %v4234_v38 = vpop.f32.mrb[12].mxu1 }
  0xf2   :  { %6784 = vst [vmem:[#allocation3_spill] sm:$0xff] %v4890_v3  ;;  %v6740_v13 = vshll.u32 %v4890_v3, 16  ;;  %v454_v14 = vadd.f32 %v4202_v10, %v4806_v35  ;;  %v445_v16 = vpop.f32.mrb[13].mxu0  ;;  %1302 = vrot.lane.b32.xlu0 %v1140_v12, %s4626_s26  ;;  %1208 = vrot.lane.b32.xlu1 %v4860_v29, %s4625_s25  ;;  %v6742_v40 = vshrl.u32 %v4890_v3, 16  ;;  %v4924_v44 = vpop.f32.mrb[13].mxu1  ;;  %v4945_v1 = vpack.c.bf16 %v695_v52, %v694_v30 }
  0xf3   :  { %6785 = vst [vmem:[#allocation4_spill] sm:$0xff] %v4897_v9  ;;  %v6741_v17 = vshll.u32 %v4897_v9, 16  ;;  %v446_v18 = vadd.f32 %v4806_v35, %v445_v16  ;;  %v4203_v20 = vpop.f32.mrb[14].mxu0  ;;  %v6744_v34 = vshrl.u32 %v4897_v9, 16  ;;  %v4928_v48 = vpop.f32.mrb[14].mxu1  ;;  %v4949_v10 = vpack.c.bf16 %v693_v55, %v692_v47 }
  0xf4   :  { %v666_v25 = vmax.f32 %v454_v14, 0.0  ;;  %v457_v26 = vadd.f32 %v4203_v20, %v4806_v35  ;;  %v448_v27 = vpop.f32.mrb[15].mxu0  ;;  %v1049_v28 = vrot.slane %v6740_v13, 1  ;;  %v4934_v56 = vpop.f32.mrb[15].mxu1 }
  0xf5   :  { %v664_v32 = vmax.f32 %v446_v18, 0.0  ;;  %v449_v33 = vadd.f32 %v4806_v35, %v448_v27  ;;  %v1047_v37 = vrot.slane %v6741_v17, 1 }
  0xf6   :  { %v667_v39 = vmax.f32 %v457_v26, 0.0  ;;  %1210 = vrot.lane.b32.xlu0 %v4897_v9, %s4625_s25  ;;  %1304 = vrot.lane.b32.xlu1 %v1141_v23, %s4626_s26  ;;  %v1050_v51 = vor.u32 %v1049_v28, %v6742_v40 }
  0xf7   :  { %v665_v45 = vmax.f32 %v449_v33, 0.0  ;;  %v1048_v46 = vor.u32 %v1047_v37, %v6744_v34 }
  0xf8   :  { %v4930_v50 = vpack.c.bf16 %v667_v39, %v666_v25  ;;  %v1143_v18 = vsel %vm4844_vm4, %v1050_v51, 0 }
  0xf9   :  { %v4936_v57 = vpack.c.bf16 %v665_v45, %v664_v32  ;;  %v4206_v59 = vpop.f32.mrb[16].mxu0  ;;  %v1142_v60 = vsel %vm4844_vm4, %v1048_v46, 0  ;;  %v4960_v27 = vpop.f32.mrb[16].mxu1 }
  0xfa   :  { %v6761_v61 = vshll.u32 %v4930_v50, 16  ;;  %v470_v62 = vadd.f32 %v4206_v59, %v4806_v35  ;;  %v461_v0 = vpop.f32.mrb[17].mxu0  ;;  %1306 = vrot.lane.b32.xlu0 %v1142_v60, %s4626_s26  ;;  %1212 = vrot.lane.b32.xlu1 %v4890_v3, %s4625_s25  ;;  %v798_v30 = vshrl.u32 %v4930_v50, 16  ;;  %v4966_v32 = vpop.f32.mrb[17].mxu1  ;;  %v582_v60 = vadd.f32 %v4234_v38, %v4806_v35 }
  0xfb   :  { %v6762_v2 = vshll.u32 %v4936_v57, 16  ;;  %v462_v7 = vadd.f32 %v4806_v35, %v461_v0  ;;  %v4207_v8 = vpop.f32.mrb[18].mxu0  ;;  %v791_v25 = vshrl.u32 %v4936_v57, 16  ;;  %v4970_v39 = vpop.f32.mrb[18].mxu1 }
  0xfc   :  { %v670_v12 = vmax.f32 %v470_v62, 0.0  ;;  %v473_v14 = vadd.f32 %v4207_v8, %v4806_v35  ;;  %v464_v16 = vpop.f32.mrb[19].mxu0  ;;  %v1053_v20 = vrot.slane %v6761_v61, 1  ;;  %v4976_v45 = vpop.f32.mrb[19].mxu1 }
  0xfd   :  { %v668_v23 = vmax.f32 %v462_v7, 0.0  ;;  %v465_v24 = vadd.f32 %v4806_v35, %v464_v16  ;;  %v1051_v26 = vrot.slane %v6762_v2, 1  ;;  %v6765_v2 = vshll.u32 %v4894_v5, 16 }
  0xfe   :  { %v671_v28 = vmax.f32 %v473_v14, 0.0  ;;  %1214 = vrot.lane.b32.xlu0 %v4936_v57, %s4625_s25  ;;  %1308 = vrot.lane.b32.xlu1 %v1143_v18, %s4626_s26  ;;  %v1054_v43 = vor.u32 %v1053_v20, %v798_v30 }
  0xff   :  { %v669_v33 = vmax.f32 %v465_v24, 0.0  ;;  %v1052_v37 = vor.u32 %v1051_v26, %v791_v25 }
 0x100   :  { %v4972_v42 = vpack.c.bf16 %v671_v28, %v670_v12  ;;  %v1145_v16 = vsel %vm4844_vm4, %v1054_v43, 0  ;;  %v574_v43 = vadd.f32 %v4806_v35, %v4924_v44 }
 0x101   :  { %v4978_v46 = vpack.c.bf16 %v669_v33, %v668_v23  ;;  %v4210_v47 = vpop.f32.mrb[20].mxu0  ;;  %v1144_v51 = vsel %vm4844_vm4, %v1052_v37, 0  ;;  %v4999_v26 = vpop.f32.mrb[20].mxu1  ;;  %v698_v37 = vmax.f32 %v582_v60, 0.0 }
 0x102   :  { %v6756_v52 = vshll.u32 %v4972_v42, 16  ;;  %v486_v55 = vadd.f32 %v4210_v47, %v4806_v35  ;;  %v477_v59 = vpop.f32.mrb[21].mxu0  ;;  %1310 = vrot.lane.b32.xlu0 %v1144_v51, %s4626_s26  ;;  %1216 = vrot.lane.b32.xlu1 %v4930_v50, %s4625_s25  ;;  %v812_v33 = vshrl.u32 %v4972_v42, 16  ;;  %v5007_v47 = vpop.f32.mrb[21].mxu1 }
 0x103   :  { %v6757_v62 = vshll.u32 %v4978_v46, 16  ;;  %v478_v0 = vadd.f32 %v4806_v35, %v477_v59  ;;  %v4211_v7 = vpop.f32.mrb[22].mxu0  ;;  %v805_v38 = vshrl.u32 %v4978_v46, 16  ;;  %v585_v59 = vadd.f32 %v4928_v48, %v4806_v35 }
 0x104   :  { %v674_v8 = vmax.f32 %v486_v55, 0.0  ;;  %v489_v12 = vadd.f32 %v4211_v7, %v4806_v35  ;;  %v480_v14 = vpop.f32.mrb[23].mxu0  ;;  %v1057_v18 = vrot.slane %v6756_v52, 1  ;;  %v5015_v7 = vpop.f32.mrb[22].mxu1 }
 0x105   :  { %v672_v20 = vmax.f32 %v478_v0, 0.0  ;;  %v481_v23 = vadd.f32 %v4806_v35, %v480_v14  ;;  %v1055_v24 = vrot.slane %v6757_v62, 1  ;;  %v577_v0 = vadd.f32 %v4806_v35, %v4934_v56  ;;  %v5021_v44 = vpop.f32.mrb[23].mxu1 }
 0x106   :  { %v675_v28 = vmax.f32 %v489_v12, 0.0  ;;  %1218 = vrot.lane.b32.xlu0 %v4978_v46, %s4625_s25  ;;  %1312 = vrot.lane.b32.xlu1 %v1145_v16, %s4626_s26  ;;  %v1058_v60 = vor.u32 %v1057_v18, %v812_v33 }
 0x107   :  { %v673_v51 = vmax.f32 %v481_v23, 0.0  ;;  %v1056_v55 = vor.u32 %v1055_v24, %v805_v38  ;;  %v699_v24 = vmax.f32 %v585_v59, 0.0  ;;  %v697_v18 = vmax.f32 %v577_v0, 0.0 }
 0x108   :  { %v5017_v12 = vpack.c.bf16 %v675_v28, %v674_v8  ;;  %v696_v8 = vmax.f32 %v574_v43, 0.0 }
 0x109   :  { %v5023_v14 = vpack.c.bf16 %v673_v51, %v672_v20  ;;  %v4214_v16 = vpop.f32.mrb[24].mxu0  ;;  %v1146_v23 = vsel %vm4844_vm4, %v1056_v55, 0  ;;  %v5034_v17 = vpack.c.bf16 %v699_v24, %v698_v37  ;;  %v5045_v37 = vpop.f32.mrb[24].mxu1 }
 0x10a   :  { %v6752_v48 = vshll.u32 %v5017_v12, 16  ;;  %v502_v56 = vadd.f32 %v4214_v16, %v4806_v35  ;;  %v493_v13 = vpop.f32.mrb[25].mxu0  ;;  %1314 = vrot.lane.b32.xlu0 %v1146_v23, %s4626_s26  ;;  %1220 = vrot.lane.b32.xlu1 %v4972_v42, %s4625_s25  ;;  %v1147_v16 = vsel %vm4844_vm4, %v1058_v60, 0  ;;  %v826_v60 = vshrl.u32 %v5017_v12, 16 }
 0x10b   :  { %v6755_v20 = vshll.u32 %v5023_v14, 16  ;;  %v494_v28 = vadd.f32 %v4806_v35, %v493_v13  ;;  %v4215_v51 = vpop.f32.mrb[26].mxu0  ;;  %v819_v0 = vshrl.u32 %v5023_v14, 16 }
 0x10c   :  { %v678_v55 = vmax.f32 %v502_v56, 0.0  ;;  %v505_v59 = vadd.f32 %v4215_v51, %v4806_v35  ;;  %v496_v40 = vpop.f32.mrb[27].mxu0  ;;  %v1061_v23 = vrot.slane %v6752_v48, 1  ;;  %v5051_v56 = vpack.c.bf16 %v697_v18, %v696_v8 }
 0x10d   :  { %v676_v36 = vmax.f32 %v494_v28, 0.0  ;;  %v497_v43 = vadd.f32 %v4806_v35, %v496_v40  ;;  %v1059_v13 = vrot.slane %v6755_v20, 1  ;;  %v5053_v28 = vpop.f32.mrb[25].mxu1 }
 0x10e   :  { %v679_v24 = vmax.f32 %v505_v59, 0.0  ;;  %1222 = vrot.lane.b32.xlu0 %v5023_v14, %s4625_s25  ;;  %1316 = vrot.lane.b32.xlu1 %v1147_v16, %s4626_s26  ;;  %v5057_v34 = vpop.f32.mrb[26].mxu1  ;;  %v1062_v59 = vor.u32 %v1061_v23, %v826_v60 }
 0x10f   :  { %v677_v40 = vmax.f32 %v497_v43, 0.0  ;;  %v1060_v51 = vor.u32 %v1059_v13, %v819_v0  ;;  %v5063_v49 = vpop.f32.mrb[27].mxu1 }
 0x110   :  { %v5059_v41 = vpack.c.bf16 %v679_v24, %v678_v55  ;;  %v598_v24 = vadd.f32 %v4960_v27, %v4806_v35 }
 0x111   :  { %v5065_v16 = vpack.c.bf16 %v677_v40, %v676_v36  ;;  %v4218_v63 = vpop.f32.mrb[28].mxu0  ;;  %v1148_v8 = vsel %vm4844_vm4, %v1060_v51, 0  ;;  %v5087_v48 = vpop.f32.mrb[28].mxu1 }
 0x112   :  { %v6753_v18 = vshll.u32 %v5059_v41, 16  ;;  %v518_v43 = vadd.f32 %v4218_v63, %v4806_v35  ;;  %v509_v13 = vpop.f32.mrb[29].mxu0  ;;  %1318 = vrot.lane.b32.xlu0 %v1148_v8, %s4626_s26  ;;  %1224 = vrot.lane.b32.xlu1 %v5017_v12, %s4625_s25  ;;  %v1149_v63 = vsel %vm4844_vm4, %v1062_v59, 0  ;;  %v840_v59 = vshrl.u32 %v5059_v41, 16 }
 0x113   :  { %v6754_v55 = vshll.u32 %v5065_v16, 16  ;;  %v510_v23 = vadd.f32 %v4806_v35, %v509_v13  ;;  %v4219_v36 = vpop.f32.mrb[30].mxu0  ;;  %v833_v15 = vshrl.u32 %v5065_v16, 16 }
 0x114   :  { %v682_v40 = vmax.f32 %v518_v43, 0.0  ;;  %v521_v51 = vadd.f32 %v4219_v36, %v4806_v35  ;;  %v512_v53 = vpop.f32.mrb[31].mxu0  ;;  %v1065_v8 = vrot.slane %v6753_v18, 1  ;;  %v702_v43 = vmax.f32 %v598_v24, 0.0  ;;  %v5093_v36 = vpop.f32.mrb[29].mxu1 }
 0x115   :  { %v680_v6 = vmax.f32 %v510_v23, 0.0  ;;  %v513_v11 = vadd.f32 %v4806_v35, %v512_v53  ;;  %v1063_v13 = vrot.slane %v6754_v55, 1  ;;  %v590_v18 = vadd.f32 %v4806_v35, %v4966_v32  ;;  %v5101_v55 = vpop.f32.mrb[30].mxu1 }
 0x116   :  { %v683_v27 = vmax.f32 %v521_v51, 0.0  ;;  %1226 = vrot.lane.b32.xlu0 %v5065_v16, %s4625_s25  ;;  %1320 = vrot.lane.b32.xlu1 %v1149_v63, %s4626_s26  ;;  %v601_v51 = vadd.f32 %v4970_v39, %v4806_v35  ;;  %v1066_v63 = vor.u32 %v1065_v8, %v840_v59  ;;  %v593_v24 = vadd.f32 %v4806_v35, %v4976_v45 }
 0x117   :  { %v681_v23 = vmax.f32 %v513_v11, 0.0  ;;  %v1064_v53 = vor.u32 %v1063_v13, %v833_v15  ;;  %v5109_v11 = vpop.f32.mrb[31].mxu1  ;;  %v700_v13 = vmax.f32 %v590_v18, 0.0 }
 0x118   :  { %v5103_v20 = vpack.c.bf16 %v683_v27, %v682_v40  ;;  %v703_v62 = vmax.f32 %v601_v51, 0.0  ;;  %v6759_v40 = vshll.u32 %v4852_v22, 16  ;;  %v701_v8 = vmax.f32 %v593_v24, 0.0 }
 0x119   :  { %v5111_v52 = vpack.c.bf16 %v681_v23, %v680_v6  ;;  %v1150_v32 = vsel %vm4844_vm4, %v1064_v53, 0  ;;  %v1151_v18 = vsel %vm4844_vm4, %v1066_v63, 0  ;;  %v614_v24 = vadd.f32 %v4999_v26, %v4806_v35 }
 0x11a   :  { %v6758_v39 = vshll.u32 %v5103_v20, 16  ;;  %1322 = vrot.lane.b32.xlu0 %v1150_v32, %s4626_s26  ;;  %1228 = vrot.lane.b32.xlu1 %v5059_v41, %s4625_s25  ;;  %v5121_v27 = vpack.c.bf16 %v703_v62, %v702_v43  ;;  %v5123_v6 = vpack.c.bf16 %v701_v8, %v700_v13  ;;  %v6763_v32 = vshll.u32 %v4850_v21, 16 }
 0x11b   :  { %v6760_v45 = vshll.u32 %v5111_v52, 16  ;;  %v6771_v23 = vshrl.u32 %v5111_v52, 16  ;;  %v1071_v62 = vrot.slane %v6759_v40, 1  ;;  %v6766_v63 = vshrl.u32 %v5103_v20, 16 }
 0x11c   :  { %v1069_v51 = vrot.slane %v6758_v39, 1  ;;  %v606_v13 = vadd.f32 %v4806_v35, %v5007_v47  ;;  %v6764_v8 = vshrl.u32 %v4852_v22, 16  ;;  %v617_v39 = vadd.f32 %v5015_v7, %v4806_v35 }
 0x11d   :  { %v1067_v53 = vrot.slane %v6760_v45, 1  ;;  %v706_v45 = vmax.f32 %v614_v24, 0.0  ;;  %v1073_v26 = vrot.slane %v6763_v32, 1 }
 0x11e   :  { %1230 = vrot.lane.b32.xlu0 %v5111_v52, %s4625_s25  ;;  %1324 = vrot.lane.b32.xlu1 %v1151_v18, %s4626_s26  ;;  %v609_v18 = vadd.f32 %v4806_v35, %v5021_v44  ;;  %v704_v61 = vmax.f32 %v606_v13, 0.0  ;;  %v707_v47 = vmax.f32 %v617_v39, 0.0  ;;  %v6767_v44 = vshll.u32 %v4892_v4, 16 }
 0x11f   :  { %v1068_v43 = vor.u32 %v1067_v53, %v6771_v23  ;;  %v1070_v53 = vor.u32 %v1069_v51, %v6766_v63  ;;  %v630_v51 = vadd.f32 %v5045_v37, %v4806_v35  ;;  %v622_v39 = vadd.f32 %v4806_v35, %v5053_v28 }
 0x120   :  { %v705_v7 = vmax.f32 %v609_v18, 0.0  ;;  %v5166_v24 = vpack.c.bf16 %v707_v47, %v706_v45  ;;  %v5174_v18 = vrot.slane %v798_v30, 7  ;;  %v633_v37 = vadd.f32 %v5057_v34, %v4806_v35 }
 0x121   :  { %v1152_v40 = vsel %vm4844_vm4, %v1068_v43, 0  ;;  %v1072_v43 = vor.u32 %v1071_v62, %v6764_v8  ;;  %v1153_v32 = vsel %vm4844_vm4, %v1070_v53, 0  ;;  %v710_v62 = vmax.f32 %v630_v51, 0.0 }
 0x122   :  { %1326 = vrot.lane.b32.xlu0 %v1152_v40, %s4626_s26  ;;  %1232 = vrot.lane.b32.xlu1 %v5103_v20, %s4625_s25  ;;  %v868_v40 = vshrl.u32 %v4850_v21, 16  ;;  %v5168_v13 = vpack.c.bf16 %v705_v7, %v704_v61  ;;  %v5182_v45 = vrot.slane %v791_v25, 7  ;;  %v6768_v61 = vshll.u32 %v4945_v1, 16 }
 0x123   :  { %v6770_v30 = vshll.u32 %v4949_v10, 16  ;;  %v1154_v53 = vsel %vm4844_vm4, %v1072_v43, 0  ;;  %v708_v47 = vmax.f32 %v622_v39, 0.0  ;;  %v711_v7 = vmax.f32 %v633_v37, 0.0 }
 0x124   :  { %v1074_v28 = vor.u32 %v1073_v26, %v868_v40  ;;  %v625_v34 = vadd.f32 %v4806_v35, %v5063_v49  ;;  %v5195_v25 = vrot.slane %v812_v33, 7  ;;  %v5197_v51 = vrot.slane %v868_v40, 7 }
 0x125   :  { %v646_v26 = vadd.f32 %v5087_v48, %v4806_v35  ;;  %v875_v8 = vshrl.u32 %v4894_v5, 16  ;;  %v5204_v43 = vpack.c.bf16 %v711_v7, %v710_v62  ;;  %v638_v49 = vadd.f32 %v4806_v35, %v5093_v36 }
 0x126   :  { %1234 = vrot.lane.b32.xlu0 %v4852_v22, %s4625_s25  ;;  %1328 = vrot.lane.b32.xlu1 %v1153_v32, %s4626_s26  ;;  %v1075_v32 = vrot.slane %v6765_v2, 1  ;;  %v709_v39 = vmax.f32 %v625_v34, 0.0  ;;  %v5210_v33 = vrot.slane %v805_v38, 7  ;;  %v1155_v48 = vsel %vm4844_vm4, %v1074_v28, 0 }
 0x127   :  { %v6769_v40 = vshll.u32 %v5051_v56, 16  ;;  %v1077_v62 = vrot.slane %v6767_v44, 1  ;;  %v6772_v37 = vshll.u32 %v5034_v17, 16  ;;  %v714_v7 = vmax.f32 %v646_v26, 0.0 }
 0x128   :  { %v5221_v36 = vpack.c.bf16 %v709_v39, %v708_v47  ;;  %v649_v38 = vadd.f32 %v5101_v55, %v4806_v35  ;;  %v882_v34 = vshrl.u32 %v4892_v4, 16  ;;  %v712_v2 = vmax.f32 %v638_v49, 0.0 }
 0x129   :  { %v641_v28 = vadd.f32 %v4806_v35, %v5109_v11  ;;  %v5228_v63 = vrot.slane %v875_v8, 7  ;;  %v1079_v44 = vrot.slane %v6770_v30, 1  ;;  %v1081_v47 = vrot.slane %v6768_v61, 1 }
 0x12a   :  { %1330 = vrot.lane.b32.xlu0 %v1154_v53, %s4626_s26  ;;  %1236 = vrot.lane.b32.xlu1 %v4850_v21, %s4625_s25  ;;  %v1076_v53 = vor.u32 %v1075_v32, %v875_v8  ;;  %v715_v39 = vmax.f32 %v649_v38, 0.0  ;;  %v5236_v26 = vrot.slane %v826_v60, 7  ;;  %v1078_v55 = vor.u32 %v1077_v62, %v882_v34 }
 0x12b   :  { %v1083_v35 = vrot.slane %v6769_v40, 1  ;;  %v713_v11 = vmax.f32 %v641_v28, 0.0  ;;  %v889_v8 = vshrl.u32 %v4949_v10, 16  ;;  %v896_v32 = vshrl.u32 %v4945_v1, 16 }
 0x12c   :  { %v1085_v49 = vrot.slane %v6772_v37, 1  ;;  %v5247_v38 = vpack.c.bf16 %v715_v39, %v714_v7  ;;  %v821_v60 = vrot.slane %v819_v0, 7  ;;  %v903_v62 = vshrl.u32 %v5051_v56, 16 }
 0x12d   :  { %v5254_v61 = vpack.c.bf16 %v713_v11, %v712_v2  ;;  %v5256_v28 = vrot.slane %v882_v34, 7  ;;  %v1080_v40 = vor.u32 %v1079_v44, %v889_v8  ;;  %v1082_v30 = vor.u32 %v1081_v47, %v896_v32 }
 0x12e   :  { %1238 = vrot.lane.b32.xlu0 %v4894_v5, %s4625_s25  ;;  %1332 = vrot.lane.b32.xlu1 %v1155_v48, %s4626_s26  ;;  %v1156_v48 = vsel %vm4844_vm4, %v1076_v53, 0  ;;  %v910_v23 = vshrl.u32 %v5034_v17, 16  ;;  %v835_v7 = vrot.slane %v833_v15, 7  ;;  %v842_v39 = vrot.slane %v840_v59, 7 }
 0x12f   :  { %v1157_v2 = vsel %vm4844_vm4, %v1078_v55, 0  ;;  %v5268_v0 = vor.u32 %v1083_v35, %v903_v62  ;;  %v6778_v44 = vshll.u32 %v5121_v27, 16  ;;  %v6775_v53 = vshll.u32 %v5123_v6, 16 }
 0x130   :  { %v891_v34 = vrot.slane %v889_v8, 7  ;;  %v5272_v47 = vor.u32 %v1085_v49, %v910_v23  ;;  %v6786_v15 = vshrl.u32 %v5111_v52, 16  ;;  %v6787_v11 = vshrl.u32 %v5103_v20, 16 }
 0x131   :  { %v1158_v55 = vsel %vm4844_vm4, %v1080_v40, 0  ;;  %v898_v35 = vrot.slane %v896_v32, 7  ;;  %v1159_v8 = vsel %vm4844_vm4, %v1082_v30, 0  ;;  %v905_v49 = vrot.slane %v903_v62, 7 }
 0x132   :  { %1334 = vrot.lane.b32.xlu0 %v1156_v48, %s4626_s26  ;;  %1240 = vrot.lane.b32.xlu1 %v4892_v4, %s4625_s25  ;;  %v849_v59 = vrot.slane %v6786_v15, 7  ;;  %v856_v48 = vrot.slane %v6787_v11, 7  ;;  %v1160_v22 = vsel %vm4844_vm4, %v5268_v0, 0  ;;  %v912_v37 = vrot.slane %v910_v23, 7 }
 0x133   :  { %v1087_v30 = vrot.slane %v6775_v53, 1  ;;  %v5299_v32 = vrot.slane %v6778_v44, 1  ;;  %v6788_v62 = vshll.u32 %v4936_v57, 16  ;;  %v6789_v15 = vshrl.u32 %v5123_v6, 16 }
 0x134   :  { %v6790_v23 = vshrl.u32 %v5121_v27, 16  ;;  %v931_v40 = vshrl.u32 %v5168_v13, 16  ;;  %v6791_v53 = vshll.u32 %v4930_v50, 16  ;;  %v938_v9 = vshrl.u32 %v5166_v24, 16 }
 0x135   :  { %v919_v0 = vrot.slane %v6789_v15, 7  ;;  %v945_v57 = vshrl.u32 %v5221_v36, 16 }
 0x136   :  { %1242 = vrot.lane.b32.xlu0 %v4949_v10, %s4625_s25  ;;  %1336 = vrot.lane.b32.xlu1 %v1157_v2, %s4626_s26  ;;  %v5304_v2 = vor.u32 %v6788_v62, %v5182_v45  ;;  %v926_v11 = vrot.slane %v6790_v23, 7  ;;  %v5314_v3 = vor.u32 %v6791_v53, %v5174_v18  ;;  %v6792_v45 = vshll.u32 %v4978_v46, 16 }
 0x137   :  { %v6793_v53 = vshll.u32 %v4972_v42, 16  ;;  %v6794_v23 = vshll.u32 %v5023_v14, 16  ;;  %v966_v46 = vshrl.u32 %v5247_v38, 16  ;;  %v6797_v18 = vshll.u32 %v5059_v41, 16 }
 0x138   :  { %v5322_v15 = vor.u32 %v6792_v45, %v5210_v33  ;;  %v6795_v33 = vshll.u32 %v5017_v12, 16  ;;  %v6796_v45 = vshll.u32 %v5065_v16, 16  ;;  %v933_v14 = vrot.slane %v931_v40, 7 }
 0x139   :  { %v5332_v62 = vor.u32 %v6793_v53, %v5195_v25  ;;  %v5336_v44 = vor.u32 %v6794_v23, %v821_v60  ;;  %v5350_v42 = vor.u32 %v6797_v18, %v842_v39  ;;  %v948_v25 = vshll.u32 %v5221_v36, 16 }
 0x13a   :  { %1338 = vrot.lane.b32.xlu0 %v1158_v55, %s4626_s26  ;;  %1244 = vrot.lane.b32.xlu1 %v4945_v1, %s4625_s25  ;;  %v5342_v55 = vor.u32 %v6795_v33, %v5236_v26  ;;  %v5346_v50 = vor.u32 %v6796_v45, %v835_v7  ;;  %v6798_v60 = vshll.u32 %v5111_v52, 16  ;;  %v6799_v12 = vshll.u32 %v5103_v20, 16 }
 0x13b   :  { %v969_v16 = vshll.u32 %v5247_v38, 16  ;;  %v962_v7 = vshll.u32 %v5254_v61, 16  ;;  %v940_v41 = vrot.slane %v938_v9, 7  ;;  %v947_v39 = vrot.slane %v945_v57, 7 }
 0x13c   :  { %v5357_v53 = vor.u32 %v6798_v60, %v849_v59  ;;  %v5361_v26 = vor.u32 %v6799_v12, %v856_v48  ;;  %v6800_v52 = vshrl.u32 %v5204_v43, 16  ;;  %v6801_v59 = vshrl.u32 %v5254_v61, 16 }
 0x13d   :  { %v6802_v18 = vshll.u32 %v4850_v21, 16  ;;  %v6803_v33 = vshll.u32 %v4894_v5, 16  ;;  %v968_v60 = vrot.slane %v966_v46, 7  ;;  %v6806_v12 = vshll.u32 %v4892_v4, 16 }
 0x13e   :  { %1246 = vrot.lane.b32.xlu0 %v5051_v56, %s4625_s25  ;;  %1340 = vrot.lane.b32.xlu1 %v1159_v8, %s4626_s26  ;;  %v954_v20 = vrot.slane %v6800_v52, 7  ;;  %v961_v48 = vrot.slane %v6801_v59, 7  ;;  %v6808_v5 = vshll.u32 %v4945_v1, 16  ;;  %v6809_v4 = vshll.u32 %v5051_v56, 16 }
 0x13f   :  { %v5379_v23 = vor.u32 %v6802_v18, %v5197_v51  ;;  %v5384_v45 = vor.u32 %v6803_v33, %v5228_v63  ;;  %v5397_v21 = vor.u32 %v6806_v12, %v5256_v28  ;;  %v6807_v51 = vshll.u32 %v4949_v10, 16 }
 0x140   :  { %v5405_v63 = vor.u32 %v6808_v5, %v898_v35  ;;  %v5415_v28 = vor.u32 %v6809_v4, %v905_v49  ;;  %v6810_v10 = vshll.u32 %v5034_v17, 16  ;;  %v6811_v56 = vshll.u32 %v5123_v6, 16 }
 0x141   :  { %v5401_v52 = vor.u32 %v6807_v51, %v891_v34  ;;  %v1024_v59 = vsel %vm5388_vm7, 0, %v5379_v23  ;;  %v1025_v18 = vsel %vm5388_vm7, 0, %v5384_v45  ;;  %v1026_v1 = vsel %vm5388_vm7, 0, %v5397_v21 }
 0x142   :  { %v5419_v34 = vor.u32 %v6810_v10, %v912_v37  ;;  %v1028_v33 = vsel %vm5388_vm7, 0, %v5405_v63  ;;  %v5432_v49 = vor.u32 %v6811_v56, %v919_v0  ;;  %1342 = vrot.lane.b32.xlu0 %v1160_v22, %s4626_s26  ;;  %1248 = vrot.lane.b32.xlu1 %v5034_v17, %s4625_s25  ;;  %v6812_v51 = vshll.u32 %v5121_v27, 16 }
 0x143   :  { %v1027_v35 = vsel %vm5388_vm7, 0, %v5401_v52  ;;  %v6813_v0 = vshll.u32 %v5168_v13, 16  ;;  %v6814_v17 = vshll.u32 %v5166_v24, 16  ;;  %v5458_v56 = vor.u32 %v948_v25, %v947_v39 }
 0x144   :  { %v5445_v5 = vor.u32 %v6812_v51, %v926_v11  ;;  %v1031_v22 = vsel %vm5388_vm7, 0, %v5432_v49  ;;  %v6815_v12 = vshll.u32 %v5204_v43, 16  ;;  %v5472_v51 = vor.u32 %v962_v7, %v961_v48 }
 0x145   :  { %v5449_v4 = vor.u32 %v6813_v0, %v933_v14  ;;  %v5456_v10 = vor.u32 %v6814_v17, %v940_v41  ;;  %v5476_v41 = vor.u32 %v969_v16, %v968_v60  ;;  %v6816_v39 = vshrl.u32 %v5123_v6, 16 }
 0x146   :  { %v5462_v37 = vor.u32 %v6815_v12, %v954_v20  ;;  %v1032_v11 = vsel %vm5388_vm7, 0, %v5445_v5  ;;  %1250 = vrot.lane.b32.xlu0 %v5123_v6, %s4625_s25  ;;  %v1037_v60 = vsel %vm5388_vm7, 0, %v5472_v51  ;;  %v6818_v48 = vshrl.u32 %v5121_v27, 16 }
 0x147   :  { %v1033_v14 = vsel %vm5388_vm7, 0, %v5449_v4  ;;  %v1088_v20 = vor.u32 %v1087_v30, %v6816_v39  ;;  %v6817_v30 = vsel %vm4844_vm4, %v5272_v47, 0  ;;  %v1091_v12 = vrot.slane %v6813_v0, 1 }
 0x148   :  { %1344 = vrot.lane.b32.xlu1 %v6817_v30, %s4626_s26  ;;  %v1090_v6 = vor.u32 %v5299_v32, %v6818_v48  ;;  %v1095_v0 = vrot.slane %v948_v25, 1  ;;  %v6823_v25 = vshll.u32 %v4822_v58, 16 }
 0x149   :  { %v1162_v39 = vsel %vm4844_vm4, %v1088_v20, 0  ;;  %v1092_v30 = vor.u32 %v1091_v12, %v931_v40  ;;  %v6819_v20 = vmov %v6814_v17  ;;  %v6820_v40 = vshrl.u32 %v4822_v58, 16 }
 0x14a   :  { %1346 = vrot.lane.b32.xlu0 %v1162_v39, %s4626_s26  ;;  %v1163_v47 = vsel %vm4844_vm4, %v1090_v6, 0  ;;  %v1093_v17 = vrot.slane %v6819_v20, 1  ;;  %v1096_v39 = vor.u32 %v1095_v0, %v945_v57  ;;  %v6821_v6 = vshll.u32 %v5204_v43, 16 }
 0x14b   :  { %v1164_v32 = vsel %vm4844_vm4, %v1092_v30, 0  ;;  %v751_v12 = vrot.slane %v6820_v40, 7  ;;  %v6824_v57 = vshrl.u32 %v5204_v43, 16  ;;  %v6825_v58 = vshrl.u32 %v4862_v31, 16 }
 0x14c   :  { %1252 = vrot.lane.b32.xlu1 %v5121_v27, %s4625_s25  ;;  %v1094_v27 = vor.u32 %v1093_v17, %v938_v9  ;;  %v6822_v9 = vshrl.u32 %v4817_v54, 16  ;;  %v1166_v30 = vsel %vm4844_vm4, %v1096_v39, 0  ;;  %v6826_v40 = vshll.u32 %v4817_v54, 16 }
 0x14d   :  { %v754_v17 = vor.u32 %v6823_v25, %v751_v12  ;;  %v6828_v54 = vshrl.u32 %v4860_v29, 16  ;;  %v6829_v25 = vshll.u32 %v4862_v31, 16  ;;  %v4592_v31 = vld [vmem:[%s6734_s3 + $0x10] sm:$0x3f]  }
 0x14e   :  { %1254 = vrot.lane.b32.xlu0 %v5168_v13, %s4625_s25  ;;  %v1165_v13 = vsel %vm4844_vm4, %v1094_v27, 0 }
 0x14f   :  { %v1007_v0 = vsel %vm5388_vm7, 0, %v754_v17 }
 0x150   :  { %1348 = vrot.lane.b32.xlu1 %v1163_v47, %s4626_s26  ;;  %v1097_v47 = vrot.slane %v6821_v6, 1  ;;  %v6827_v6 = vshrl.u32 %v5254_v61, 16 }
 0x152   :  { %1350 = vrot.lane.b32.xlu0 %v1164_v32, %s4626_s26  ;;  %v1098_v20 = vor.u32 %v1097_v47, %v6824_v57  ;;  %v1099_v32 = vrot.slane %v962_v7, 1 }
 0x154   :  { %1256 = vrot.lane.b32.xlu1 %v5166_v24, %s4625_s25  ;;  %v758_v24 = vrot.slane %v6822_v9, 7  ;;  %v1100_v47 = vor.u32 %v1099_v32, %v6827_v6  ;;  %v1101_v9 = vrot.slane %v969_v16, 1  ;;  %v2194_v32 = vsel %vm1596_vm1, %v4592_v31, 0 }
 0x155   :  { %v1203_v48 = vpop.permute.xlu0 %1202 }
 0x156   :  { %1258 = vrot.lane.b32.xlu0 %v5221_v36, %s4625_s25  ;;  %v765_v36 = vrot.slane %v6825_v58, 7  ;;  %v761_v12 = vor.u32 %v6826_v40, %v758_v24  ;;  %v1102_v58 = vor.u32 %v1101_v9, %v966_v46 }
 0x158   :  { %1352 = vrot.lane.b32.xlu1 %v1165_v13, %s4626_s26  ;;  %v1365_v13 = vsel %vm1362_vm8, %v1007_v0, %v1203_v48  ;;  %v772_v48 = vrot.slane %v6828_v54, 7  ;;  %v1008_v24 = vsel %vm5388_vm7, 0, %v761_v12  ;;  %v768_v17 = vor.u32 %v6829_v25, %v765_v36 }
 0x159   :  { %v1205_v27 = vpop.permute.xlu0 %1204  ;;  %v6832_v12 = vshll.u32 %v4860_v29, 16  ;;  %v1169_v6 = vsel %vm4844_vm4, %v1102_v58, 0 }
 0x15a   :  { %1354 = vrot.lane.b32.xlu0 %v1166_v30, %s4626_s26  ;;  %v1368_v16 = vsel %vm1362_vm8, %v1008_v24, %v1205_v27  ;;  %v6830_v27 = vld [vmem:[#allocation4_spill] sm:$0xff]  ;;  %v1009_v40 = vsel %vm5388_vm7, 0, %v768_v17 }
 0x15b   :  { %v6831_v36 = vshrl.u32 %v6830_v27, 16  ;;  %v775_v46 = vor.u32 %v6832_v12, %v772_v48  ;;  %v6835_v48 = vshll.u32 %v6830_v27, 16 }
 0x15c   :  { %1260 = vrot.lane.b32.xlu1 %v5204_v43, %s4625_s25  ;;  %v1299_v39 = vpop.permute.xlu1 %1298  ;;  %v1167_v43 = vsel %vm4844_vm4, %v1098_v20, 0  ;;  %v1168_v20 = vsel %vm4844_vm4, %v1100_v47, 0  ;;  %v6833_v47 = vld [vmem:[#allocation3_spill] sm:$0xff] }
 0x15d   :  { %v5560_v7 = vsel %vm1459_vm9, %v1365_v13, %v1299_v39  ;;  %v779_v0 = vrot.slane %v6831_v36, 7  ;;  %v6834_v9 = vshrl.u32 %v6833_v47, 16  ;;  %v1010_v54 = vsel %vm5388_vm7, 0, %v775_v46 }
 0x15e   :  { %1262 = vrot.lane.b32.xlu0 %v5254_v61, %s4625_s25  ;;  %4254 = vmatprep.mubr.msk.bf16.mxu1 %vm1531_vm10, %v5560_v7  ;;  %v1207_v61 = vpop.permute.xlu0 %1206 }
 0x15f   :  { %4320 = vmatprep.mubr.msk.bf16.mxu0 %vm1531_vm10, %v5560_v7  ;;  %v1371_v13 = vsel %vm1362_vm8, %v1009_v40, %v1207_v61  ;;  %v786_v29 = vrot.slane %v6834_v9, 7  ;;  %v782_v24 = vor.u32 %v6835_v48, %v779_v0 }
 0x160   :  { %1356 = vrot.lane.b32.xlu1 %v1167_v43, %s4626_s26  ;;  %v1301_v30 = vpop.permute.xlu1 %1300 }
 0x161   :  { %v5583_v57 = vsel %vm1459_vm9, %v1368_v16, %v1301_v30  ;;  %v1011_v61 = vsel %vm5388_vm7, 0, %v782_v24  ;;  %v6836_v30 = vshll.u32 %v6833_v47, 16  ;;  %v1015_v24 = vsel %vm5388_vm7, 0, %v5322_v15 }
 0x162   :  { %1358 = vrot.lane.b32.xlu0 %v1168_v20, %s4626_s26  ;;  %4255 = vmatmul.mubr.msk.bf16.vlgmr.msra.gmra.mrb[32].mxu1 %vm1531_vm10, %v5583_v57  ;;  %v1016_v15 = vsel %vm5388_vm7, 0, %v5332_v62 }
 0x163   :  { %4321 = vmatmul.mubr.msk.bf16.vlgmr.msra.gmra.mrb[32].mxu0 %vm1531_vm10, %v5583_v57  ;;  %4385 = vmatpush3.bf16.msra.mxu1 %v2194_v32  ;;  %v789_v20 = vor.u32 %v6836_v30, %v786_v29 }
 0x164   :  { %1264 = vrot.lane.b32.xlu1 %v5247_v38, %s4625_s25  ;;  %v1303_v39 = vpop.permute.xlu0 %1302  ;;  %v1209_v38 = vpop.permute.xlu1 %1208 }
 0x165   :  { %v5608_v43 = vsel %vm1459_vm9, %v1371_v13, %v1303_v39  ;;  %v1374_v19 = vsel %vm1362_vm8, %v1010_v54, %v1209_v38  ;;  %v1012_v36 = vsel %vm5388_vm7, 0, %v789_v20  ;;  %v1013_v13 = vsel %vm5388_vm7, 0, %v5304_v2 }
 0x166   :  { %4258 = vmatprep.mubr.msk.bf16.mxu1 %vm1531_vm10, %v5608_v43  ;;  %4324 = vmatprep.mubr.msk.bf16.mxu0 %vm1531_vm10, %v5608_v43  ;;  %v1014_v2 = vsel %vm5388_vm7, 0, %v5314_v3 }
 0x168   :  { %1360 = vrot.lane.b32.xlu1 %v1169_v6, %s4626_s26  ;;  %v1211_v25 = vpop.permute.xlu0 %1210  ;;  %v1305_v17 = vpop.permute.xlu1 %1304 }
 0x169   :  { %v5625_v16 = vsel %vm1459_vm9, %v1374_v19, %v1305_v17  ;;  %v1377_v31 = vsel %vm1362_vm8, %v1011_v61, %v1211_v25 }
 0x16a   :  { %4259 = vmatmul.mubr.msk.bf16.gmra.mrb[36].mxu1 %vm1531_vm10, %v5625_v16 }
 0x16b   :  { %4325 = vmatmul.mubr.msk.bf16.gmra.mrb[36].mxu0 %vm1531_vm10, %v5625_v16 }
 0x16c   :  { %v1307_v32 = vpop.permute.xlu0 %1306  ;;  %v1213_v58 = vpop.permute.xlu1 %1212 }
 0x16d   :  { %v5637_v27 = vsel %vm1459_vm9, %v1377_v31, %v1307_v32  ;;  %v1380_v0 = vsel %vm1362_vm8, %v1012_v36, %v1213_v58  ;;  %v1017_v32 = vsel %vm5388_vm7, 0, %v5336_v44  ;;  %v1018_v44 = vsel %vm5388_vm7, 0, %v5342_v55 }
 0x16e   :  { %4262 = vmatprep.mubr.msk.bf16.mxu1 %vm1531_vm10, %v5637_v27  ;;  %4328 = vmatprep.mubr.msk.bf16.mxu0 %vm1531_vm10, %v5637_v27 }
 0x170   :  { %v1215_v40 = vpop.permute.xlu0 %1214  ;;  %v1309_v12 = vpop.permute.xlu1 %1308 }
 0x171   :  { %v5647_v46 = vsel %vm1459_vm9, %v1380_v0, %v1309_v12  ;;  %v1383_v39 = vsel %vm1362_vm8, %v1013_v13, %v1215_v40 }
 0x172   :  { %4263 = vmatmul.mubr.msk.bf16.gmra.mrb[40].mxu1 %vm1531_vm10, %v5647_v46 }
 0x173   :  { %4329 = vmatmul.mubr.msk.bf16.gmra.mrb[40].mxu0 %vm1531_vm10, %v5647_v46 }
 0x174   :  { %v1311_v38 = vpop.permute.xlu0 %1310  ;;  %v1217_v6 = vpop.permute.xlu1 %1216 }
 0x175   :  { %v5658_v47 = vsel %vm1459_vm9, %v1383_v39, %v1311_v38  ;;  %v1386_v9 = vsel %vm1362_vm8, %v1014_v2, %v1217_v6  ;;  %v1019_v38 = vsel %vm5388_vm7, 0, %v5346_v50  ;;  %v1020_v50 = vsel %vm5388_vm7, 0, %v5350_v42 }
 0x176   :  { %4266 = vmatprep.mubr.msk.bf16.mxu1 %vm1531_vm10, %v5658_v47  ;;  %4332 = vmatprep.mubr.msk.bf16.mxu0 %vm1531_vm10, %v5658_v47 }
 0x178   :  { %v1219_v29 = vpop.permute.xlu0 %1218  ;;  %v1313_v54 = vpop.permute.xlu1 %1312 }
 0x179   :  { %v5669_v48 = vsel %vm1459_vm9, %v1386_v9, %v1313_v54  ;;  %v1389_v19 = vsel %vm1362_vm8, %v1015_v24, %v1219_v29 }
 0x17a   :  { %4267 = vmatmul.mubr.msk.bf16.gmra.mrb[44].mxu1 %vm1531_vm10, %v5669_v48 }
 0x17b   :  { %4333 = vmatmul.mubr.msk.bf16.gmra.mrb[44].mxu0 %vm1531_vm10, %v5669_v48 }
 0x17c   :  { %v1315_v3 = vpop.permute.xlu0 %1314  ;;  %v1221_v25 = vpop.permute.xlu1 %1220 }
 0x17d   :  { %v5680_v17 = vsel %vm1459_vm9, %v1389_v19, %v1315_v3  ;;  %v1392_v61 = vsel %vm1362_vm8, %v1016_v15, %v1221_v25  ;;  %v6837_v3 = vld [vmem:[#allocation2_spill] sm:$0xff] }
 0x17e   :  { %4270 = vmatprep.mubr.msk.bf16.mxu1 %vm1531_vm10, %v5680_v17  ;;  %4336 = vmatprep.mubr.msk.bf16.mxu0 %vm1531_vm10, %v5680_v17  ;;  %v6838_v25 = vshrl.u32 %v6837_v3, 16 }
 0x180   :  { %v1223_v30 = vpop.permute.xlu0 %1222  ;;  %v1317_v20 = vpop.permute.xlu1 %1316  ;;  %v863_v15 = vrot.slane %v6838_v25, 7 }
 0x181   :  { %v5691_v31 = vsel %vm1459_vm9, %v1392_v61, %v1317_v20  ;;  %v1395_v58 = vsel %vm1362_vm8, %v1017_v32, %v1223_v30  ;;  %v1021_v61 = vsel %vm5388_vm7, 0, %v5357_v53  ;;  %v1022_v53 = vsel %vm5388_vm7, 0, %v5361_v26 }
 0x182   :  { %4271 = vmatmul.mubr.msk.bf16.gmra.mrb[48].mxu1 %vm1531_vm10, %v5691_v31 }
 0x183   :  { %4337 = vmatmul.mubr.msk.bf16.gmra.mrb[48].mxu0 %vm1531_vm10, %v5691_v31 }
 0x184   :  { %v1319_v62 = vpop.permute.xlu0 %1318  ;;  %v1225_v36 = vpop.permute.xlu1 %1224 }
 0x185   :  { %v5702_v0 = vsel %vm1459_vm9, %v1395_v58, %v1319_v62  ;;  %v1398_v40 = vsel %vm1362_vm8, %v1018_v44, %v1225_v36  ;;  %v6839_v58 = vshll.u32 %v6837_v3, 16 }
 0x186   :  { %4274 = vmatprep.mubr.msk.bf16.mxu1 %vm1531_vm10, %v5702_v0  ;;  %4340 = vmatprep.mubr.msk.bf16.mxu0 %vm1531_vm10, %v5702_v0 }
 0x187   :  { %v866_v62 = vor.u32 %v6839_v58, %v863_v15 }
 0x188   :  { %v1227_v12 = vpop.permute.xlu0 %1226  ;;  %v1321_v13 = vpop.permute.xlu1 %1320 }
 0x189   :  { %v5713_v39 = vsel %vm1459_vm9, %v1398_v40, %v1321_v13  ;;  %v1401_v6 = vsel %vm1362_vm8, %v1019_v38, %v1227_v12  ;;  %v1023_v13 = vsel %vm5388_vm7, 0, %v866_v62 }
 0x18a   :  { %4275 = vmatmul.mubr.msk.bf16.gmra.mrb[52].mxu1 %vm1531_vm10, %v5713_v39 }
 0x18b   :  { %4341 = vmatmul.mubr.msk.bf16.gmra.mrb[52].mxu0 %vm1531_vm10, %v5713_v39 }
 0x18c   :  { %v1323_v55 = vpop.permute.xlu0 %1322  ;;  %v1229_v2 = vpop.permute.xlu1 %1228 }
 0x18d   :  { %v5724_v9 = vsel %vm1459_vm9, %v1401_v6, %v1323_v55  ;;  %v1404_v29 = vsel %vm1362_vm8, %v1020_v50, %v1229_v2 }
 0x18e   :  { %4278 = vmatprep.mubr.msk.bf16.mxu1 %vm1531_vm10, %v5724_v9  ;;  %4344 = vmatprep.mubr.msk.bf16.mxu0 %vm1531_vm10, %v5724_v9 }
 0x190   :  { %v1231_v54 = vpop.permute.xlu0 %1230  ;;  %v1325_v24 = vpop.permute.xlu1 %1324 }
 0x191   :  { %v5735_v19 = vsel %vm1459_vm9, %v1404_v29, %v1325_v24  ;;  %v1407_v42 = vsel %vm1362_vm8, %v1021_v61, %v1231_v54 }
 0x192   :  { %4279 = vmatmul.mubr.msk.bf16.gmra.mrb[56].mxu1 %vm1531_vm10, %v5735_v19 }
 0x193   :  { %4345 = vmatmul.mubr.msk.bf16.gmra.mrb[56].mxu0 %vm1531_vm10, %v5735_v19 }
 0x194   :  { %v1327_v30 = vpop.permute.xlu0 %1326  ;;  %v1233_v20 = vpop.permute.xlu1 %1232 }
 0x195   :  { %v5748_v32 = vsel %vm1459_vm9, %v1407_v42, %v1327_v30  ;;  %v1410_v36 = vsel %vm1362_vm8, %v1022_v53, %v1233_v20  ;;  %v6840_v53 = vsel %vm5388_vm7, 0, %v5415_v28 }
 0x196   :  { %4282 = vmatprep.mubr.msk.bf16.mxu1 %vm1531_vm10, %v5748_v32  ;;  %4348 = vmatprep.mubr.msk.bf16.mxu0 %vm1531_vm10, %v5748_v32 }
 0x198   :  { %v1235_v44 = vpop.permute.xlu0 %1234  ;;  %v1329_v40 = vpop.permute.xlu1 %1328 }
 0x199   :  { %v5761_v12 = vsel %vm1459_vm9, %v1410_v36, %v1329_v40  ;;  %v1413_v26 = vsel %vm1362_vm8, %v1023_v13, %v1235_v44  ;;  %v6841_v36 = vsel %vm5388_vm7, 0, %v5419_v34 }
 0x19a   :  { %4283 = vmatmul.mubr.msk.bf16.gmra.mrb[60].mxu1 %vm1531_vm10, %v5761_v12 }
 0x19b   :  { %4349 = vmatmul.mubr.msk.bf16.gmra.mrb[60].mxu0 %vm1531_vm10, %v5761_v12 }
 0x19c   :  { %v1331_v38 = vpop.permute.xlu0 %1330  ;;  %v1237_v6 = vpop.permute.xlu1 %1236 }
 0x19d   :  { %v5771_v55 = vsel %vm1459_vm9, %v1413_v26, %v1331_v38  ;;  %v1416_v2 = vsel %vm1362_vm8, %v1024_v59, %v1237_v6 }
 0x19e   :  { %4286 = vmatprep.mubr.msk.bf16.mxu1 %vm1531_vm10, %v5771_v55  ;;  %4352 = vmatprep.mubr.msk.bf16.mxu0 %vm1531_vm10, %v5771_v55 }
 0x1a0   :  { %v1239_v50 = vpop.permute.xlu0 %1238  ;;  %v1333_v29 = vpop.permute.xlu1 %1332 }
 0x1a1   :  { %v5783_v54 = vsel %vm1459_vm9, %v1416_v2, %v1333_v29  ;;  %v1419_v24 = vsel %vm1362_vm8, %v1025_v18, %v1239_v50 }
 0x1a2   :  { %4287 = vmatmul.mubr.msk.bf16.gmra.mrb[64].mxu1 %vm1531_vm10, %v5783_v54 }
 0x1a3   :  { %4353 = vmatmul.mubr.msk.bf16.gmra.mrb[64].mxu0 %vm1531_vm10, %v5783_v54 }
 0x1a4   :  { %v1335_v23 = vpop.permute.xlu0 %1334  ;;  %v1241_v3 = vpop.permute.xlu1 %1240 }
 0x1a5   :  { %v5795_v59 = vsel %vm1459_vm9, %v1419_v24, %v1335_v23  ;;  %v1422_v25 = vsel %vm1362_vm8, %v1026_v1, %v1241_v3  ;;  %v6842_v23 = vsel %vm5388_vm7, 0, %v5456_v10  ;;  %v6843_v10 = vsel %vm5388_vm7, 0, %v5458_v56 }
 0x1a6   :  { %4290 = vmatprep.mubr.msk.bf16.mxu1 %vm1531_vm10, %v5795_v59  ;;  %4356 = vmatprep.mubr.msk.bf16.mxu0 %vm1531_vm10, %v5795_v59  ;;  %v6844_v56 = vsel %vm5388_vm7, 0, %v5462_v37 }
 0x1a8   :  { %v1243_v45 = vpop.permute.xlu0 %1242  ;;  %v1337_v15 = vpop.permute.xlu1 %1336 }
 0x1a9   :  { %v5807_v18 = vsel %vm1459_vm9, %v1422_v25, %v1337_v15  ;;  %v1425_v61 = vsel %vm1362_vm8, %v1027_v35, %v1243_v45  ;;  %v2776_v45 = vld [vmem:[%s6736_s5] sm:$0x3] }
 0x1aa   :  { %4291 = vmatmul.mubr.msk.bf16.gmra.mrb[68].mxu1 %vm1531_vm10, %v5807_v18  ;;  %4521 = vmatprep.subr.msk.bf16.mxu0 %vm2944_vm11, %v2776_v45 }
 0x1ab   :  { %4357 = vmatmul.mubr.msk.bf16.gmra.mrb[68].mxu0 %vm1531_vm10, %v5807_v18 }
 0x1ac   :  { %v1339_v21 = vpop.permute.xlu0 %1338  ;;  %v1245_v42 = vpop.permute.xlu1 %1244 }
 0x1ad   :  { %v5819_v1 = vsel %vm1459_vm9, %v1425_v61, %v1339_v21  ;;  %v1428_v30 = vsel %vm1362_vm8, %v1028_v33, %v1245_v42  ;;  %v2946_v42 = vsel %vm2944_vm11, %v2776_v45, 0 }
 0x1ae   :  { %4294 = vmatprep.mubr.msk.bf16.mxu1 %vm1531_vm10, %v5819_v1  ;;  %4360 = vmatprep.mubr.msk.bf16.mxu0 %vm1531_vm10, %v5819_v1 }
 0x1af   :  { %4451 = vmatpush3.bf16.msra.mxu0 %v2946_v42 }
 0x1b0   :  { %v1247_v52 = vpop.permute.xlu0 %1246  ;;  %v1341_v20 = vpop.permute.xlu1 %1340 }
 0x1b1   :  { %v5831_v35 = vsel %vm1459_vm9, %v1428_v30, %v1341_v20  ;;  %v1431_v58 = vsel %vm1362_vm8, %v6840_v53, %v1247_v52 }
 0x1b2   :  { %4295 = vmatmul.mubr.msk.bf16.gmra.mrb[72].mxu1 %vm1531_vm10, %v5831_v35 }
 0x1b3   :  { %4361 = vmatmul.mubr.msk.bf16.gmra.mrb[72].mxu0 %vm1531_vm10, %v5831_v35 }
 0x1b4   :  { %v1343_v63 = vpop.permute.xlu0 %1342  ;;  %v1249_v62 = vpop.permute.xlu1 %1248 }
 0x1b5   :  { %v5843_v33 = vsel %vm1459_vm9, %v1431_v58, %v1343_v63  ;;  %v1434_v44 = vsel %vm1362_vm8, %v6841_v36, %v1249_v62 }
 0x1b6   :  { %4298 = vmatprep.mubr.msk.bf16.mxu1 %vm1531_vm10, %v5843_v33  ;;  %4364 = vmatprep.mubr.msk.bf16.mxu0 %vm1531_vm10, %v5843_v33 }
 0x1b8   :  { %v1251_v28 = vpop.permute.xlu0 %1250 }
 0x1b9   :  { %v1437_v26 = vsel %vm1362_vm8, %v1031_v22, %v1251_v28 }
 0x1ba   :  { %v1345_v40 = vpop.permute.xlu1 %1344 }
 0x1bb   :  { %v5855_v13 = vsel %vm1459_vm9, %v1434_v44, %v1345_v40  ;;  %v6845_v44 = vsel %vm5388_vm7, 0, %v5476_v41 }
 0x1bc   :  { %4299 = vmatmul.mubr.msk.bf16.gmra.mrb[76].mxu1 %vm1531_vm10, %v5855_v13  ;;  %4365 = vmatmul.mubr.msk.bf16.gmra.mrb[76].mxu0 %vm1531_vm10, %v5855_v13  ;;  %v1347_v34 = vpop.permute.xlu0 %1346 }
 0x1bd   :  { %v5867_v6 = vsel %vm1459_vm9, %v1437_v26, %v1347_v34 }
 0x1be   :  { %v1253_v38 = vpop.permute.xlu1 %1252  ;;  %4302 = vmatprep.mubr.msk.bf16.mxu1 %vm1531_vm10, %v5867_v6  ;;  %4368 = vmatprep.mubr.msk.bf16.mxu0 %vm1531_vm10, %v5867_v6 }
 0x1bf   :  { %v1440_v2 = vsel %vm1362_vm8, %v1032_v11, %v1253_v38 }
 0x1c0   :  { %v1255_v49 = vpop.permute.xlu0 %1254 }
 0x1c1   :  { %v1443_v29 = vsel %vm1362_vm8, %v1033_v14, %v1255_v49 }
 0x1c2   :  { %v1349_v50 = vpop.permute.xlu1 %1348 }
 0x1c3   :  { %v5879_v22 = vsel %vm1459_vm9, %v1440_v2, %v1349_v50 }
 0x1c4   :  { %4303 = vmatmul.mubr.msk.bf16.gmra.mrb[80].mxu1 %vm1531_vm10, %v5879_v22  ;;  %4369 = vmatmul.mubr.msk.bf16.gmra.mrb[80].mxu0 %vm1531_vm10, %v5879_v22  ;;  %v1351_v5 = vpop.permute.xlu0 %1350 }
 0x1c5   :  { %v5891_v11 = vsel %vm1459_vm9, %v1443_v29, %v1351_v5 }
 0x1c6   :  { %v1257_v24 = vpop.permute.xlu1 %1256  ;;  %4306 = vmatprep.mubr.msk.bf16.mxu1 %vm1531_vm10, %v5891_v11  ;;  %4372 = vmatprep.mubr.msk.bf16.mxu0 %vm1531_vm10, %v5891_v11 }
 0x1c7   :  { %v1446_v3 = vsel %vm1362_vm8, %v6842_v23, %v1257_v24 }
 0x1c8   :  { %v1259_v4 = vpop.permute.xlu0 %1258 }
 0x1c9   :  { %v1449_v15 = vsel %vm1362_vm8, %v6843_v10, %v1259_v4 }
 0x1ca   :  { %v1353_v25 = vpop.permute.xlu1 %1352 }
 0x1cb   :  { %v5903_v14 = vsel %vm1459_vm9, %v1446_v3, %v1353_v25 }
 0x1cc   :  { %4307 = vmatmul.mubr.msk.bf16.gmra.mrb[84].mxu1 %vm1531_vm10, %v5903_v14  ;;  %4373 = vmatmul.mubr.msk.bf16.gmra.mrb[84].mxu0 %vm1531_vm10, %v5903_v14  ;;  %v1355_v61 = vpop.permute.xlu0 %1354 }
 0x1cd   :  { %v5918_v30 = vsel %vm1459_vm9, %v1449_v15, %v1355_v61 }
 0x1ce   :  { %v1261_v21 = vpop.permute.xlu1 %1260  ;;  %4310 = vmatprep.mubr.msk.bf16.mxu1 %vm1531_vm10, %v5918_v30  ;;  %4376 = vmatprep.mubr.msk.bf16.mxu0 %vm1531_vm10, %v5918_v30 }
 0x1cf   :  { %v1452_v52 = vsel %vm1362_vm8, %v6844_v56, %v1261_v21 }
 0x1d0   :  { %v1263_v20 = vpop.permute.xlu0 %1262 }
 0x1d1   :  { %v1455_v63 = vsel %vm1362_vm8, %v1037_v60, %v1263_v20 }
 0x1d2   :  { %v1357_v53 = vpop.permute.xlu1 %1356 }
 0x1d3   :  { %v5930_v58 = vsel %vm1459_vm9, %v1452_v52, %v1357_v53 }
 0x1d4   :  { %4311 = vmatmul.mubr.msk.bf16.gmra.mrb[88].mxu1 %vm1531_vm10, %v5930_v58  ;;  %4377 = vmatmul.mubr.msk.bf16.gmra.mrb[88].mxu0 %vm1531_vm10, %v5930_v58  ;;  %v1359_v37 = vpop.permute.xlu0 %1358 }
 0x1d5   :  { %v5942_v36 = vsel %vm1459_vm9, %v1455_v63, %v1359_v37 }
 0x1d6   :  { %v1265_v62 = vpop.permute.xlu1 %1264  ;;  %4314 = vmatprep.mubr.msk.bf16.mxu1 %vm1531_vm10, %v5942_v36  ;;  %4380 = vmatprep.mubr.msk.bf16.mxu0 %vm1531_vm10, %v5942_v36 }
 0x1d7   :  { %v1458_v28 = vsel %vm1362_vm8, %v6845_v44, %v1265_v62 }
 0x1da   :  { %v1361_v51 = vpop.permute.xlu1 %1360 }
 0x1db   :  { %v5954_v60 = vsel %vm1459_vm9, %v1458_v28, %v1361_v51 }
 0x1dc   :  { %4315 = vmatmul.mubr.msk.bf16.gmra.mrb[92].mxu1 %vm1531_vm10, %v5954_v60  ;;  %4381 = vmatmul.mubr.msk.bf16.gmra.mrb[92].mxu0 %vm1531_vm10, %v5954_v60 }
 0x1dd   :  { %4386 = vmatprep.mubr.msk.bf16.mxu1 %vm1531_vm10, %v5560_v7 }
 0x1e4   :  { %4387 = vmatmul.mubr.msk.bf16.vlgmr.msra.gmra.mrb[96].mxu1 %vm1531_vm10, %v5583_v57 }
 0x1e5   :  { %4390 = vmatprep.mubr.msk.bf16.mxu1 %vm1531_vm10, %v5608_v43 }
 0x1ec   :  { %4391 = vmatmul.mubr.msk.bf16.gmra.mrb[100].mxu1 %vm1531_vm10, %v5625_v16 }
 0x1ed   :  { %4394 = vmatprep.mubr.msk.bf16.mxu1 %vm1531_vm10, %v5637_v27 }
 0x1f4   :  { %4395 = vmatmul.mubr.msk.bf16.gmra.mrb[104].mxu1 %vm1531_vm10, %v5647_v46 }
 0x1f5   :  { %4398 = vmatprep.mubr.msk.bf16.mxu1 %vm1531_vm10, %v5658_v47 }
 0x1fc   :  { %4399 = vmatmul.mubr.msk.bf16.gmra.mrb[108].mxu1 %vm1531_vm10, %v5669_v48 }
 0x1fd   :  { %4402 = vmatprep.mubr.msk.bf16.mxu1 %vm1531_vm10, %v5680_v17 }
 0x204   :  { %4403 = vmatmul.mubr.msk.bf16.gmra.mrb[112].mxu1 %vm1531_vm10, %v5691_v31 }
 0x205   :  { %4406 = vmatprep.mubr.msk.bf16.mxu1 %vm1531_vm10, %v5702_v0 }
 0x20c   :  { %4407 = vmatmul.mubr.msk.bf16.gmra.mrb[116].mxu1 %vm1531_vm10, %v5713_v39 }
 0x20d   :  { %4410 = vmatprep.mubr.msk.bf16.mxu1 %vm1531_vm10, %v5724_v9 }
 0x214   :  { %4411 = vmatmul.mubr.msk.bf16.gmra.mrb[120].mxu1 %vm1531_vm10, %v5735_v19 }
 0x215   :  { %4414 = vmatprep.mubr.msk.bf16.mxu1 %vm1531_vm10, %v5748_v32 }
 0x21c   :  { %4415 = vmatmul.mubr.msk.bf16.gmra.mrb[124].mxu1 %vm1531_vm10, %v5761_v12 }
 0x21d   :  { %4418 = vmatprep.mubr.msk.bf16.mxu1 %vm1531_vm10, %v5771_v55 }
 0x224   :  { %4419 = vmatmul.mubr.msk.bf16.gmra.mrb[128].mxu1 %vm1531_vm10, %v5783_v54 }
 0x225   :  { %4422 = vmatprep.mubr.msk.bf16.mxu1 %vm1531_vm10, %v5795_v59 }
 0x22c   :  { %4423 = vmatmul.mubr.msk.bf16.gmra.mrb[132].mxu1 %vm1531_vm10, %v5807_v18 }
 0x22d   :  { %4426 = vmatprep.mubr.msk.bf16.mxu1 %vm1531_vm10, %v5819_v1 }
 0x234   :  { %4427 = vmatmul.mubr.msk.bf16.gmra.mrb[136].mxu1 %vm1531_vm10, %v5831_v35 }
 0x235   :  { %4430 = vmatprep.mubr.msk.bf16.mxu1 %vm1531_vm10, %v5843_v33  ;;  %v4256_v8 = vpop.f32.mrb[32].mxu1 }
 0x236   :  { %v4322_v41 = vpop.f32.mrb[32].mxu0  ;;  %v1634_v7 = vpop.f32.mrb[33].mxu1 }
 0x237   :  { %v6006_v57 = vpop.f32.mrb[33].mxu0  ;;  %v6008_v43 = vadd.f32 %v4322_v41, %v1634_v7  ;;  %v4257_v16 = vpop.f32.mrb[34].mxu1 }
 0x238   :  { %v4323_v27 = vpop.f32.mrb[34].mxu0  ;;  %v1637_v46 = vpop.f32.mrb[35].mxu1 }
 0x239   :  { %v6010_v47 = vpop.f32.mrb[35].mxu0  ;;  %v6012_v48 = vadd.f32 %v4323_v27, %v1637_v46 }
 0x23c   :  { %4431 = vmatmul.mubr.msk.bf16.gmra.mrb[140].mxu1 %vm1531_vm10, %v5855_v13 }
 0x23d   :  { %4434 = vmatprep.mubr.msk.bf16.mxu1 %vm1531_vm10, %v5867_v6  ;;  %v4260_v17 = vpop.f32.mrb[36].mxu1 }
 0x23e   :  { %v4326_v31 = vpop.f32.mrb[36].mxu0  ;;  %v1650_v0 = vpop.f32.mrb[37].mxu1 }
 0x23f   :  { %v1946_v39 = vpop.f32.mrb[37].mxu0  ;;  %v6018_v9 = vadd.f32 %v4326_v31, %v1650_v0  ;;  %v4261_v32 = vpop.f32.mrb[38].mxu1 }
 0x240   :  { %v6020_v19 = vadd.f32 %v4256_v8, %v1946_v39  ;;  %v4327_v12 = vpop.f32.mrb[38].mxu0  ;;  %v1653_v55 = vpop.f32.mrb[39].mxu1 }
 0x241   :  { %v1949_v54 = vpop.f32.mrb[39].mxu0  ;;  %v6022_v59 = vadd.f32 %v4327_v12, %v1653_v55 }
 0x242   :  { %v6024_v18 = vadd.f32 %v4257_v16, %v1949_v54 }
 0x244   :  { %4435 = vmatmul.mubr.msk.bf16.gmra.mrb[144].mxu1 %vm1531_vm10, %v5879_v22 }
 0x245   :  { %4438 = vmatprep.mubr.msk.bf16.mxu1 %vm1531_vm10, %v5891_v11  ;;  %v4264_v1 = vpop.f32.mrb[40].mxu1 }
 0x246   :  { %v4330_v35 = vpop.f32.mrb[40].mxu0  ;;  %v1666_v33 = vpop.f32.mrb[41].mxu1 }
 0x247   :  { %v1962_v40 = vpop.f32.mrb[41].mxu0  ;;  %v6030_v13 = vadd.f32 %v4330_v35, %v1666_v33  ;;  %v4265_v34 = vpop.f32.mrb[42].mxu1 }
 0x248   :  { %v6032_v26 = vadd.f32 %v4260_v17, %v1962_v40  ;;  %v4331_v38 = vpop.f32.mrb[42].mxu0  ;;  %v1669_v6 = vpop.f32.mrb[43].mxu1 }
 0x249   :  { %v1965_v2 = vpop.f32.mrb[43].mxu0  ;;  %v6034_v49 = vadd.f32 %v4331_v38, %v1669_v6 }
 0x24a   :  { %v6036_v50 = vadd.f32 %v4261_v32, %v1965_v2  ;;  %v6083_v2 = vld [vmem:[%s6737_s4] ss:$0 sm:$0xff] }
 0x24c   :  { %4439 = vmatmul.mubr.msk.bf16.gmra.mrb[148].mxu1 %vm1531_vm10, %v5903_v14 }
 0x24d   :  { %4442 = vmatprep.mubr.msk.bf16.mxu1 %vm1531_vm10, %v5918_v30  ;;  %v4268_v22 = vpop.f32.mrb[44].mxu1 }
 0x24e   :  { %v4334_v29 = vpop.f32.mrb[44].mxu0  ;;  %v1682_v5 = vpop.f32.mrb[45].mxu1 }
 0x24f   :  { %v1978_v24 = vpop.f32.mrb[45].mxu0  ;;  %v6042_v11 = vadd.f32 %v4334_v29, %v1682_v5  ;;  %v4269_v3 = vpop.f32.mrb[46].mxu1 }
 0x250   :  { %v6044_v23 = vadd.f32 %v4264_v1, %v1978_v24  ;;  %v4335_v4 = vpop.f32.mrb[46].mxu0  ;;  %v1685_v25 = vpop.f32.mrb[47].mxu1 }
 0x251   :  { %v1981_v45 = vpop.f32.mrb[47].mxu0  ;;  %v6046_v10 = vadd.f32 %v4335_v4, %v1685_v25 }
 0x252   :  { %v6048_v15 = vadd.f32 %v4265_v34, %v1981_v45 }
 0x254   :  { %4443 = vmatmul.mubr.msk.bf16.gmra.mrb[152].mxu1 %vm1531_vm10, %v5930_v58 }
 0x255   :  { %4446 = vmatprep.mubr.msk.bf16.mxu1 %vm1531_vm10, %v5942_v36  ;;  %v4272_v14 = vpop.f32.mrb[48].mxu1 }
 0x256   :  { %v4338_v61 = vpop.f32.mrb[48].mxu0  ;;  %v1698_v21 = vpop.f32.mrb[49].mxu1 }
 0x257   :  { %v1994_v42 = vpop.f32.mrb[49].mxu0  ;;  %v6054_v30 = vadd.f32 %v4338_v61, %v1698_v21  ;;  %v4273_v52 = vpop.f32.mrb[50].mxu1 }
 0x258   :  { %v6056_v56 = vadd.f32 %v4268_v22, %v1994_v42  ;;  %v4339_v20 = vpop.f32.mrb[50].mxu0  ;;  %v1701_v53 = vpop.f32.mrb[51].mxu1 }
 0x259   :  { %v1997_v63 = vpop.f32.mrb[51].mxu0  ;;  %v6058_v37 = vadd.f32 %v4339_v20, %v1701_v53 }
 0x25a   :  { %v6060_v62 = vadd.f32 %v4269_v3, %v1997_v63 }
 0x25c   :  { %4447 = vmatmul.mubr.msk.bf16.gmra.mrb[156].mxu1 %vm1531_vm10, %v5954_v60 }
 0x25d   :  { %v4276_v58 = vpop.f32.mrb[52].mxu1 }
 0x25e   :  { %v4342_v36 = vpop.f32.mrb[52].mxu0  ;;  %v1714_v44 = vpop.f32.mrb[53].mxu1 }
 0x25f   :  { %v2010_v28 = vpop.f32.mrb[53].mxu0  ;;  %v6064_v51 = vadd.f32 %v4342_v36, %v1714_v44  ;;  %v4277_v41 = vpop.f32.mrb[54].mxu1 }
 0x260   :  { %v6066_v8 = vadd.f32 %v4272_v14, %v2010_v28  ;;  %v4343_v7 = vpop.f32.mrb[54].mxu0  ;;  %v1717_v16 = vpop.f32.mrb[55].mxu1 }
 0x261   :  { %v2013_v27 = vpop.f32.mrb[55].mxu0  ;;  %v6068_v46 = vadd.f32 %v4343_v7, %v1717_v16 }
 0x262   :  { %v6070_v17 = vadd.f32 %v4273_v52, %v2013_v27 }
 0x265   :  { %v4280_v31 = vpop.f32.mrb[56].mxu1 }
 0x266   :  { %v4346_v0 = vpop.f32.mrb[56].mxu0  ;;  %v1730_v39 = vpop.f32.mrb[57].mxu1 }
 0x267   :  { %v2026_v60 = vpop.f32.mrb[57].mxu0  ;;  %v6072_v32 = vadd.f32 %v4346_v0, %v1730_v39  ;;  %v4281_v55 = vpop.f32.mrb[58].mxu1 }
 0x268   :  { %v6074_v12 = vadd.f32 %v4276_v58, %v2026_v60  ;;  %v4347_v54 = vpop.f32.mrb[58].mxu0  ;;  %v1733_v1 = vpop.f32.mrb[59].mxu1 }
 0x269   :  { %v2029_v35 = vpop.f32.mrb[59].mxu0  ;;  %v6076_v33 = vadd.f32 %v4347_v54, %v1733_v1 }
 0x26a   :  { %v6078_v40 = vadd.f32 %v4277_v41, %v2029_v35 }
 0x26d   :  { %v4284_v34 = vpop.f32.mrb[60].mxu1 }
 0x26e   :  { %v4350_v38 = vpop.f32.mrb[60].mxu0  ;;  %v1746_v6 = vpop.f32.mrb[61].mxu1 }
 0x26f   :  { %v2042_v22 = vpop.f32.mrb[61].mxu0  ;;  %v2511_v29 = vadd.f32 %v4350_v38, %v1746_v6  ;;  %v4285_v24 = vpop.f32.mrb[62].mxu1 }
 0x270   :  { %v6085_v5 = vadd.f32 %v4280_v31, %v2042_v22  ;;  %v4351_v3 = vpop.f32.mrb[62].mxu0  ;;  %v1749_v4 = vpop.f32.mrb[63].mxu1 }
 0x271   :  { %v2045_v25 = vpop.f32.mrb[63].mxu0  ;;  %v2646_v45 = vadd.f32 %v6083_v2, %v2511_v29  ;;  %v2512_v14 = vadd.f32 %v4351_v3, %v1749_v4 }
 0x272   :  { %v6088_v61 = vadd.f32 %v4281_v55, %v2045_v25 }
 0x273   :  { %v2647_v21 = vadd.f32 %v6083_v2, %v2512_v14  ;;  %v2710_v42 = vmax.f32 %v2646_v45, 0.0 }
 0x275   :  { %v2711_v52 = vmax.f32 %v2647_v21, 0.0  ;;  %v4288_v20 = vpop.f32.mrb[64].mxu1 }
 0x276   :  { %v4354_v53 = vpop.f32.mrb[64].mxu0  ;;  %v1760_v63 = vpop.f32.mrb[65].mxu1 }
 0x277   :  { %v6091_v58 = vpop.f32.mrb[65].mxu0  ;;  %v6093_v36 = vpack.c.bf16 %v2711_v52, %v2710_v42  ;;  %v6095_v44 = vadd.f32 %v4354_v53, %v1760_v63  ;;  %v4289_v28 = vpop.f32.mrb[66].mxu1 }
 0x278   :  { %v4355_v41 = vpop.f32.mrb[66].mxu0  ;;  %v1763_v7 = vpop.f32.mrb[67].mxu1 }
 0x279   :  { %v6097_v16 = vpop.f32.mrb[67].mxu0  ;;  %v6099_v27 = vadd.f32 %v4355_v41, %v1763_v7 }
 0x27d   :  { %v4292_v31 = vpop.f32.mrb[68].mxu1 }
 0x27e   :  { %v4358_v0 = vpop.f32.mrb[68].mxu0  ;;  %v1776_v39 = vpop.f32.mrb[69].mxu1 }
 0x27f   :  { %v2074_v60 = vpop.f32.mrb[69].mxu0  ;;  %v6101_v55 = vadd.f32 %v4358_v0, %v1776_v39  ;;  %v4293_v1 = vpop.f32.mrb[70].mxu1 }
 0x280   :  { %v6103_v54 = vadd.f32 %v4288_v20, %v2074_v60  ;;  %v4359_v35 = vpop.f32.mrb[70].mxu0  ;;  %v1779_v34 = vpop.f32.mrb[71].mxu1 }
 0x281   :  { %v2077_v38 = vpop.f32.mrb[71].mxu0  ;;  %v6105_v6 = vadd.f32 %v4359_v35, %v1779_v34 }
 0x282   :  { %v6107_v22 = vadd.f32 %v4289_v28, %v2077_v38 }
 0x285   :  { %v4296_v29 = vpop.f32.mrb[72].mxu1 }
 0x286   :  { %v4362_v24 = vpop.f32.mrb[72].mxu0  ;;  %v1792_v3 = vpop.f32.mrb[73].mxu1 }
 0x287   :  { %v2090_v4 = vpop.f32.mrb[73].mxu0  ;;  %v6109_v25 = vadd.f32 %v4362_v24, %v1792_v3  ;;  %v4297_v14 = vpop.f32.mrb[74].mxu1 }
 0x288   :  { %v6111_v45 = vadd.f32 %v4292_v31, %v2090_v4  ;;  %v4363_v21 = vpop.f32.mrb[74].mxu0  ;;  %v1795_v42 = vpop.f32.mrb[75].mxu1 }
 0x289   :  { %6846 = vst [vmem:[#allocation4_spill] sm:$0xff] %v6109_v25  ;;  %v2093_v52 = vpop.f32.mrb[75].mxu0  ;;  %v6113_v20 = vadd.f32 %v4363_v21, %v1795_v42 }
 0x28a   :  { %v6115_v53 = vadd.f32 %v4293_v1, %v2093_v52 }
 0x28b   :  { %6847 = vst [vmem:[#allocation3_spill] sm:$0xff] %v6113_v20 }
 0x28f   :  { %v4300_v63 = vpop.f32.mrb[76].mxu1  ;;  %v4366_v41 = vpop.f32.mrb[76].mxu0 }
 0x290   :  { %v1808_v28 = vpop.f32.mrb[77].mxu1  ;;  %v2106_v7 = vpop.f32.mrb[77].mxu0 }
 0x291   :  { %v6117_v0 = vadd.f32 %v4366_v41, %v1808_v28  ;;  %v6119_v39 = vadd.f32 %v4296_v29, %v2106_v7  ;;  %v4301_v60 = vpop.f32.mrb[78].mxu1  ;;  %v4367_v35 = vpop.f32.mrb[78].mxu0 }
 0x292   :  { %v1811_v31 = vpop.f32.mrb[79].mxu1  ;;  %v2109_v34 = vpop.f32.mrb[79].mxu0 }
 0x293   :  { %6848 = vst [vmem:[#allocation2_spill] sm:$0xff] %v6117_v0  ;;  %v6121_v38 = vadd.f32 %v4367_v35, %v1811_v31  ;;  %v6123_v24 = vadd.f32 %v4297_v14, %v2109_v34 }
 0x295   :  { %6849 = vst [vmem:[#allocation5_spill] sm:$0xff] %v6121_v38  ;;  %6850 = vst [vmem:[#allocation6_spill] sm:$0xff] %v6123_v24 }
 0x297   :  { %v4304_v3 = vpop.f32.mrb[80].mxu1  ;;  %v4370_v4 = vpop.f32.mrb[80].mxu0 }
 0x298   :  { %v1824_v1 = vpop.f32.mrb[81].mxu1  ;;  %v2122_v21 = vpop.f32.mrb[81].mxu0 }
 0x299   :  { %v6125_v42 = vadd.f32 %v4370_v4, %v1824_v1  ;;  %v6127_v52 = vadd.f32 %v4300_v63, %v2122_v21  ;;  %v4305_v41 = vpop.f32.mrb[82].mxu1  ;;  %v4371_v28 = vpop.f32.mrb[82].mxu0 }
 0x29a   :  { %v1827_v29 = vpop.f32.mrb[83].mxu1  ;;  %v2125_v7 = vpop.f32.mrb[83].mxu0 }
 0x29b   :  { %6851 = vst [vmem:[#allocation7_spill] sm:$0xff] %v6125_v42  ;;  %6852 = vst [vmem:[#allocation8_spill] sm:$0xff] %v6127_v52  ;;  %v6129_v0 = vadd.f32 %v4371_v28, %v1827_v29  ;;  %v6131_v20 = vadd.f32 %v4301_v60, %v2125_v7 }
 0x29d   :  { %6853 = vst [vmem:[#allocation9_spill] sm:$0xff] %v6129_v0  ;;  %6854 = vst [vmem:[#allocation10_spill] sm:$0xff] %v6131_v20 }
 0x29f   :  { %v4308_v35 = vpop.f32.mrb[84].mxu1  ;;  %v4374_v31 = vpop.f32.mrb[84].mxu0 }
 0x2a0   :  { %v1840_v14 = vpop.f32.mrb[85].mxu1  ;;  %v2138_v34 = vpop.f32.mrb[85].mxu0 }
 0x2a1   :  { %v6133_v38 = vadd.f32 %v4374_v31, %v1840_v14  ;;  %v6135_v24 = vadd.f32 %v4304_v3, %v2138_v34  ;;  %v4309_v4 = vpop.f32.mrb[86].mxu1  ;;  %v4375_v1 = vpop.f32.mrb[86].mxu0 }
 0x2a2   :  { %v1843_v63 = vpop.f32.mrb[87].mxu1  ;;  %v2141_v21 = vpop.f32.mrb[87].mxu0 }
 0x2a3   :  { %6855 = vst [vmem:[#allocation11_spill] sm:$0xff] %v6133_v38  ;;  %6856 = vst [vmem:[#allocation12_spill] sm:$0xff] %v6135_v24  ;;  %v6137_v42 = vadd.f32 %v4375_v1, %v1843_v63  ;;  %v6139_v52 = vadd.f32 %v4305_v41, %v2141_v21 }
 0x2a5   :  { %6857 = vst [vmem:[#allocation13_spill] sm:$0xff] %v6137_v42  ;;  %6858 = vst [vmem:[#allocation14_spill] sm:$0xff] %v6139_v52 }
 0x2a7   :  { %v4312_v28 = vpop.f32.mrb[88].mxu1  ;;  %v4378_v29 = vpop.f32.mrb[88].mxu0 }
 0x2a8   :  { %v1856_v60 = vpop.f32.mrb[89].mxu1  ;;  %v2154_v7 = vpop.f32.mrb[89].mxu0 }
 0x2a9   :  { %v6141_v0 = vadd.f32 %v4378_v29, %v1856_v60  ;;  %v6143_v20 = vadd.f32 %v4308_v35, %v2154_v7  ;;  %v4313_v31 = vpop.f32.mrb[90].mxu1  ;;  %v4379_v14 = vpop.f32.mrb[90].mxu0 }
 0x2aa   :  { %v1859_v3 = vpop.f32.mrb[91].mxu1  ;;  %v2157_v34 = vpop.f32.mrb[91].mxu0 }
 0x2ab   :  { %6859 = vst [vmem:[#allocation15_spill] sm:$0xff] %v6141_v0  ;;  %6860 = vst [vmem:[#allocation16_spill] sm:$0xff] %v6143_v20  ;;  %v6145_v38 = vadd.f32 %v4379_v14, %v1859_v3  ;;  %v6147_v24 = vadd.f32 %v4309_v4, %v2157_v34 }
 0x2ad   :  { %6861 = vst [vmem:[#allocation17_spill] sm:$0xff] %v6145_v38 }
 0x2af   :  { %v4316_v1 = vpop.f32.mrb[92].mxu1  ;;  %v4382_v63 = vpop.f32.mrb[92].mxu0 }
 0x2b0   :  { %v1872_v41 = vpop.f32.mrb[93].mxu1  ;;  %v2170_v21 = vpop.f32.mrb[93].mxu0 }
 0x2b1   :  { %v2543_v42 = vadd.f32 %v4382_v63, %v1872_v41  ;;  %v6149_v52 = vadd.f32 %v4312_v28, %v2170_v21  ;;  %v4317_v25 = vpop.f32.mrb[94].mxu1  ;;  %v4383_v29 = vpop.f32.mrb[94].mxu0 }
 0x2b2   :  { %v1875_v60 = vpop.f32.mrb[95].mxu1  ;;  %v2173_v35 = vpop.f32.mrb[95].mxu0 }
 0x2b3   :  { %v2678_v7 = vadd.f32 %v6083_v2, %v2543_v42  ;;  %v2544_v0 = vadd.f32 %v4383_v29, %v1875_v60  ;;  %v6152_v20 = vadd.f32 %v4313_v31, %v2173_v35 }
 0x2b5   :  { %v2679_v14 = vadd.f32 %v6083_v2, %v2544_v0  ;;  %v2742_v4 = vmax.f32 %v2678_v7, 0.0 }
 0x2b7   :  { %v2743_v3 = vmax.f32 %v2679_v14, 0.0  ;;  %v4388_v34 = vpop.f32.mrb[96].mxu1 }
 0x2b8   :  { %v2545_v1 = vadd.f32 %v4388_v34, %v6006_v57  ;;  %v2230_v38 = vpop.f32.mrb[97].mxu1 }
 0x2b9   :  { %v6156_v63 = vpack.c.bf16 %v2743_v3, %v2742_v4  ;;  %v4389_v28 = vpop.f32.mrb[98].mxu1 }
 0x2ba   :  { %v2616_v25 = vadd.f32 %v6083_v2, %v2545_v1  ;;  %v2546_v41 = vadd.f32 %v4389_v28, %v6010_v47  ;;  %v2232_v21 = vpop.f32.mrb[99].mxu1 }
 0x2bc   :  { %v2617_v42 = vadd.f32 %v6083_v2, %v2546_v41  ;;  %v2680_v31 = vmax.f32 %v2616_v25, 0.0 }
 0x2be   :  { %v2681_v29 = vmax.f32 %v2617_v42, 0.0 }
 0x2bf   :  { %v4392_v60 = vpop.f32.mrb[100].mxu1 }
 0x2c0   :  { %v2744_v0 = vpack.c.bf16 %v2681_v29, %v2680_v31  ;;  %v2549_v35 = vadd.f32 %v4392_v60, %v6020_v19  ;;  %v2244_v7 = vpop.f32.mrb[101].mxu1 }
 0x2c1   :  { %v2547_v57 = vadd.f32 %v6008_v43, %v2244_v7  ;;  %v4393_v38 = vpop.f32.mrb[102].mxu1 }
 0x2c2   :  { %v2620_v14 = vadd.f32 %v6083_v2, %v2549_v35  ;;  %v2550_v4 = vadd.f32 %v4393_v38, %v6024_v18  ;;  %v2247_v3 = vpop.f32.mrb[103].mxu1  ;;  %4452 = vmatprep.mubr.msk.bf16.mxu0 %vm1362_vm8, %v2744_v0 }
 0x2c3   :  { %v2618_v47 = vadd.f32 %v6083_v2, %v2547_v57  ;;  %v2548_v34 = vadd.f32 %v6012_v48, %v2247_v3 }
 0x2c4   :  { %v2621_v1 = vadd.f32 %v6083_v2, %v2550_v4  ;;  %v2684_v19 = vmax.f32 %v2620_v14, 0.0 }
 0x2c5   :  { %v2619_v28 = vadd.f32 %v6083_v2, %v2548_v34  ;;  %v2682_v41 = vmax.f32 %v2618_v47, 0.0 }
 0x2c6   :  { %v2685_v25 = vmax.f32 %v2621_v1, 0.0 }
 0x2c7   :  { %v2683_v43 = vmax.f32 %v2619_v28, 0.0  ;;  %v4396_v21 = vpop.f32.mrb[104].mxu1 }
 0x2c8   :  { %v2746_v42 = vpack.c.bf16 %v2685_v25, %v2684_v19  ;;  %v2553_v31 = vadd.f32 %v4396_v21, %v6032_v26  ;;  %v2260_v18 = vpop.f32.mrb[105].mxu1 }
 0x2c9   :  { %v2745_v29 = vpack.c.bf16 %v2683_v43, %v2682_v41  ;;  %v2551_v60 = vadd.f32 %v6018_v9, %v2260_v18  ;;  %v4397_v0 = vpop.f32.mrb[106].mxu1 }
 0x2ca   :  { %v2624_v35 = vadd.f32 %v6083_v2, %v2553_v31  ;;  %v2554_v48 = vadd.f32 %v4397_v0, %v6036_v50  ;;  %v2263_v7 = vpop.f32.mrb[107].mxu1 }
 0x2cb   :  { %v2622_v57 = vadd.f32 %v6083_v2, %v2551_v60  ;;  %v2552_v38 = vadd.f32 %v6022_v59, %v2263_v7  ;;  %4453 = vmatmul.mubr.msk.bf16.vlgmr.msra.gmra.mrb[96].mxu0 %vm1362_vm8, %v2745_v29 }
 0x2cc   :  { %v2625_v14 = vadd.f32 %v6083_v2, %v2554_v48  ;;  %4456 = vmatprep.mubr.msk.bf16.mxu0 %vm1362_vm8, %v2746_v42  ;;  %v2688_v4 = vmax.f32 %v2624_v35, 0.0 }
 0x2cd   :  { %v2623_v26 = vadd.f32 %v6083_v2, %v2552_v38  ;;  %v2686_v3 = vmax.f32 %v2622_v57, 0.0 }
 0x2ce   :  { %v2689_v9 = vmax.f32 %v2625_v14, 0.0 }
 0x2cf   :  { %v2687_v47 = vmax.f32 %v2623_v26, 0.0  ;;  %v4400_v34 = vpop.f32.mrb[108].mxu1 }
 0x2d0   :  { %v2748_v1 = vpack.c.bf16 %v2689_v9, %v2688_v4  ;;  %v2557_v50 = vadd.f32 %v4400_v34, %v6044_v23  ;;  %v2276_v28 = vpop.f32.mrb[109].mxu1 }
 0x2d1   :  { %v2747_v19 = vpack.c.bf16 %v2687_v47, %v2686_v3  ;;  %v2555_v59 = vadd.f32 %v6030_v13, %v2276_v28  ;;  %v4401_v25 = vpop.f32.mrb[110].mxu1 }
 0x2d2   :  { %v2628_v41 = vadd.f32 %v6083_v2, %v2557_v50  ;;  %v2558_v43 = vadd.f32 %v4401_v25, %v6048_v15  ;;  %v2279_v21 = vpop.f32.mrb[111].mxu1 }
 0x2d3   :  { %v2626_v42 = vadd.f32 %v6083_v2, %v2555_v59  ;;  %v2556_v31 = vadd.f32 %v6034_v49, %v2279_v21  ;;  %4457 = vmatmul.mubr.msk.bf16.gmra.mrb[100].mxu0 %vm1362_vm8, %v2747_v19 }
 0x2d4   :  { %v2629_v18 = vadd.f32 %v6083_v2, %v2558_v43  ;;  %4460 = vmatprep.mubr.msk.bf16.mxu0 %vm1362_vm8, %v2748_v1  ;;  %v2692_v29 = vmax.f32 %v2628_v41, 0.0 }
 0x2d5   :  { %v2627_v23 = vadd.f32 %v6083_v2, %v2556_v31  ;;  %v2690_v60 = vmax.f32 %v2626_v42, 0.0 }
 0x2d6   :  { %v2693_v13 = vmax.f32 %v2629_v18, 0.0 }
 0x2d7   :  { %v2691_v0 = vmax.f32 %v2627_v23, 0.0  ;;  %v4404_v35 = vpop.f32.mrb[112].mxu1 }
 0x2d8   :  { %v2750_v48 = vpack.c.bf16 %v2693_v13, %v2692_v29  ;;  %v2561_v15 = vadd.f32 %v4404_v35, %v6056_v56  ;;  %v2292_v7 = vpop.f32.mrb[113].mxu1 }
 0x2d9   :  { %v2749_v57 = vpack.c.bf16 %v2691_v0, %v2690_v60  ;;  %v2559_v49 = vadd.f32 %v6042_v11, %v2292_v7  ;;  %v4405_v38 = vpop.f32.mrb[114].mxu1 }
 0x2da   :  { %v2632_v14 = vadd.f32 %v6083_v2, %v2561_v15  ;;  %v2562_v26 = vadd.f32 %v4405_v38, %v6060_v62  ;;  %v2295_v4 = vpop.f32.mrb[115].mxu1 }
 0x2db   :  { %v2630_v9 = vadd.f32 %v6083_v2, %v2559_v49  ;;  %v2560_v3 = vadd.f32 %v6046_v10, %v2295_v4  ;;  %4461 = vmatmul.mubr.msk.bf16.gmra.mrb[104].mxu0 %vm1362_vm8, %v2749_v57 }
 0x2dc   :  { %v2633_v47 = vadd.f32 %v6083_v2, %v2562_v26  ;;  %4464 = vmatprep.mubr.msk.bf16.mxu0 %vm1362_vm8, %v2750_v48  ;;  %v2696_v34 = vmax.f32 %v2632_v14, 0.0 }
 0x2dd   :  { %v2631_v56 = vadd.f32 %v6083_v2, %v2560_v3  ;;  %v2694_v1 = vmax.f32 %v2630_v9, 0.0 }
 0x2de   :  { %v2697_v11 = vmax.f32 %v2633_v47, 0.0 }
 0x2df   :  { %v2695_v50 = vmax.f32 %v2631_v56, 0.0  ;;  %v4408_v28 = vpop.f32.mrb[116].mxu1 }
 0x2e0   :  { %v2752_v19 = vpack.c.bf16 %v2697_v11, %v2696_v34  ;;  %v2565_v62 = vadd.f32 %v4408_v28, %v6066_v8  ;;  %v2308_v59 = vpop.f32.mrb[117].mxu1 }
 0x2e1   :  { %v2751_v25 = vpack.c.bf16 %v2695_v50, %v2694_v1  ;;  %v2563_v10 = vadd.f32 %v6054_v30, %v2308_v59  ;;  %v4409_v41 = vpop.f32.mrb[118].mxu1 }
 0x2e2   :  { %v2636_v43 = vadd.f32 %v6083_v2, %v2565_v62  ;;  %v2566_v21 = vadd.f32 %v4409_v41, %v6070_v17  ;;  %v2311_v42 = vpop.f32.mrb[119].mxu1 }
 0x2e3   :  { %v2634_v31 = vadd.f32 %v6083_v2, %v2563_v10  ;;  %v2564_v18 = vadd.f32 %v6058_v37, %v2311_v42  ;;  %4465 = vmatmul.mubr.msk.bf16.gmra.mrb[108].mxu0 %vm1362_vm8, %v2751_v25 }
 0x2e4   :  { %v2637_v23 = vadd.f32 %v6083_v2, %v2566_v21  ;;  %4468 = vmatprep.mubr.msk.bf16.mxu0 %vm1362_vm8, %v2752_v19  ;;  %v2700_v29 = vmax.f32 %v2636_v43, 0.0 }
 0x2e5   :  { %v2635_v8 = vadd.f32 %v6083_v2, %v2564_v18  ;;  %v2698_v13 = vmax.f32 %v2634_v31, 0.0 }
 0x2e6   :  { %v2701_v30 = vmax.f32 %v2637_v23, 0.0 }
 0x2e7   :  { %v2699_v60 = vmax.f32 %v2635_v8, 0.0  ;;  %v4412_v0 = vpop.f32.mrb[120].mxu1 }
 0x2e8   :  { %v2754_v35 = vpack.c.bf16 %v2701_v30, %v2700_v29  ;;  %v2569_v17 = vadd.f32 %v4412_v0, %v6074_v12  ;;  %v2324_v48 = vpop.f32.mrb[121].mxu1 }
 0x2e9   :  { %v2753_v15 = vpack.c.bf16 %v2699_v60, %v2698_v13  ;;  %v2567_v37 = vadd.f32 %v6064_v51, %v2324_v48  ;;  %v4413_v7 = vpop.f32.mrb[122].mxu1 }
 0x2ea   :  { %v2640_v57 = vadd.f32 %v6083_v2, %v2569_v17  ;;  %v2570_v49 = vadd.f32 %v4413_v7, %v6078_v40  ;;  %v2327_v38 = vpop.f32.mrb[123].mxu1 }
 0x2eb   :  { %v2638_v14 = vadd.f32 %v6083_v2, %v2567_v37  ;;  %v2568_v26 = vadd.f32 %v6068_v46, %v2327_v38  ;;  %4469 = vmatmul.mubr.msk.bf16.gmra.mrb[112].mxu0 %vm1362_vm8, %v2753_v15 }
 0x2ec   :  { %v2641_v4 = vadd.f32 %v6083_v2, %v2570_v49  ;;  %4472 = vmatprep.mubr.msk.bf16.mxu0 %vm1362_vm8, %v2754_v35  ;;  %v2704_v9 = vmax.f32 %v2640_v57, 0.0 }
 0x2ed   :  { %v2639_v12 = vadd.f32 %v6083_v2, %v2568_v26  ;;  %v2702_v3 = vmax.f32 %v2638_v14, 0.0 }
 0x2ee   :  { %v2705_v51 = vmax.f32 %v2641_v4, 0.0 }
 0x2ef   :  { %v2703_v47 = vmax.f32 %v2639_v12, 0.0  ;;  %v4416_v56 = vpop.f32.mrb[124].mxu1 }
 0x2f0   :  { %v2756_v34 = vpack.c.bf16 %v2705_v51, %v2704_v9  ;;  %v2573_v40 = vadd.f32 %v4416_v56, %v6085_v5  ;;  %v2340_v11 = vpop.f32.mrb[125].mxu1 }
 0x2f1   :  { %v2755_v1 = vpack.c.bf16 %v2703_v47, %v2702_v3  ;;  %v2571_v46 = vadd.f32 %v6072_v32, %v2340_v11  ;;  %v4417_v50 = vpop.f32.mrb[126].mxu1 }
 0x2f2   :  { %v2644_v28 = vadd.f32 %v6083_v2, %v2573_v40  ;;  %v2574_v19 = vadd.f32 %v4417_v50, %v6088_v61  ;;  %v2343_v62 = vpop.f32.mrb[127].mxu1 }
 0x2f3   :  { %v2642_v59 = vadd.f32 %v6083_v2, %v2571_v46  ;;  %v2572_v25 = vadd.f32 %v6076_v33, %v2343_v62  ;;  %4473 = vmatmul.mubr.msk.bf16.gmra.mrb[116].mxu0 %vm1362_vm8, %v2755_v1 }
 0x2f4   :  { %v2645_v10 = vadd.f32 %v6083_v2, %v2574_v19  ;;  %4476 = vmatprep.mubr.msk.bf16.mxu0 %vm1362_vm8, %v2756_v34  ;;  %v2708_v41 = vmax.f32 %v2644_v28, 0.0 }
 0x2f5   :  { %v2643_v5 = vadd.f32 %v6083_v2, %v2572_v25  ;;  %v2706_v43 = vmax.f32 %v2642_v59, 0.0 }
 0x2f6   :  { %v2709_v32 = vmax.f32 %v2645_v10, 0.0 }
 0x2f7   :  { %v2707_v21 = vmax.f32 %v2643_v5, 0.0  ;;  %v4420_v42 = vpop.f32.mrb[128].mxu1  ;;  %v6862_v5 = vld [vmem:[#allocation4_spill] sm:$0xff] }
 0x2f8   :  { %v2758_v31 = vpack.c.bf16 %v2709_v32, %v2708_v41  ;;  %v2577_v61 = vadd.f32 %v4420_v42, %v6091_v58  ;;  %v2356_v18 = vpop.f32.mrb[129].mxu1 }
 0x2f9   :  { %v2757_v23 = vpack.c.bf16 %v2707_v21, %v2706_v43  ;;  %v4421_v8 = vpop.f32.mrb[130].mxu1  ;;  %v6863_v43 = vld [vmem:[#allocation6_spill] sm:$0xff] }
 0x2fa   :  { %v2648_v33 = vadd.f32 %v6083_v2, %v2577_v61  ;;  %v2578_v29 = vadd.f32 %v4421_v8, %v6097_v16  ;;  %v2358_v30 = vpop.f32.mrb[131].mxu1  ;;  %v6864_v61 = vld [vmem:[#allocation3_spill] sm:$0xff] }
 0x2fb   :  { %4477 = vmatmul.mubr.msk.bf16.gmra.mrb[120].mxu0 %vm1362_vm8, %v2757_v23 }
 0x2fc   :  { %v2649_v13 = vadd.f32 %v6083_v2, %v2578_v29  ;;  %4480 = vmatprep.mubr.msk.bf16.mxu0 %vm1362_vm8, %v2758_v31  ;;  %v2712_v60 = vmax.f32 %v2648_v33, 0.0 }
 0x2fe   :  { %v2713_v0 = vmax.f32 %v2649_v13, 0.0 }
 0x2ff   :  { %v4424_v35 = vpop.f32.mrb[132].mxu1 }
 0x300   :  { %v2760_v17 = vpack.c.bf16 %v2713_v0, %v2712_v60  ;;  %v2581_v58 = vadd.f32 %v4424_v35, %v6103_v54  ;;  %v2370_v48 = vpop.f32.mrb[133].mxu1  ;;  %v6865_v0 = vld [vmem:[#allocation8_spill] sm:$0xff] }
 0x301   :  { %v2579_v15 = vadd.f32 %v6095_v44, %v2370_v48  ;;  %v4425_v37 = vpop.f32.mrb[134].mxu1  ;;  %v6866_v48 = vld [vmem:[#allocation2_spill] sm:$0xff] }
 0x302   :  { %v2652_v7 = vadd.f32 %v6083_v2, %v2581_v58  ;;  %v2582_v16 = vadd.f32 %v4425_v37, %v6107_v22  ;;  %v2373_v57 = vpop.f32.mrb[135].mxu1 }
 0x303   :  { %v2650_v49 = vadd.f32 %v6083_v2, %v2579_v15  ;;  %v2580_v38 = vadd.f32 %v6099_v27, %v2373_v57  ;;  %4481 = vmatmul.mubr.msk.bf16.gmra.mrb[124].mxu0 %vm1362_vm8, %v6093_v36 }
 0x304   :  { %v2653_v14 = vadd.f32 %v6083_v2, %v2582_v16  ;;  %4484 = vmatprep.mubr.msk.bf16.mxu0 %vm1362_vm8, %v2760_v17  ;;  %v2716_v44 = vmax.f32 %v2652_v7, 0.0  ;;  %v6867_v16 = vld [vmem:[#allocation10_spill] sm:$0xff] }
 0x305   :  { %v2651_v54 = vadd.f32 %v6083_v2, %v2580_v38  ;;  %v2714_v4 = vmax.f32 %v2650_v49, 0.0 }
 0x306   :  { %v2717_v26 = vmax.f32 %v2653_v14, 0.0  ;;  %v6868_v14 = vld [vmem:[#allocation5_spill] sm:$0xff] }
 0x307   :  { %v2715_v12 = vmax.f32 %v2651_v54, 0.0  ;;  %v4428_v9 = vpop.f32.mrb[136].mxu1 }
 0x308   :  { %v2762_v22 = vpack.c.bf16 %v2717_v26, %v2716_v44  ;;  %v2585_v51 = vadd.f32 %v4428_v9, %v6111_v45  ;;  %v2386_v3 = vpop.f32.mrb[137].mxu1 }
 0x309   :  { %v2761_v47 = vpack.c.bf16 %v2715_v12, %v2714_v4  ;;  %v2583_v27 = vadd.f32 %v6101_v55, %v2386_v3  ;;  %v4429_v56 = vpop.f32.mrb[138].mxu1 }
 0x30a   :  { %v2656_v36 = vadd.f32 %v6083_v2, %v2585_v51  ;;  %v2586_v34 = vadd.f32 %v4429_v56, %v6115_v53  ;;  %v2389_v40 = vpop.f32.mrb[139].mxu1 }
 0x30b   :  { %v2654_v11 = vadd.f32 %v6083_v2, %v2583_v27  ;;  %v2584_v1 = vadd.f32 %v6105_v6, %v2389_v40  ;;  %4485 = vmatmul.mubr.msk.bf16.gmra.mrb[128].mxu0 %vm1362_vm8, %v2761_v47  ;;  %v6869_v47 = vld [vmem:[#allocation12_spill] sm:$0xff] }
 0x30c   :  { %v2657_v46 = vadd.f32 %v6083_v2, %v2586_v34  ;;  %4488 = vmatprep.mubr.msk.bf16.mxu0 %vm1362_vm8, %v2762_v22  ;;  %v2720_v50 = vmax.f32 %v2656_v36, 0.0  ;;  %v6870_v34 = vld [vmem:[#allocation7_spill] sm:$0xff] }
 0x30d   :  { %v2655_v45 = vadd.f32 %v6083_v2, %v2584_v1  ;;  %v2718_v28 = vmax.f32 %v2654_v11, 0.0 }
 0x30e   :  { %v2721_v55 = vmax.f32 %v2657_v46, 0.0  ;;  %v6871_v46 = vld [vmem:[#allocation14_spill] sm:$0xff] }
 0x30f   :  { %v2719_v19 = vmax.f32 %v2655_v45, 0.0  ;;  %v4432_v62 = vpop.f32.mrb[140].mxu1 }
 0x310   :  { %v2764_v59 = vpack.c.bf16 %v2721_v55, %v2720_v50  ;;  %v2589_v53 = vadd.f32 %v4432_v62, %v6119_v39  ;;  %v2402_v25 = vpop.f32.mrb[141].mxu1 }
 0x311   :  { %v2763_v10 = vpack.c.bf16 %v2719_v19, %v2718_v28  ;;  %v2587_v6 = vadd.f32 %v6862_v5, %v2402_v25  ;;  %v4433_v41 = vpop.f32.mrb[142].mxu1  ;;  %v6872_v28 = vld [vmem:[#allocation9_spill] sm:$0xff] }
 0x312   :  { %v2660_v32 = vadd.f32 %v6083_v2, %v2589_v53  ;;  %v2590_v21 = vadd.f32 %v4433_v41, %v6863_v43  ;;  %v2405_v42 = vpop.f32.mrb[143].mxu1 }
 0x313   :  { %v2658_v31 = vadd.f32 %v6083_v2, %v2587_v6  ;;  %v2588_v18 = vadd.f32 %v6864_v61, %v2405_v42  ;;  %4489 = vmatmul.mubr.msk.bf16.gmra.mrb[132].mxu0 %vm1362_vm8, %v2763_v10 }
 0x314   :  { %v2661_v23 = vadd.f32 %v6083_v2, %v2590_v21  ;;  %4492 = vmatprep.mubr.msk.bf16.mxu0 %vm1362_vm8, %v2764_v59  ;;  %v2724_v8 = vmax.f32 %v2660_v32, 0.0  ;;  %v6873_v32 = vld [vmem:[#allocation16_spill] sm:$0xff] }
 0x315   :  { %v2659_v39 = vadd.f32 %v6083_v2, %v2588_v18  ;;  %v2722_v29 = vmax.f32 %v2658_v31, 0.0  ;;  %v6874_v31 = vld [vmem:[#allocation11_spill] sm:$0xff] }
 0x316   :  { %v2725_v33 = vmax.f32 %v2661_v23, 0.0 }
 0x317   :  { %v2723_v30 = vmax.f32 %v2659_v39, 0.0  ;;  %v4436_v13 = vpop.f32.mrb[144].mxu1 }
 0x318   :  { %v2766_v60 = vpack.c.bf16 %v2725_v33, %v2724_v8  ;;  %v2593_v35 = vadd.f32 %v4436_v13, %v6865_v0  ;;  %v2418_v17 = vpop.f32.mrb[145].mxu1 }
 0x319   :  { %v2765_v58 = vpack.c.bf16 %v2723_v30, %v2722_v29  ;;  %v2591_v15 = vadd.f32 %v6866_v48, %v2418_v17  ;;  %v4437_v37 = vpop.f32.mrb[146].mxu1  ;;  %v6875_v29 = vld [vmem:[#allocation13_spill] sm:$0xff] }
 0x31a   :  { %v2664_v7 = vadd.f32 %v6083_v2, %v2593_v35  ;;  %v2594_v57 = vadd.f32 %v4437_v37, %v6867_v16  ;;  %v2421_v49 = vpop.f32.mrb[147].mxu1  ;;  %v6876_v16 = vld [vmem:[#allocation15_spill] sm:$0xff] }
 0x31b   :  { %v2662_v38 = vadd.f32 %v6083_v2, %v2591_v15  ;;  %v2592_v54 = vadd.f32 %v6868_v14, %v2421_v49  ;;  %4493 = vmatmul.mubr.msk.bf16.gmra.mrb[136].mxu0 %vm1362_vm8, %v2765_v58 }
 0x31c   :  { %v2665_v44 = vadd.f32 %v6083_v2, %v2594_v57  ;;  %4496 = vmatprep.mubr.msk.bf16.mxu0 %vm1362_vm8, %v2766_v60  ;;  %v2728_v4 = vmax.f32 %v2664_v7, 0.0 }
 0x31d   :  { %v2663_v26 = vadd.f32 %v6083_v2, %v2592_v54  ;;  %v2726_v9 = vmax.f32 %v2662_v38, 0.0 }
 0x31e   :  { %v2729_v12 = vmax.f32 %v2665_v44, 0.0 }
 0x31f   :  { %v2727_v22 = vmax.f32 %v2663_v26, 0.0  ;;  %v4440_v51 = vpop.f32.mrb[148].mxu1  ;;  %v6877_v26 = vld [vmem:[#allocation17_spill] sm:$0xff] }
 0x320   :  { %v2768_v3 = vpack.c.bf16 %v2729_v12, %v2728_v4  ;;  %v2597_v27 = vadd.f32 %v4440_v51, %v6869_v47  ;;  %v2434_v56 = vpop.f32.mrb[149].mxu1 }
 0x321   :  { %v2767_v36 = vpack.c.bf16 %v2727_v22, %v2726_v9  ;;  %v2595_v40 = vadd.f32 %v6870_v34, %v2434_v56  ;;  %v4441_v11 = vpop.f32.mrb[150].mxu1 }
 0x322   :  { %v2668_v1 = vadd.f32 %v6083_v2, %v2597_v27  ;;  %v2598_v45 = vadd.f32 %v4441_v11, %v6871_v46  ;;  %v2437_v50 = vpop.f32.mrb[151].mxu1 }
 0x323   :  { %v2666_v55 = vadd.f32 %v6083_v2, %v2595_v40  ;;  %v2596_v19 = vadd.f32 %v6872_v28, %v2437_v50  ;;  %4497 = vmatmul.mubr.msk.bf16.gmra.mrb[140].mxu0 %vm1362_vm8, %v2767_v36  ;;  %v4594_v36 = vld [vmem:[%s6733_s0] sm:$0xff]  }
 0x324   :  { %v2669_v62 = vadd.f32 %v6083_v2, %v2598_v45  ;;  %4500 = vmatprep.mubr.msk.bf16.mxu0 %vm1362_vm8, %v2768_v3  ;;  %v2732_v53 = vmax.f32 %v2668_v1, 0.0  ;;  %v2777_v34 = vunpack.c.l.bf16 %v4594_v36  ;;  %v2778_v46 = vunpack.c.h.bf16 %v4594_v36 }
 0x325   :  { %v2667_v59 = vadd.f32 %v6083_v2, %v2596_v19  ;;  %v2730_v10 = vmax.f32 %v2666_v55, 0.0 }
 0x326   :  { %v2733_v25 = vmax.f32 %v2669_v62, 0.0 }
 0x327   :  { %v2731_v5 = vmax.f32 %v2667_v59, 0.0  ;;  %v4444_v6 = vpop.f32.mrb[152].mxu1 }
 0x328   :  { %v2770_v41 = vpack.c.bf16 %v2733_v25, %v2732_v53  ;;  %v2601_v43 = vadd.f32 %v4444_v6, %v6873_v32  ;;  %v2450_v21 = vpop.f32.mrb[153].mxu1  ;;  %v4595_v32 = vld [vmem:[%s6733_s0 + $0x18] sm:$0xff]  }
 0x329   :  { %v2769_v42 = vpack.c.bf16 %v2731_v5, %v2730_v10  ;;  %v2599_v61 = vadd.f32 %v6874_v31, %v2450_v21  ;;  %v4445_v18 = vpop.f32.mrb[154].mxu1 }
 0x32a   :  { %v2672_v23 = vadd.f32 %v6083_v2, %v2601_v43  ;;  %v2602_v39 = vadd.f32 %v4445_v18, %v6147_v24  ;;  %v2453_v8 = vpop.f32.mrb[155].mxu1  ;;  %v2783_v43 = vunpack.c.l.bf16 %v4595_v32 }
 0x32b   :  { %v2670_v33 = vadd.f32 %v6083_v2, %v2599_v61  ;;  %v2600_v30 = vadd.f32 %v6875_v29, %v2453_v8  ;;  %4501 = vmatmul.mubr.msk.bf16.gmra.mrb[144].mxu0 %vm1362_vm8, %v2769_v42  ;;  %v4596_v61 = vld [vmem:[%s6733_s0 + $0x10] sm:$0xff]  }
 0x32c   :  { %v2673_v13 = vadd.f32 %v6083_v2, %v2602_v39  ;;  %4504 = vmatprep.mubr.msk.bf16.mxu0 %vm1362_vm8, %v2770_v41  ;;  %v2736_v0 = vmax.f32 %v2672_v23, 0.0  ;;  %v2781_v18 = vunpack.c.l.bf16 %v4596_v61 }
 0x32d   :  { %v2671_v60 = vadd.f32 %v6083_v2, %v2600_v30  ;;  %v2734_v17 = vmax.f32 %v2670_v33, 0.0  ;;  %v2784_v33 = vunpack.c.h.bf16 %v4595_v32 }
 0x32e   :  { %v2737_v35 = vmax.f32 %v2673_v13, 0.0 }
 0x32f   :  { %v2735_v58 = vmax.f32 %v2671_v60, 0.0  ;;  %v4448_v48 = vpop.f32.mrb[156].mxu1  ;;  %v2782_v60 = vunpack.c.h.bf16 %v4596_v61 }
 0x330   :  { %v2772_v15 = vpack.c.bf16 %v2737_v35, %v2736_v0  ;;  %v2605_v24 = vadd.f32 %v4448_v48, %v6149_v52  ;;  %v2466_v37 = vpop.f32.mrb[157].mxu1 }
 0x331   :  { %v2771_v7 = vpack.c.bf16 %v2735_v58, %v2734_v17  ;;  %v2603_v57 = vadd.f32 %v6876_v16, %v2466_v37  ;;  %v4449_v49 = vpop.f32.mrb[158].mxu1 }
 0x332   :  { %v2676_v38 = vadd.f32 %v6083_v2, %v2605_v24  ;;  %v2606_v14 = vadd.f32 %v4449_v49, %v6152_v20  ;;  %v2469_v54 = vpop.f32.mrb[159].mxu1  ;;  %v6314_v20 = vld [vmem:[%s6738_s6] ss:$0 sm:$0xff]  ;;  %v4597_v49 = vld [vmem:[%s6733_s0 + $0x28] sm:$0xff]  }
 0x333   :  { %v2674_v44 = vadd.f32 %v6083_v2, %v2603_v57  ;;  %v2604_v4 = vadd.f32 %v6877_v26, %v2469_v54  ;;  %4505 = vmatmul.mubr.msk.bf16.gmra.mrb[148].mxu0 %vm1362_vm8, %v2771_v7  ;;  %v4598_v26 = vld [vmem:[%s6733_s0 + $0x20] sm:$0xff]  }
 0x334   :  { %v2677_v12 = vadd.f32 %v6083_v2, %v2606_v14  ;;  %4508 = vmatprep.mubr.msk.bf16.mxu0 %vm1362_vm8, %v2772_v15  ;;  %v2740_v9 = vmax.f32 %v2676_v38, 0.0  ;;  %v2787_v38 = vunpack.c.l.bf16 %v4597_v49 }
 0x335   :  { %v2675_v52 = vadd.f32 %v6083_v2, %v2604_v4  ;;  %v2738_v51 = vmax.f32 %v2674_v44, 0.0  ;;  %v4593_v2 = vld [vmem:[%s6733_s0 + $0x8] sm:$0xff]   ;;  %v2785_v4 = vunpack.c.l.bf16 %v4598_v26 }
 0x336   :  { %v2741_v22 = vmax.f32 %v2677_v12, 0.0  ;;  %v2779_v56 = vunpack.c.l.bf16 %v4593_v2 }
 0x337   :  { %v2739_v3 = vmax.f32 %v2675_v52, 0.0 }
 0x338   :  { %v2774_v47 = vpack.c.bf16 %v2741_v22, %v2740_v9  ;;  %v2788_v22 = vunpack.c.h.bf16 %v4597_v49 }
 0x339   :  { %v2773_v27 = vpack.c.bf16 %v2739_v3, %v2738_v51 }
 0x33b   :  { %4509 = vmatmul.mubr.msk.bf16.gmra.mrb[152].mxu0 %vm1362_vm8, %v2773_v27  ;;  %v2786_v27 = vunpack.c.h.bf16 %v4598_v26 }
 0x33c   :  { %4512 = vmatprep.mubr.msk.bf16.mxu0 %vm1362_vm8, %v2774_v47 }
 0x343   :  { %4513 = vmatmul.mubr.msk.bf16.gmra.mrb[156].mxu0 %vm1362_vm8, %v6156_v63  ;;  %v2780_v63 = vunpack.c.h.bf16 %v4593_v2 }
 0x39e   :  { %v4454_v40 = vpop.f32.mrb[96].mxu0 }
 0x39f   :  { %v2991_v11 = vadd.f32 %v4454_v40, %v6314_v20  ;;  %v2982_v1 = vpop.f32.mrb[97].mxu0 }
 0x3a0   :  { %v2983_v45 = vadd.f32 %v6314_v20, %v2982_v1  ;;  %v4455_v50 = vpop.f32.mrb[98].mxu0 }
 0x3a1   :  { %v3239_v55 = vadd.f32 %v2991_v11, %v2779_v56  ;;  %v2994_v28 = vadd.f32 %v4455_v50, %v6314_v20  ;;  %v2985_v19 = vpop.f32.mrb[99].mxu0 }
 0x3a2   :  { %v3237_v62 = vadd.f32 %v2983_v45, %v2777_v34  ;;  %v2986_v59 = vadd.f32 %v6314_v20, %v2985_v19 }
 0x3a3   :  { %v3303_v53 = vmax.f32 %v3239_v55, 0.0  ;;  %v3240_v25 = vadd.f32 %v2994_v28, %v2780_v63  ;;  %v4599_v55 = vld [vmem:[%s6733_s0 + $0x38] sm:$0xff]  }
 0x3a4   :  { %v3301_v10 = vmax.f32 %v3237_v62, 0.0  ;;  %v3238_v5 = vadd.f32 %v2986_v59, %v2778_v46  ;;  %v2791_v28 = vunpack.c.l.bf16 %v4599_v55 }
 0x3a5   :  { %v3959_v6 = vpack.c.bf16 %v3303_v53, %v3303_v53  ;;  %v3304_v41 = vmax.f32 %v3240_v25, 0.0  ;;  %v4600_v53 = vld [vmem:[%s6733_s0 + $0x30] sm:$0xff]  }
 0x3a6   :  { %v3957_v21 = vpack.c.bf16 %v3301_v10, %v3301_v10  ;;  %v3302_v42 = vmax.f32 %v3238_v5, 0.0  ;;  %v4458_v31 = vpop.f32.mrb[100].mxu0  ;;  %v2789_v25 = vunpack.c.l.bf16 %v4600_v53 }
 0x3a7   :  { %3624 = vst.msk [vmem:[%s6739_s7 + $0x8] sm:$0xf] %vm3621_vm12, %v3959_v6  ;;  %v3960_v23 = vpack.c.bf16 %v3304_v41, %v3304_v41  ;;  %v3007_v39 = vadd.f32 %v4458_v31, %v6314_v20  ;;  %v2998_v8 = vpop.f32.mrb[101].mxu0  ;;  %v2792_v41 = vunpack.c.h.bf16 %v4599_v55 }
 0x3a8   :  { %3622 = vst.msk [vmem:[%s6739_s7] sm:$0xf] %vm3621_vm12, %v3957_v21  ;;  %v3958_v29 = vpack.c.bf16 %v3302_v42, %v3302_v42  ;;  %v2999_v30 = vadd.f32 %v6314_v20, %v2998_v8  ;;  %v4459_v13 = vpop.f32.mrb[102].mxu0  ;;  %v2790_v42 = vunpack.c.h.bf16 %v4600_v53 }
 0x3a9   :  { %3625 = vst.msk [vmem:[%s6739_s7 + $0xc] sm:$0xf] %vm3621_vm12, %v3960_v23  ;;  %v3243_v0 = vadd.f32 %v3007_v39, %v2783_v43  ;;  %v3010_v35 = vadd.f32 %v4459_v13, %v6314_v20  ;;  %v3001_v17 = vpop.f32.mrb[103].mxu0 }
 0x3aa   :  { %3623 = vst.msk [vmem:[%s6739_s7 + $0x4] sm:$0xf] %vm3621_vm12, %v3958_v29  ;;  %v3241_v58 = vadd.f32 %v2999_v30, %v2781_v18  ;;  %v3002_v48 = vadd.f32 %v6314_v20, %v3001_v17 }
 0x3ab   :  { %v3307_v15 = vmax.f32 %v3243_v0, 0.0  ;;  %v3244_v24 = vadd.f32 %v3010_v35, %v2784_v33  ;;  %v4601_v0 = vld [vmem:[%s6733_s0 + $0x48] sm:$0xff]  }
 0x3ac   :  { %v3305_v37 = vmax.f32 %v3241_v58, 0.0  ;;  %v3242_v7 = vadd.f32 %v3002_v48, %v2782_v60  ;;  %v2795_v35 = vunpack.c.l.bf16 %v4601_v0 }
 0x3ad   :  { %v3963_v16 = vpack.c.bf16 %v3307_v15, %v3307_v15  ;;  %v3308_v57 = vmax.f32 %v3244_v24, 0.0  ;;  %v4602_v15 = vld [vmem:[%s6733_s0 + $0x40] sm:$0xff]  }
 0x3ae   :  { %v3961_v14 = vpack.c.bf16 %v3305_v37, %v3305_v37  ;;  %v3306_v54 = vmax.f32 %v3242_v7, 0.0  ;;  %v4462_v44 = vpop.f32.mrb[104].mxu0  ;;  %v2793_v24 = vunpack.c.l.bf16 %v4602_v15 }
 0x3af   :  { %3628 = vst.msk [vmem:[%s6739_s7 + $0x18] sm:$0xf] %vm3621_vm12, %v3963_v16  ;;  %v3964_v12 = vpack.c.bf16 %v3308_v57, %v3308_v57  ;;  %v3023_v52 = vadd.f32 %v4462_v44, %v6314_v20  ;;  %v3014_v9 = vpop.f32.mrb[105].mxu0  ;;  %v2796_v57 = vunpack.c.h.bf16 %v4601_v0 }
 0x3b0   :  { %3626 = vst.msk [vmem:[%s6739_s7 + $0x10] sm:$0xf] %vm3621_vm12, %v3961_v14  ;;  %v3962_v51 = vpack.c.bf16 %v3306_v54, %v3306_v54  ;;  %v3015_v3 = vadd.f32 %v6314_v20, %v3014_v9  ;;  %v4463_v47 = vpop.f32.mrb[106].mxu0  ;;  %v2794_v54 = vunpack.c.h.bf16 %v4602_v15 }
 0x3b1   :  { %3629 = vst.msk [vmem:[%s6739_s7 + $0x1c] sm:$0xf] %vm3621_vm12, %v3964_v12  ;;  %v3247_v2 = vadd.f32 %v3023_v52, %v2787_v38  ;;  %v3026_v56 = vadd.f32 %v4463_v47, %v6314_v20  ;;  %v3017_v36 = vpop.f32.mrb[107].mxu0 }
 0x3b2   :  { %3627 = vst.msk [vmem:[%s6739_s7 + $0x14] sm:$0xf] %vm3621_vm12, %v3962_v51  ;;  %v3245_v34 = vadd.f32 %v3015_v3, %v2785_v4  ;;  %v3018_v40 = vadd.f32 %v6314_v20, %v3017_v36 }
 0x3b3   :  { %v3311_v11 = vmax.f32 %v3247_v2, 0.0  ;;  %v3248_v1 = vadd.f32 %v3026_v56, %v2788_v22  ;;  %v4603_v2 = vld [vmem:[%s6733_s0 + $0x58] sm:$0xff]  }
 0x3b4   :  { %v3309_v63 = vmax.f32 %v3245_v34, 0.0  ;;  %v3246_v46 = vadd.f32 %v3018_v40, %v2786_v27  ;;  %v2799_v56 = vunpack.c.l.bf16 %v4603_v2 }
 0x3b5   :  { %v3967_v45 = vpack.c.bf16 %v3311_v11, %v3311_v11  ;;  %v3312_v50 = vmax.f32 %v3248_v1, 0.0  ;;  %v4604_v11 = vld [vmem:[%s6733_s0 + $0x50] sm:$0xff]  }
 0x3b6   :  { %v3965_v19 = vpack.c.bf16 %v3309_v63, %v3309_v63  ;;  %v3310_v62 = vmax.f32 %v3246_v46, 0.0  ;;  %v4466_v59 = vpop.f32.mrb[108].mxu0  ;;  %v2797_v1 = vunpack.c.l.bf16 %v4604_v11 }
 0x3b7   :  { %3632 = vst.msk [vmem:[%s6739_s7 + $0x28] sm:$0xf] %vm3621_vm12, %v3967_v45  ;;  %v3968_v10 = vpack.c.bf16 %v3312_v50, %v3312_v50  ;;  %v3039_v5 = vadd.f32 %v4466_v59, %v6314_v20  ;;  %v3030_v6 = vpop.f32.mrb[109].mxu0  ;;  %v2800_v50 = vunpack.c.h.bf16 %v4603_v2 }
 0x3b8   :  { %3630 = vst.msk [vmem:[%s6739_s7 + $0x20] sm:$0xf] %vm3621_vm12, %v3965_v19  ;;  %v3966_v32 = vpack.c.bf16 %v3310_v62, %v3310_v62  ;;  %v3031_v43 = vadd.f32 %v6314_v20, %v3030_v6  ;;  %v4467_v21 = vpop.f32.mrb[110].mxu0  ;;  %v2798_v62 = vunpack.c.h.bf16 %v4604_v11 }
 0x3b9   :  { %3633 = vst.msk [vmem:[%s6739_s7 + $0x2c] sm:$0xf] %vm3621_vm12, %v3968_v10  ;;  %v3251_v31 = vadd.f32 %v3039_v5, %v2791_v28  ;;  %v3042_v61 = vadd.f32 %v4467_v21, %v6314_v20  ;;  %v3033_v18 = vpop.f32.mrb[111].mxu0 }
 0x3ba   :  { %3631 = vst.msk [vmem:[%s6739_s7 + $0x24] sm:$0xf] %vm3621_vm12, %v3966_v32  ;;  %v3249_v23 = vadd.f32 %v3031_v43, %v2789_v25  ;;  %v3034_v39 = vadd.f32 %v6314_v20, %v3033_v18 }
 0x3bb   :  { %v3315_v8 = vmax.f32 %v3251_v31, 0.0  ;;  %v3252_v33 = vadd.f32 %v3042_v61, %v2792_v41  ;;  %v4605_v31 = vld [vmem:[%s6733_s0 + $0x68] sm:$0xff]  }
 0x3bc   :  { %v3313_v29 = vmax.f32 %v3249_v23, 0.0  ;;  %v3250_v30 = vadd.f32 %v3034_v39, %v2790_v42  ;;  %v2803_v61 = vunpack.c.l.bf16 %v4605_v31 }
 0x3bd   :  { %v3971_v13 = vpack.c.bf16 %v3315_v8, %v3315_v8  ;;  %v3316_v60 = vmax.f32 %v3252_v33, 0.0  ;;  %v4606_v8 = vld [vmem:[%s6733_s0 + $0x60] sm:$0xff]  }
 0x3be   :  { %v3969_v17 = vpack.c.bf16 %v3313_v29, %v3313_v29  ;;  %v3314_v58 = vmax.f32 %v3250_v30, 0.0  ;;  %v4470_v48 = vpop.f32.mrb[112].mxu0  ;;  %v2801_v33 = vunpack.c.l.bf16 %v4606_v8 }
 0x3bf   :  { %3636 = vst.msk [vmem:[%s6739_s7 + $0x38] sm:$0xf] %vm3621_vm12, %v3971_v13  ;;  %v3972_v37 = vpack.c.bf16 %v3316_v60, %v3316_v60  ;;  %v3055_v7 = vadd.f32 %v4470_v48, %v6314_v20  ;;  %v3046_v16 = vpop.f32.mrb[113].mxu0  ;;  %v2804_v60 = vunpack.c.h.bf16 %v4605_v31 }
 0x3c0   :  { %3634 = vst.msk [vmem:[%s6739_s7 + $0x30] sm:$0xf] %vm3621_vm12, %v3969_v17  ;;  %v3970_v49 = vpack.c.bf16 %v3314_v58, %v3314_v58  ;;  %v3047_v38 = vadd.f32 %v6314_v20, %v3046_v16  ;;  %v4471_v14 = vpop.f32.mrb[114].mxu0  ;;  %v2802_v58 = vunpack.c.h.bf16 %v4606_v8 }
 0x3c1   :  { %3637 = vst.msk [vmem:[%s6739_s7 + $0x3c] sm:$0xf] %vm3621_vm12, %v3972_v37  ;;  %v3255_v44 = vadd.f32 %v3055_v7, %v2795_v35  ;;  %v3058_v26 = vadd.f32 %v4471_v14, %v6314_v20  ;;  %v3049_v4 = vpop.f32.mrb[115].mxu0 }
 0x3c2   :  { %3635 = vst.msk [vmem:[%s6739_s7 + $0x34] sm:$0xf] %vm3621_vm12, %v3970_v49  ;;  %v3253_v12 = vadd.f32 %v3047_v38, %v2793_v24  ;;  %v3050_v52 = vadd.f32 %v6314_v20, %v3049_v4 }
 0x3c3   :  { %v3319_v9 = vmax.f32 %v3255_v44, 0.0  ;;  %v3256_v22 = vadd.f32 %v3058_v26, %v2796_v57  ;;  %v4607_v44 = vld [vmem:[%s6733_s0 + $0x78] sm:$0xff]  }
 0x3c4   :  { %v3317_v51 = vmax.f32 %v3253_v12, 0.0  ;;  %v3254_v3 = vadd.f32 %v3050_v52, %v2794_v54  ;;  %v2807_v26 = vunpack.c.l.bf16 %v4607_v44 }
 0x3c5   :  { %v3975_v47 = vpack.c.bf16 %v3319_v9, %v3319_v9  ;;  %v3320_v27 = vmax.f32 %v3256_v22, 0.0  ;;  %v4608_v9 = vld [vmem:[%s6733_s0 + $0x70] sm:$0xff]  }
 0x3c6   :  { %v3973_v36 = vpack.c.bf16 %v3317_v51, %v3317_v51  ;;  %v3318_v34 = vmax.f32 %v3254_v3, 0.0  ;;  %v4474_v40 = vpop.f32.mrb[116].mxu0  ;;  %v2805_v22 = vunpack.c.l.bf16 %v4608_v9 }
 0x3c7   :  { %3640 = vst.msk [vmem:[%s6739_s7 + $0x48] sm:$0xf] %vm3621_vm12, %v3975_v47  ;;  %v3976_v63 = vpack.c.bf16 %v3320_v27, %v3320_v27  ;;  %v3071_v46 = vadd.f32 %v4474_v40, %v6314_v20  ;;  %v3062_v45 = vpop.f32.mrb[117].mxu0  ;;  %v2808_v27 = vunpack.c.h.bf16 %v4607_v44 }
 0x3c8   :  { %3638 = vst.msk [vmem:[%s6739_s7 + $0x40] sm:$0xf] %vm3621_vm12, %v3973_v36  ;;  %v3974_v55 = vpack.c.bf16 %v3318_v34, %v3318_v34  ;;  %v3063_v28 = vadd.f32 %v6314_v20, %v3062_v45  ;;  %v4475_v19 = vpop.f32.mrb[118].mxu0  ;;  %v2806_v34 = vunpack.c.h.bf16 %v4608_v9 }
 0x3c9   :  { %3641 = vst.msk [vmem:[%s6739_s7 + $0x4c] sm:$0xf] %vm3621_vm12, %v3976_v63  ;;  %v3259_v59 = vadd.f32 %v3071_v46, %v2799_v56  ;;  %v3074_v53 = vadd.f32 %v4475_v19, %v6314_v20  ;;  %v3065_v25 = vpop.f32.mrb[119].mxu0 }
 0x3ca   :  { %3639 = vst.msk [vmem:[%s6739_s7 + $0x44] sm:$0xf] %vm3621_vm12, %v3974_v55  ;;  %v3257_v10 = vadd.f32 %v3063_v28, %v2797_v1  ;;  %v3066_v5 = vadd.f32 %v6314_v20, %v3065_v25  ;;  %v4610_v25 = vld [vmem:[%s6733_s0 + $0x80] sm:$0xff]  }
 0x3cb   :  { %v3323_v6 = vmax.f32 %v3259_v59, 0.0  ;;  %v3260_v41 = vadd.f32 %v3074_v53, %v2800_v50  ;;  %v4609_v59 = vld [vmem:[%s6733_s0 + $0x88] sm:$0xff]   ;;  %v2810_v31 = vunpack.c.h.bf16 %v4610_v25 }
 0x3cc   :  { %v3321_v32 = vmax.f32 %v3257_v10, 0.0  ;;  %v3258_v43 = vadd.f32 %v3066_v5, %v2798_v62  ;;  %v2811_v53 = vunpack.c.l.bf16 %v4609_v59  ;;  %v2809_v10 = vunpack.c.l.bf16 %v4610_v25 }
 0x3cd   :  { %v3979_v21 = vpack.c.bf16 %v3323_v6, %v3323_v6  ;;  %v3324_v42 = vmax.f32 %v3260_v41, 0.0 }
 0x3ce   :  { %v3977_v18 = vpack.c.bf16 %v3321_v32, %v3321_v32  ;;  %v3322_v23 = vmax.f32 %v3258_v43, 0.0  ;;  %v4478_v39 = vpop.f32.mrb[120].mxu0 }
 0x3cf   :  { %3644 = vst.msk [vmem:[%s6739_s7 + $0x58] sm:$0xf] %vm3621_vm12, %v3979_v21  ;;  %v3980_v29 = vpack.c.bf16 %v3324_v42, %v3324_v42  ;;  %v3087_v30 = vadd.f32 %v4478_v39, %v6314_v20  ;;  %v3078_v13 = vpop.f32.mrb[121].mxu0  ;;  %v2812_v42 = vunpack.c.h.bf16 %v4609_v59 }
 0x3d0   :  { %3642 = vst.msk [vmem:[%s6739_s7 + $0x50] sm:$0xf] %vm3621_vm12, %v3977_v18  ;;  %v3978_v0 = vpack.c.bf16 %v3322_v23, %v3322_v23  ;;  %v3079_v35 = vadd.f32 %v6314_v20, %v3078_v13  ;;  %v4479_v17 = vpop.f32.mrb[122].mxu0 }
 0x3d1   :  { %3645 = vst.msk [vmem:[%s6739_s7 + $0x5c] sm:$0xf] %vm3621_vm12, %v3980_v29  ;;  %v3263_v48 = vadd.f32 %v3087_v30, %v2803_v61  ;;  %v3090_v15 = vadd.f32 %v4479_v17, %v6314_v20  ;;  %v3081_v24 = vpop.f32.mrb[123].mxu0 }
 0x3d2   :  { %3643 = vst.msk [vmem:[%s6739_s7 + $0x54] sm:$0xf] %vm3621_vm12, %v3978_v0  ;;  %v3261_v37 = vadd.f32 %v3079_v35, %v2801_v33  ;;  %v3082_v7 = vadd.f32 %v6314_v20, %v3081_v24 }
 0x3d3   :  { %v3327_v16 = vmax.f32 %v3263_v48, 0.0  ;;  %v3264_v57 = vadd.f32 %v3090_v15, %v2804_v60  ;;  %v4611_v48 = vld [vmem:[%s6733_s0 + $0x98] sm:$0xff]  }
 0x3d4   :  { %v3325_v49 = vmax.f32 %v3261_v37, 0.0  ;;  %v3262_v38 = vadd.f32 %v3082_v7, %v2802_v58  ;;  %v2815_v15 = vunpack.c.l.bf16 %v4611_v48 }
 0x3d5   :  { %v3983_v14 = vpack.c.bf16 %v3327_v16, %v3327_v16  ;;  %v3328_v54 = vmax.f32 %v3264_v57, 0.0  ;;  %v4612_v16 = vld [vmem:[%s6733_s0 + $0x90] sm:$0xff]  }
 0x3d6   :  { %v3981_v4 = vpack.c.bf16 %v3325_v49, %v3325_v49  ;;  %v3326_v12 = vmax.f32 %v3262_v38, 0.0  ;;  %v4482_v52 = vpop.f32.mrb[124].mxu0  ;;  %v2813_v57 = vunpack.c.l.bf16 %v4612_v16 }
 0x3d7   :  { %3648 = vst.msk [vmem:[%s6739_s7 + $0x68] sm:$0xf] %vm3621_vm12, %v3983_v14  ;;  %v3984_v51 = vpack.c.bf16 %v3328_v54, %v3328_v54  ;;  %v3103_v3 = vadd.f32 %v4482_v52, %v6314_v20  ;;  %v3094_v47 = vpop.f32.mrb[125].mxu0  ;;  %v2816_v54 = vunpack.c.h.bf16 %v4611_v48 }
 0x3d8   :  { %3646 = vst.msk [vmem:[%s6739_s7 + $0x60] sm:$0xf] %vm3621_vm12, %v3981_v4  ;;  %v3982_v2 = vpack.c.bf16 %v3326_v12, %v3326_v12  ;;  %v3095_v56 = vadd.f32 %v6314_v20, %v3094_v47  ;;  %v4483_v36 = vpop.f32.mrb[126].mxu0  ;;  %v2814_v12 = vunpack.c.h.bf16 %v4612_v16 }
 0x3d9   :  { %3649 = vst.msk [vmem:[%s6739_s7 + $0x6c] sm:$0xf] %vm3621_vm12, %v3984_v51  ;;  %v3267_v40 = vadd.f32 %v3103_v3, %v2807_v26  ;;  %v3106_v11 = vadd.f32 %v4483_v36, %v6314_v20  ;;  %v3097_v1 = vpop.f32.mrb[127].mxu0 }
 0x3da   :  { %3647 = vst.msk [vmem:[%s6739_s7 + $0x64] sm:$0xf] %vm3621_vm12, %v3982_v2  ;;  %v3265_v63 = vadd.f32 %v3095_v56, %v2805_v22  ;;  %v3098_v46 = vadd.f32 %v6314_v20, %v3097_v1 }
 0x3db   :  { %v3331_v45 = vmax.f32 %v3267_v40, 0.0  ;;  %v3268_v50 = vadd.f32 %v3106_v11, %v2808_v27  ;;  %v4613_v40 = vld [vmem:[%s6733_s0 + $0xa8] sm:$0xff]  }
 0x3dc   :  { %v3329_v55 = vmax.f32 %v3265_v63, 0.0  ;;  %v3266_v28 = vadd.f32 %v3098_v46, %v2806_v34  ;;  %v2819_v11 = vunpack.c.l.bf16 %v4613_v40 }
 0x3dd   :  { %v3987_v19 = vpack.c.bf16 %v3331_v45, %v3331_v45  ;;  %v3332_v62 = vmax.f32 %v3268_v50, 0.0  ;;  %v4614_v45 = vld [vmem:[%s6733_s0 + $0xa0] sm:$0xff]  }
 0x3de   :  { %v3985_v5 = vpack.c.bf16 %v3329_v55, %v3329_v55  ;;  %v3330_v6 = vmax.f32 %v3266_v28, 0.0  ;;  %v4486_v41 = vpop.f32.mrb[128].mxu0  ;;  %v2817_v50 = vunpack.c.l.bf16 %v4614_v45 }
 0x3df   :  { %3652 = vst.msk [vmem:[%s6739_s7 + $0x78] sm:$0xf] %vm3621_vm12, %v3987_v19  ;;  %v3988_v32 = vpack.c.bf16 %v3332_v62, %v3332_v62  ;;  %v3119_v43 = vadd.f32 %v4486_v41, %v6314_v20  ;;  %v3110_v21 = vpop.f32.mrb[129].mxu0  ;;  %v2820_v62 = vunpack.c.h.bf16 %v4613_v40 }
 0x3e0   :  { %3650 = vst.msk [vmem:[%s6739_s7 + $0x70] sm:$0xf] %vm3621_vm12, %v3985_v5  ;;  %v3986_v61 = vpack.c.bf16 %v3330_v6, %v3330_v6  ;;  %v3111_v18 = vadd.f32 %v6314_v20, %v3110_v21  ;;  %v4487_v23 = vpop.f32.mrb[130].mxu0 }
 0x3e1   :  { %3653 = vst.msk [vmem:[%s6739_s7 + $0x7c] sm:$0xf] %vm3621_vm12, %v3988_v32  ;;  %v3271_v39 = vadd.f32 %v3119_v43, %v2811_v53  ;;  %v3122_v8 = vadd.f32 %v4487_v23, %v6314_v20  ;;  %v3113_v33 = vpop.f32.mrb[131].mxu0 }
 0x3e2   :  { %3651 = vst.msk [vmem:[%s6739_s7 + $0x74] sm:$0xf] %vm3621_vm12, %v3986_v61  ;;  %v3269_v29 = vadd.f32 %v3111_v18, %v2809_v10  ;;  %v3114_v30 = vadd.f32 %v6314_v20, %v3113_v33  ;;  %v2818_v10 = vunpack.c.h.bf16 %v4614_v45 }
 0x3e3   :  { %v3335_v13 = vmax.f32 %v3271_v39, 0.0  ;;  %v3272_v60 = vadd.f32 %v3122_v8, %v2812_v42  ;;  %v4615_v39 = vld [vmem:[%s6733_s0 + $0xb8] sm:$0xff]  }
 0x3e4   :  { %v3333_v0 = vmax.f32 %v3269_v29, 0.0  ;;  %v3270_v35 = vadd.f32 %v3114_v30, %v2810_v31  ;;  %v2823_v8 = vunpack.c.l.bf16 %v4615_v39 }
 0x3e5   :  { %v3991_v17 = vpack.c.bf16 %v3335_v13, %v3335_v13  ;;  %v3336_v58 = vmax.f32 %v3272_v60, 0.0  ;;  %v4616_v13 = vld [vmem:[%s6733_s0 + $0xb0] sm:$0xff]  }
 0x3e6   :  { %v3989_v24 = vpack.c.bf16 %v3333_v0, %v3333_v0  ;;  %v3334_v37 = vmax.f32 %v3270_v35, 0.0  ;;  %v4490_v7 = vpop.f32.mrb[132].mxu0  ;;  %v2821_v60 = vunpack.c.l.bf16 %v4616_v13 }
 0x3e7   :  { %3656 = vst.msk [vmem:[%s6739_s7 + $0x88] sm:$0xf] %vm3621_vm12, %v3991_v17  ;;  %v3992_v49 = vpack.c.bf16 %v3336_v58, %v3336_v58  ;;  %v3135_v38 = vadd.f32 %v4490_v7, %v6314_v20  ;;  %v3126_v14 = vpop.f32.mrb[133].mxu0  ;;  %v2824_v58 = vunpack.c.h.bf16 %v4615_v39 }
 0x3e8   :  { %3654 = vst.msk [vmem:[%s6739_s7 + $0x80] sm:$0xf] %vm3621_vm12, %v3989_v24  ;;  %v3990_v44 = vpack.c.bf16 %v3334_v37, %v3334_v37  ;;  %v3127_v26 = vadd.f32 %v6314_v20, %v3126_v14  ;;  %v4491_v4 = vpop.f32.mrb[134].mxu0  ;;  %v2822_v37 = vunpack.c.h.bf16 %v4616_v13 }
 0x3e9   :  { %3657 = vst.msk [vmem:[%s6739_s7 + $0x8c] sm:$0xf] %vm3621_vm12, %v3992_v49  ;;  %v3275_v52 = vadd.f32 %v3135_v38, %v2815_v15  ;;  %v3138_v9 = vadd.f32 %v4491_v4, %v6314_v20  ;;  %v3129_v22 = vpop.f32.mrb[135].mxu0 }
 0x3ea   :  { %3655 = vst.msk [vmem:[%s6739_s7 + $0x84] sm:$0xf] %vm3621_vm12, %v3990_v44  ;;  %v3273_v51 = vadd.f32 %v3127_v26, %v2813_v57  ;;  %v3130_v3 = vadd.f32 %v6314_v20, %v3129_v22 }
 0x3eb   :  { %v3339_v47 = vmax.f32 %v3275_v52, 0.0  ;;  %v3276_v27 = vadd.f32 %v3138_v9, %v2816_v54  ;;  %v4617_v52 = vld [vmem:[%s6733_s0 + $0xc8] sm:$0xff]  }
 0x3ec   :  { %v3337_v2 = vmax.f32 %v3273_v51, 0.0  ;;  %v3274_v56 = vadd.f32 %v3130_v3, %v2814_v12  ;;  %v2827_v9 = vunpack.c.l.bf16 %v4617_v52 }
 0x3ed   :  { %v3995_v36 = vpack.c.bf16 %v3339_v47, %v3339_v47  ;;  %v3340_v34 = vmax.f32 %v3276_v27, 0.0  ;;  %v4618_v47 = vld [vmem:[%s6733_s0 + $0xc0] sm:$0xff]  }
 0x3ee   :  { %v3993_v1 = vpack.c.bf16 %v3337_v2, %v3337_v2  ;;  %v3338_v63 = vmax.f32 %v3274_v56, 0.0  ;;  %v4494_v46 = vpop.f32.mrb[136].mxu0  ;;  %v2825_v27 = vunpack.c.l.bf16 %v4618_v47 }
 0x3ef   :  { %3660 = vst.msk [vmem:[%s6739_s7 + $0x98] sm:$0xf] %vm3621_vm12, %v3995_v36  ;;  %v3996_v55 = vpack.c.bf16 %v3340_v34, %v3340_v34  ;;  %v3151_v28 = vadd.f32 %v4494_v46, %v6314_v20  ;;  %v3142_v19 = vpop.f32.mrb[137].mxu0  ;;  %v2828_v34 = vunpack.c.h.bf16 %v4617_v52 }
 0x3f0   :  { %3658 = vst.msk [vmem:[%s6739_s7 + $0x90] sm:$0xf] %vm3621_vm12, %v3993_v1  ;;  %v3994_v59 = vpack.c.bf16 %v3338_v63, %v3338_v63  ;;  %v3143_v53 = vadd.f32 %v6314_v20, %v3142_v19  ;;  %v4495_v25 = vpop.f32.mrb[138].mxu0  ;;  %v2826_v63 = vunpack.c.h.bf16 %v4618_v47 }
 0x3f1   :  { %3661 = vst.msk [vmem:[%s6739_s7 + $0x9c] sm:$0xf] %vm3621_vm12, %v3996_v55  ;;  %v3279_v5 = vadd.f32 %v3151_v28, %v2819_v11  ;;  %v3154_v6 = vadd.f32 %v4495_v25, %v6314_v20  ;;  %v3145_v41 = vpop.f32.mrb[139].mxu0 }
 0x3f2   :  { %3659 = vst.msk [vmem:[%s6739_s7 + $0x94] sm:$0xf] %vm3621_vm12, %v3994_v59  ;;  %v3277_v32 = vadd.f32 %v3143_v53, %v2817_v50  ;;  %v3146_v43 = vadd.f32 %v6314_v20, %v3145_v41 }
 0x3f3   :  { %v3343_v21 = vmax.f32 %v3279_v5, 0.0  ;;  %v3280_v42 = vadd.f32 %v3154_v6, %v2820_v62  ;;  %v4619_v5 = vld [vmem:[%s6733_s0 + $0xd8] sm:$0xff]  }
 0x3f4   :  { %v3341_v31 = vmax.f32 %v3277_v32, 0.0  ;;  %v3278_v61 = vadd.f32 %v3146_v43, %v2818_v10  ;;  %v2831_v6 = vunpack.c.l.bf16 %v4619_v5 }
 0x3f5   :  { %v3999_v18 = vpack.c.bf16 %v3343_v21, %v3343_v21  ;;  %v3344_v23 = vmax.f32 %v3280_v42, 0.0  ;;  %v4620_v21 = vld [vmem:[%s6733_s0 + $0xd0] sm:$0xff]  }
 0x3f6   :  { %v3997_v33 = vpack.c.bf16 %v3341_v31, %v3341_v31  ;;  %v3342_v29 = vmax.f32 %v3278_v61, 0.0  ;;  %v4498_v30 = vpop.f32.mrb[140].mxu0  ;;  %v2829_v42 = vunpack.c.l.bf16 %v4620_v21 }
 0x3f7   :  { %3664 = vst.msk [vmem:[%s6739_s7 + $0xa8] sm:$0xf] %vm3621_vm12, %v3999_v18  ;;  %v4000_v0 = vpack.c.bf16 %v3344_v23, %v3344_v23  ;;  %v3167_v35 = vadd.f32 %v4498_v30, %v6314_v20  ;;  %v3158_v17 = vpop.f32.mrb[141].mxu0  ;;  %v2832_v23 = vunpack.c.h.bf16 %v4619_v5 }
 0x3f8   :  { %3662 = vst.msk [vmem:[%s6739_s7 + $0xa0] sm:$0xf] %vm3621_vm12, %v3997_v33  ;;  %v3998_v48 = vpack.c.bf16 %v3342_v29, %v3342_v29  ;;  %v3159_v15 = vadd.f32 %v6314_v20, %v3158_v17  ;;  %v4499_v24 = vpop.f32.mrb[142].mxu0  ;;  %v2830_v29 = vunpack.c.h.bf16 %v4620_v21 }
 0x3f9   :  { %3665 = vst.msk [vmem:[%s6739_s7 + $0xac] sm:$0xf] %vm3621_vm12, %v4000_v0  ;;  %v3283_v7 = vadd.f32 %v3167_v35, %v2823_v8  ;;  %v3170_v16 = vadd.f32 %v4499_v24, %v6314_v20  ;;  %v3161_v57 = vpop.f32.mrb[143].mxu0 }
 0x3fa   :  { %3663 = vst.msk [vmem:[%s6739_s7 + $0xa4] sm:$0xf] %vm3621_vm12, %v3998_v48  ;;  %v3281_v49 = vadd.f32 %v3159_v15, %v2821_v60  ;;  %v3162_v38 = vadd.f32 %v6314_v20, %v3161_v57 }
 0x3fb   :  { %v3347_v14 = vmax.f32 %v3283_v7, 0.0  ;;  %v3284_v54 = vadd.f32 %v3170_v16, %v2824_v58  ;;  %v4621_v7 = vld [vmem:[%s6733_s0 + $0xe8] sm:$0xff]  }
 0x3fc   :  { %v3345_v44 = vmax.f32 %v3281_v49, 0.0  ;;  %v3282_v26 = vadd.f32 %v3162_v38, %v2822_v37  ;;  %v2835_v16 = vunpack.c.l.bf16 %v4621_v7 }
 0x3fd   :  { %v4003_v4 = vpack.c.bf16 %v3347_v14, %v3347_v14  ;;  %v3348_v12 = vmax.f32 %v3284_v54, 0.0  ;;  %v4622_v14 = vld [vmem:[%s6733_s0 + $0xe0] sm:$0xff]  }
 0x3fe   :  { %v4001_v22 = vpack.c.bf16 %v3345_v44, %v3345_v44  ;;  %v3346_v51 = vmax.f32 %v3282_v26, 0.0  ;;  %v4502_v3 = vpop.f32.mrb[144].mxu0  ;;  %v2833_v54 = vunpack.c.l.bf16 %v4622_v14 }
 0x3ff   :  { %3668 = vst.msk [vmem:[%s6739_s7 + $0xb8] sm:$0xf] %vm3621_vm12, %v4003_v4  ;;  %v4004_v2 = vpack.c.bf16 %v3348_v12, %v3348_v12  ;;  %v3183_v56 = vadd.f32 %v4502_v3, %v6314_v20  ;;  %v3174_v36 = vpop.f32.mrb[145].mxu0  ;;  %v2836_v12 = vunpack.c.h.bf16 %v4621_v7 }
 0x400   :  { %3666 = vst.msk [vmem:[%s6739_s7 + $0xb0] sm:$0xf] %vm3621_vm12, %v4001_v22  ;;  %v4002_v40 = vpack.c.bf16 %v3346_v51, %v3346_v51  ;;  %v3175_v11 = vadd.f32 %v6314_v20, %v3174_v36  ;;  %v4503_v1 = vpop.f32.mrb[146].mxu0  ;;  %v2834_v51 = vunpack.c.h.bf16 %v4622_v14 }
 0x401   :  { %3669 = vst.msk [vmem:[%s6739_s7 + $0xbc] sm:$0xf] %vm3621_vm12, %v4004_v2  ;;  %v3287_v46 = vadd.f32 %v3183_v56, %v2827_v9  ;;  %v3186_v45 = vadd.f32 %v4503_v1, %v6314_v20  ;;  %v3177_v50 = vpop.f32.mrb[147].mxu0 }
 0x402   :  { %3667 = vst.msk [vmem:[%s6739_s7 + $0xb4] sm:$0xf] %vm3621_vm12, %v4002_v40  ;;  %v3285_v55 = vadd.f32 %v3175_v11, %v2825_v27  ;;  %v3178_v28 = vadd.f32 %v6314_v20, %v3177_v50 }
 0x403   :  { %v3351_v19 = vmax.f32 %v3287_v46, 0.0  ;;  %v3288_v62 = vadd.f32 %v3186_v45, %v2828_v34  ;;  %v4623_v46 = vld [vmem:[%s6733_s0 + $0xf8] sm:$0xff]  }
 0x404   :  { %v3349_v59 = vmax.f32 %v3285_v55, 0.0  ;;  %v3286_v53 = vadd.f32 %v3178_v28, %v2826_v63  ;;  %v2839_v45 = vunpack.c.l.bf16 %v4623_v46 }
 0x405   :  { %v4007_v25 = vpack.c.bf16 %v3351_v19, %v3351_v19  ;;  %v3352_v10 = vmax.f32 %v3288_v62, 0.0  ;;  %v4624_v19 = vld [vmem:[%s6733_s0 + $0xf0] sm:$0xff]  }
 0x406   :  { %v4005_v41 = vpack.c.bf16 %v3349_v59, %v3349_v59  ;;  %v3350_v32 = vmax.f32 %v3286_v53, 0.0  ;;  %v4506_v43 = vpop.f32.mrb[148].mxu0  ;;  %v2837_v62 = vunpack.c.l.bf16 %v4624_v19 }
 0x407   :  { %3672 = vst.msk [vmem:[%s6739_s7 + $0xc8] sm:$0xf] %vm3621_vm12, %v4007_v25  ;;  %v4008_v31 = vpack.c.bf16 %v3352_v10, %v3352_v10  ;;  %v3199_v61 = vadd.f32 %v4506_v43, %v6314_v20  ;;  %v3190_v18 = vpop.f32.mrb[149].mxu0  ;;  %v2840_v10 = vunpack.c.h.bf16 %v4623_v46 }
 0x408   :  { %3670 = vst.msk [vmem:[%s6739_s7 + $0xc0] sm:$0xf] %vm3621_vm12, %v4005_v41  ;;  %v4006_v39 = vpack.c.bf16 %v3350_v32, %v3350_v32  ;;  %v3191_v8 = vadd.f32 %v6314_v20, %v3190_v18  ;;  %v4507_v33 = vpop.f32.mrb[150].mxu0  ;;  %v2838_v32 = vunpack.c.h.bf16 %v4624_v19 }
 0x409   :  { %3673 = vst.msk [vmem:[%s6739_s7 + $0xcc] sm:$0xf] %vm3621_vm12, %v4008_v31  ;;  %v3291_v30 = vadd.f32 %v3199_v61, %v2831_v6  ;;  %v3202_v13 = vadd.f32 %v4507_v33, %v6314_v20  ;;  %v3193_v60 = vpop.f32.mrb[151].mxu0 }
 0x40a   :  { %3671 = vst.msk [vmem:[%s6739_s7 + $0xc4] sm:$0xf] %vm3621_vm12, %v4006_v39  ;;  %v3289_v0 = vadd.f32 %v3191_v8, %v2829_v42  ;;  %v3194_v35 = vadd.f32 %v6314_v20, %v3193_v60 }
 0x40b   :  { %v3355_v17 = vmax.f32 %v3291_v30, 0.0  ;;  %v3292_v58 = vadd.f32 %v3202_v13, %v2832_v23 }
 0x40c   :  { %v3353_v48 = vmax.f32 %v3289_v0, 0.0  ;;  %v3290_v15 = vadd.f32 %v3194_v35, %v2830_v29 }
 0x40d   :  { %v4011_v24 = vpack.c.bf16 %v3355_v17, %v3355_v17  ;;  %v3356_v37 = vmax.f32 %v3292_v58, 0.0 }
 0x40e   :  { %v4009_v57 = vpack.c.bf16 %v3353_v48, %v3353_v48  ;;  %v3354_v49 = vmax.f32 %v3290_v15, 0.0  ;;  %v4510_v38 = vpop.f32.mrb[152].mxu0 }
 0x40f   :  { %3676 = vst.msk [vmem:[%s6739_s7 + $0xd8] sm:$0xf] %vm3621_vm12, %v4011_v24  ;;  %v4012_v44 = vpack.c.bf16 %v3356_v37, %v3356_v37  ;;  %v3215_v26 = vadd.f32 %v4510_v38, %v6314_v20  ;;  %v3206_v4 = vpop.f32.mrb[153].mxu0 }
 0x410   :  { %3674 = vst.msk [vmem:[%s6739_s7 + $0xd0] sm:$0xf] %vm3621_vm12, %v4009_v57  ;;  %v4010_v52 = vpack.c.bf16 %v3354_v49, %v3354_v49  ;;  %v3207_v9 = vadd.f32 %v6314_v20, %v3206_v4  ;;  %v4511_v22 = vpop.f32.mrb[154].mxu0 }
 0x411   :  { %3677 = vst.msk [vmem:[%s6739_s7 + $0xdc] sm:$0xf] %vm3621_vm12, %v4012_v44  ;;  %v3295_v3 = vadd.f32 %v3215_v26, %v2835_v16  ;;  %v3218_v47 = vadd.f32 %v4511_v22, %v6314_v20  ;;  %v3209_v27 = vpop.f32.mrb[155].mxu0 }
 0x412   :  { %3675 = vst.msk [vmem:[%s6739_s7 + $0xd4] sm:$0xf] %vm3621_vm12, %v4010_v52  ;;  %v3293_v2 = vadd.f32 %v3207_v9, %v2833_v54  ;;  %v3210_v56 = vadd.f32 %v6314_v20, %v3209_v27 }
 0x413   :  { %v3359_v36 = vmax.f32 %v3295_v3, 0.0  ;;  %v3296_v34 = vadd.f32 %v3218_v47, %v2836_v12 }
 0x414   :  { %v3357_v40 = vmax.f32 %v3293_v2, 0.0  ;;  %v3294_v11 = vadd.f32 %v3210_v56, %v2834_v51 }
 0x415   :  { %v4015_v1 = vpack.c.bf16 %v3359_v36, %v3359_v36  ;;  %v3360_v63 = vmax.f32 %v3296_v34, 0.0 }
 0x416   :  { %v4013_v50 = vpack.c.bf16 %v3357_v40, %v3357_v40  ;;  %v3358_v55 = vmax.f32 %v3294_v11, 0.0  ;;  %v4514_v28 = vpop.f32.mrb[156].mxu0 }
 0x417   :  { %3680 = vst.msk [vmem:[%s6739_s7 + $0xe8] sm:$0xf] %vm3621_vm12, %v4015_v1  ;;  %v4016_v59 = vpack.c.bf16 %v3360_v63, %v3360_v63  ;;  %v3231_v53 = vadd.f32 %v4514_v28, %v6314_v20  ;;  %v3222_v25 = vpop.f32.mrb[157].mxu0 }
 0x418   :  { %3678 = vst.msk [vmem:[%s6739_s7 + $0xe0] sm:$0xf] %vm3621_vm12, %v4013_v50  ;;  %v4014_v5 = vpack.c.bf16 %v3358_v55, %v3358_v55  ;;  %v3223_v6 = vadd.f32 %v6314_v20, %v3222_v25  ;;  %v4515_v41 = vpop.f32.mrb[158].mxu0 }
 0x419   :  { %3681 = vst.msk [vmem:[%s6739_s7 + $0xec] sm:$0xf] %vm3621_vm12, %v4016_v59  ;;  %v3299_v43 = vadd.f32 %v3231_v53, %v2839_v45  ;;  %v3234_v21 = vadd.f32 %v4515_v41, %v6314_v20  ;;  %v3225_v42 = vpop.f32.mrb[159].mxu0 }
 0x41a   :  { %3679 = vst.msk [vmem:[%s6739_s7 + $0xe4] sm:$0xf] %vm3621_vm12, %v4014_v5  ;;  %v3297_v31 = vadd.f32 %v3223_v6, %v2837_v62  ;;  %v3226_v61 = vadd.f32 %v6314_v20, %v3225_v42 }
 0x41b   :  { %v3363_v18 = vmax.f32 %v3299_v43, 0.0  ;;  %v3300_v23 = vadd.f32 %v3234_v21, %v2840_v10 }
 0x41c   :  { %v3361_v39 = vmax.f32 %v3297_v31, 0.0  ;;  %v3298_v8 = vadd.f32 %v3226_v61, %v2838_v32 }
 0x41d   :  { %v4019_v33 = vpack.c.bf16 %v3363_v18, %v3363_v18  ;;  %v3364_v29 = vmax.f32 %v3300_v23, 0.0 }
 0x41e   :  { %v4017_v30 = vpack.c.bf16 %v3361_v39, %v3361_v39  ;;  %v3362_v13 = vmax.f32 %v3298_v8, 0.0 }
 0x41f   :  { %3684 = vst.msk [vmem:[%s6739_s7 + $0xf8] sm:$0xf] %vm3621_vm12, %v4019_v33  ;;  %v4020_v60 = vpack.c.bf16 %v3364_v29, %v3364_v29 }
 0x420   :  { %3682 = vst.msk [vmem:[%s6739_s7 + $0xf0] sm:$0xf] %vm3621_vm12, %v4017_v30  ;;  %v4018_v20 = vpack.c.bf16 %v3362_v13, %v3362_v13 }
 0x421   :  { %3685 = vst.msk [vmem:[%s6739_s7 + $0xfc] sm:$0xf] %vm3621_vm12, %v4020_v60 }
 0x422   :  { %3683 = vst.msk [vmem:[%s6739_s7 + $0xf4] sm:$0xf] %vm3621_vm12, %v4018_v20 }

</bundles_post_ra>
